<compile_context>
chip_gen: v7x
topology: tpu7x:2x2x1
jax: 0.10.0
libtpu: 0.0.40
codegen_flags: <defaults>
</compile_context>

<pallas_src>
import functools

import jax
import jax.numpy as jnp
from jax import lax
from jax.experimental import pallas as pl
from jax.experimental.pallas import tpu as pltpu

KSIZE = 5
PAD = 2          # (KSIZE - 1) // 2
BN_EPS = 1e-5


def _round_up(x, m):
    return ((x + m - 1) // m) * m


# --------------------------------------------------------------------------
# Fused kernel: all layers for one (batch, time-tile) grid point.
# --------------------------------------------------------------------------
def _postnet_kernel(*refs, t_tile, seq_len, n_layers):
    x_hbm = refs[0]                               # (B, T_pad + 2*halo, Cin_p) in HBM
    layer_refs = refs[1:1 + 3 * n_layers]         # per layer: w, scale, shift
    o_ref = refs[1 + 3 * n_layers]                # (1, t_tile, Cin_p)
    x_scr, act_a, act_b, dma_sem = refs[2 + 3 * n_layers:]

    b = pl.program_id(0)
    t0 = pl.multiple_of(pl.program_id(1) * t_tile, 8)
    halo = PAD * n_layers
    t_in = t_tile + 2 * halo

    # Manual DMA of the overlapping (haloed) input window for this tile.
    # The wrapper zero-padded the input by `halo` on each side, so padded
    # index t0 corresponds to global time (t0 - halo).
    cp = pltpu.make_async_copy(
        x_hbm.at[pl.ds(b, 1), pl.ds(t0, t_in), :], x_scr, dma_sem)
    cp.start()
    cp.wait()

    bufs = (act_a, act_b)
    for l in range(n_layers):
        w_ref, scale_ref, shift_ref = layer_refs[3 * l:3 * l + 3]
        ksize = w_ref.shape[0]
        cout = w_ref.shape[2]
        w_out = t_tile + 2 * PAD * (n_layers - 1 - l)   # output window of layer l
        halo_out = PAD * (n_layers - 1 - l)             # global start = t0 - halo_out
        is_last = l == n_layers - 1
        src = None if l == 0 else bufs[(l - 1) % 2]

        # Conv1d(k=5) as 5 lane-dense 2-D matmuls accumulated in f32 on the MXU.
        acc = jnp.zeros((w_out, cout), jnp.float32)
        for k in range(ksize):
            if l == 0:
                xk = x_scr[0, k:k + w_out, :]            # (w_out, Cin_p)
            else:
                xk = src[k:k + w_out, :]
            acc = acc + jnp.dot(xk, w_ref[k], preferred_element_type=jnp.float32)

        # Folded (conv bias + BatchNorm eval) affine.
        y = acc * scale_ref[...] + shift_ref[...]

        if is_last:
            o_ref[0, :, :] = y.astype(o_ref.dtype)
        else:
            y = jnp.tanh(y)
            # Zero activations that lie outside the true sequence [0, T) so the
            # next conv sees exactly PyTorch's per-layer zero padding.
            pos = (t0 - halo_out) + lax.broadcasted_iota(jnp.int32, (w_out, 1), 0)
            y = jnp.where((pos >= 0) & (pos < seq_len), y, 0.0)
            dst = bufs[l % 2]
            dst[0:w_out, :] = y.astype(dst.dtype)


# --------------------------------------------------------------------------
# Host-side parameter folding / padding.
# --------------------------------------------------------------------------
def _fold_and_pad_params(raw_params, cp_in, cp_mid, compute_dtype):
    """Fold conv bias + BN(eval) into (scale, shift); zero-pad channels to
    multiples of 128; cast weights to the activation/compute dtype."""
    n = len(raw_params)
    flat = []
    for i, layer in enumerate(raw_params):
        w, b, bn = layer["w"], layer["b"], layer["bn"]
        k, cin, cout = w.shape
        if bn is None:                       # final conv: no BN, no tanh
            scale = jnp.ones((cout,), jnp.float32)
            shift = b.astype(jnp.float32)
        else:
            gamma, beta, mean, var = bn
            scale = gamma / jnp.sqrt(var + BN_EPS)
            shift = beta + scale * (b - mean)
        cin_p = cp_in if i == 0 else cp_mid
        cout_p = cp_in if i == n - 1 else cp_mid
        w_p = jnp.zeros((k, cin_p, cout_p), compute_dtype)
        w_p = w_p.at[:, :cin, :cout].set(w.astype(compute_dtype))
        scale_p = jnp.zeros((1, cout_p), jnp.float32).at[0, :cout].set(scale)
        shift_p = jnp.zeros((1, cout_p), jnp.float32).at[0, :cout].set(shift)
        flat += [w_p, scale_p, shift_p]
    return flat


# --------------------------------------------------------------------------
# Forward pass wrapper (one pallas_call for the whole Postnet).
# --------------------------------------------------------------------------
def postnet_forward(mel, raw_params, *, t_tile=256):
    """mel: (B, T, mel_dim) -> (B, T, mel_dim). Eval-mode Postnet forward."""
    B, T, mel_dim = mel.shape
    n_layers = len(raw_params)
    postnet_dim = raw_params[0]["w"].shape[2]
    dtype = mel.dtype
    itemsize = jnp.dtype(dtype).itemsize

    cp_in = _round_up(mel_dim, 128)       # mel channels padded to lanes
    cp_mid = _round_up(postnet_dim, 128)  # postnet channels padded to lanes

    halo = PAD * n_layers                 # per-side time halo for the fused stack
    t_tile = int(min(t_tile, _round_up(T, 8)))
    t_pad = _round_up(T, t_tile)
    n_t = t_pad // t_tile
    t_in = t_tile + 2 * halo
    w_mid = t_tile + 2 * PAD * (n_layers - 1)   # largest intermediate window

    # One-time zero pad of the (small) input: channels -> cp_in, time -> halo
    # on each side plus alignment to t_pad.  (No per-layer jnp.pad.)
    x = jnp.zeros((B, t_pad + 2 * halo, cp_in), dtype)
    x = x.at[:, halo:halo + T, :mel_dim].set(mel)

    flat_params = _fold_and_pad_params(raw_params, cp_in, cp_mid, dtype)

    kernel = functools.partial(
        _postnet_kernel, t_tile=t_tile, seq_len=T, n_layers=n_layers)

    # Resident weights: full-array blocks with a constant block index.
    param_specs = []
    for i in range(n_layers):
        w_p, s_p, h_p = flat_params[3 * i:3 * i + 3]
        param_specs.append(pl.BlockSpec(w_p.shape, lambda b, t: (0, 0, 0)))
        param_specs.append(pl.BlockSpec(s_p.shape, lambda b, t: (0, 0)))
        param_specs.append(pl.BlockSpec(h_p.shape, lambda b, t: (0, 0)))

    in_specs = [pl.BlockSpec(memory_space=pl.ANY)] + param_specs
    out_specs = pl.BlockSpec((1, t_tile, cp_in), lambda b, t: (b, t, 0))

    scratch_shapes = [
        pltpu.VMEM((1, t_in, cp_in), dtype),     # haloed input tile
        pltpu.VMEM((w_mid, cp_mid), dtype),      # ping activation buffer
        pltpu.VMEM((w_mid, cp_mid), dtype),      # pong activation buffer
        pltpu.SemaphoreType.DMA,                 # input-tile DMA semaphore
    ]

    # Cost estimate + VMEM budget (per-generation safe: scales with tile size).
    flops = 0
    for i in range(n_layers):
        cin_p = cp_in if i == 0 else cp_mid
        cout_p = cp_in if i == n_layers - 1 else cp_mid
        flops += 2 * B * t_pad * KSIZE * cin_p * cout_p
    transcendentals = B * t_pad * cp_mid * (n_layers - 1)
    param_bytes = sum(int(p.size) * p.dtype.itemsize for p in flat_params)
    bytes_accessed = int(x.size) * itemsize + B * t_pad * cp_in * itemsize + param_bytes

    scratch_bytes = (t_in * cp_in + 2 * w_mid * cp_mid) * itemsize
    out_block_bytes = 2 * t_tile * cp_in * itemsize            # double-buffered output
    acc_bytes = 2 * w_mid * max(cp_mid, cp_in) * 4             # f32 accumulator headroom
    vmem_limit = int(min(110 * 2**20,
                         max(16 * 2**20,
                             2 * (param_bytes + scratch_bytes + out_block_bytes + acc_bytes))))

    out = pl.pallas_call(
        kernel,
        out_shape=jax.ShapeDtypeStruct((B, t_pad, cp_in), dtype),
        grid_spec=pltpu.PrefetchScalarGridSpec(
            num_scalar_prefetch=0,
            grid=(B, n_t),
            in_specs=in_specs,
            out_specs=out_specs,
            scratch_shapes=scratch_shapes,
        ),
        compiler_params=pltpu.CompilerParams(
            dimension_semantics=("parallel", "parallel"),
            vmem_limit_bytes=vmem_limit,
        ),
        cost_estimate=pl.CostEstimate(
            flops=int(flops),
            transcendentals=int(transcendentals),
            bytes_accessed=int(bytes_accessed),
        ),
    )(x, *flat_params)

    return out[:, :T, :mel_dim]


# --------------------------------------------------------------------------
# Parameters (raw, PyTorch-like) and a pure-JAX reference for validation.
# --------------------------------------------------------------------------
def init_postnet_params(key, mel_dim, postnet_dim, num_convs=5):
    """Deterministic synthetic parameters mirroring the PyTorch module:
    per layer: conv weight w[k,cin,cout], conv bias b[cout], and
    (gamma, beta, running_mean, running_var) for the BN layers (None on last)."""
    layers = []
    for i in range(num_convs):
        is_last = i == num_convs - 1
        cin = mel_dim if i == 0 else postnet_dim
        cout = mel_dim if is_last else postnet_dim
        key, kw, kb, kg, kbt, km, kv = jax.random.split(key, 7)
        w = jax.random.normal(kw, (KSIZE, cin, cout), jnp.float32) * 0.1
        b = jax.random.normal(kb, (cout,), jnp.float32) * 0.1
        if is_last:
            bn = None
        else:
            gamma = 1.0 + 0.1 * jax.random.normal(kg, (cout,), jnp.float32)
            beta = 0.1 * jax.random.normal(kbt, (cout,), jnp.float32)
            mean = 0.1 * jax.random.normal(km, (cout,), jnp.float32)
            var = jnp.abs(jax.random.normal(kv, (cout,), jnp.float32)) + 0.5
            bn = (gamma, beta, mean, var)
        layers.append({"w": w, "b": b, "bn": bn})
    return layers


def postnet_reference(mel, raw_params):
    """Pure-JAX (non-Pallas) reference implementing the PyTorch eval-mode math."""
    x = mel.astype(jnp.float32)
    for layer in raw_params:
        w, b, bn = layer["w"], layer["b"], layer["bn"]
        B, T, _ = x.shape
        xp = jnp.pad(x, ((0, 0), (PAD, PAD), (0, 0)))
        acc = jnp.zeros((B, T, w.shape[2]), jnp.float32)
        for k in range(KSIZE):
            acc = acc + jnp.einsum("btc,cd->btd", xp[:, k:k + T, :], w[k])
        y = acc + b
        if bn is not None:
            gamma, beta, mean, var = bn
            y = (y - mean) / jnp.sqrt(var + BN_EPS) * gamma + beta
            y = jnp.tanh(y)
        x = y
    return x


if __name__ == "__main__":
    B, T = 2, 16
    mel_dim, postnet_dim = 8, 16

    key = jax.random.PRNGKey(0)
    key, kin = jax.random.split(key)
    mel = jax.random.normal(kin, (B, T, mel_dim), jnp.float32)

    params = init_postnet_params(key, mel_dim, postnet_dim, num_convs=5)

    out = jax.block_until_ready(postnet_forward(mel, params))
    assert out.shape == (B, T, mel_dim), out.shape

    ref = postnet_reference(mel, params)
    max_err = float(jnp.max(jnp.abs(out.astype(jnp.float32) - ref)))
    assert max_err < 2e-3, f"max abs error vs reference: {max_err}"

    print("KERNEL_OK")
</pallas_src>

<mosaic_0001>
module attributes {stable_mosaic.version = 11 : i64} {
  func.func @_postnet_kernel(%arg0: i32, %arg1: i32, %arg2: memref<2x36x128xf32, #tpu.memory_space<any>>, %arg3: memref<5x128x128xf32, #tpu.memory_space<vmem>>, %arg4: memref<1x128xf32, #tpu.memory_space<vmem>>, %arg5: memref<1x128xf32, #tpu.memory_space<vmem>>, %arg6: memref<5x128x128xf32, #tpu.memory_space<vmem>>, %arg7: memref<1x128xf32, #tpu.memory_space<vmem>>, %arg8: memref<1x128xf32, #tpu.memory_space<vmem>>, %arg9: memref<5x128x128xf32, #tpu.memory_space<vmem>>, %arg10: memref<1x128xf32, #tpu.memory_space<vmem>>, %arg11: memref<1x128xf32, #tpu.memory_space<vmem>>, %arg12: memref<5x128x128xf32, #tpu.memory_space<vmem>>, %arg13: memref<1x128xf32, #tpu.memory_space<vmem>>, %arg14: memref<1x128xf32, #tpu.memory_space<vmem>>, %arg15: memref<5x128x128xf32, #tpu.memory_space<vmem>>, %arg16: memref<1x128xf32, #tpu.memory_space<vmem>>, %arg17: memref<1x128xf32, #tpu.memory_space<vmem>>, %arg18: memref<1x16x128xf32, #tpu.memory_space<vmem>>, %arg19: memref<1x36x128xf32, #tpu.memory_space<vmem>>, %arg20: memref<32x128xf32, #tpu.memory_space<vmem>>, %arg21: memref<32x128xf32, #tpu.memory_space<vmem>>, %arg22: memref<!tpu.dma_semaphore, #tpu.memory_space<semaphore_mem>>) attributes {dimension_semantics = [#tpu.dimension_semantics<parallel>, #tpu.dimension_semantics<parallel>], iteration_bounds = array<i64: 2, 1>, scalar_prefetch = 0 : i64, scratch_operands = 4 : i64, tpu.core_type = #tpu.core_type<tc>, window_params = [{}, {pipeline_mode = #tpu.pipeline_mode<synchronous>, transform_indices = @transform_1, window_bounds = array<i64: 5, 128, 128>}, {pipeline_mode = #tpu.pipeline_mode<synchronous>, transform_indices = @transform_2, window_bounds = array<i64: 1, 128>}, {pipeline_mode = #tpu.pipeline_mode<synchronous>, transform_indices = @transform_3, window_bounds = array<i64: 1, 128>}, {pipeline_mode = #tpu.pipeline_mode<synchronous>, transform_indices = @transform_4, window_bounds = array<i64: 5, 128, 128>}, {pipeline_mode = #tpu.pipeline_mode<synchronous>, transform_indices = @transform_5, window_bounds = array<i64: 1, 128>}, {pipeline_mode = #tpu.pipeline_mode<synchronous>, transform_indices = @transform_6, window_bounds = array<i64: 1, 128>}, {pipeline_mode = #tpu.pipeline_mode<synchronous>, transform_indices = @transform_7, window_bounds = array<i64: 5, 128, 128>}, {pipeline_mode = #tpu.pipeline_mode<synchronous>, transform_indices = @transform_8, window_bounds = array<i64: 1, 128>}, {pipeline_mode = #tpu.pipeline_mode<synchronous>, transform_indices = @transform_9, window_bounds = array<i64: 1, 128>}, {pipeline_mode = #tpu.pipeline_mode<synchronous>, transform_indices = @transform_10, window_bounds = array<i64: 5, 128, 128>}, {pipeline_mode = #tpu.pipeline_mode<synchronous>, transform_indices = @transform_11, window_bounds = array<i64: 1, 128>}, {pipeline_mode = #tpu.pipeline_mode<synchronous>, transform_indices = @transform_12, window_bounds = array<i64: 1, 128>}, {pipeline_mode = #tpu.pipeline_mode<synchronous>, transform_indices = @transform_13, window_bounds = array<i64: 5, 128, 128>}, {pipeline_mode = #tpu.pipeline_mode<synchronous>, transform_indices = @transform_14, window_bounds = array<i64: 1, 128>}, {pipeline_mode = #tpu.pipeline_mode<synchronous>, transform_indices = @transform_15, window_bounds = array<i64: 1, 128>}, {transform_indices = @transform_16, window_bounds = array<i64: 1, 16, 128>}]} {
    %c16_i32 = arith.constant 16 : i32
    %0 = arith.muli %arg1, %c16_i32 : i32
    %1 = tpu.assume_multiple %0, 8 : i32
    %c0_i32 = arith.constant 0 : i32
    %2 = tpu.memref_slice %arg2[%arg0, %1, %c0_i32] : memref<2x36x128xf32, #tpu.memory_space<any>> -> memref<1x36x128xf32, #tpu.memory_space<any>>
    tpu.enqueue_dma source(%2 : memref<1x36x128xf32, #tpu.memory_space<any>>) target(%arg19 : memref<1x36x128xf32, #tpu.memory_space<vmem>>) target_semaphore(%arg22 : memref<!tpu.dma_semaphore, #tpu.memory_space<semaphore_mem>>)
    %c0_i32_0 = arith.constant 0 : i32
    %3 = tpu.memref_slice %arg2[%arg0, %1, %c0_i32_0] : memref<2x36x128xf32, #tpu.memory_space<any>> -> memref<1x36x128xf32, #tpu.memory_space<any>>
    tpu.wait_dma2 semaphore(%arg22 : memref<!tpu.dma_semaphore, #tpu.memory_space<semaphore_mem>>) src(%3 : memref<1x36x128xf32, #tpu.memory_space<any>>) dst(%arg19 : memref<1x36x128xf32, #tpu.memory_space<vmem>>)
    %cst = arith.constant 0.000000e+00 : f32
    %4 = vector.broadcast %cst : f32 to vector<32x128xf32>
    %c0 = arith.constant 0 : index
    %c0_1 = arith.constant 0 : index
    %c0_2 = arith.constant 0 : index
    %5 = vector.load %arg19[%c0, %c0_1, %c0_2] : memref<1x36x128xf32, #tpu.memory_space<vmem>>, vector<1x32x128xf32>
    %6 = vector.shape_cast %5 : vector<1x32x128xf32> to vector<32x128xf32>
    %c0_3 = arith.constant 0 : index
    %c0_4 = arith.constant 0 : index
    %c0_5 = arith.constant 0 : index
    %7 = vector.load %arg3[%c0_3, %c0_4, %c0_5] : memref<5x128x128xf32, #tpu.memory_space<vmem>>, vector<1x128x128xf32>
    %8 = vector.shape_cast %7 : vector<1x128x128xf32> to vector<128x128xf32>
    %cst_6 = arith.constant dense<0.000000e+00> : vector<32x128xf32>
    %9 = tpu.matmul %6, %8, %cst_6 {dimension_numbers = #tpu.dot_dimension_numbers<[1], [0], [0], [1], [0, 0, 1, 1], [], []>} : vector<32x128xf32>, vector<128x128xf32>, vector<32x128xf32> -> vector<32x128xf32>
    %10 = arith.addf %4, %9 : vector<32x128xf32>
    %c0_7 = arith.constant 0 : index
    %c1 = arith.constant 1 : index
    %c0_8 = arith.constant 0 : index
    %11 = vector.load %arg19[%c0_7, %c1, %c0_8] : memref<1x36x128xf32, #tpu.memory_space<vmem>>, vector<1x32x128xf32>
    %12 = vector.shape_cast %11 : vector<1x32x128xf32> to vector<32x128xf32>
    %c1_9 = arith.constant 1 : index
    %c0_10 = arith.constant 0 : index
    %c0_11 = arith.constant 0 : index
    %13 = vector.load %arg3[%c1_9, %c0_10, %c0_11] : memref<5x128x128xf32, #tpu.memory_space<vmem>>, vector<1x128x128xf32>
    %14 = vector.shape_cast %13 : vector<1x128x128xf32> to vector<128x128xf32>
    %cst_12 = arith.constant dense<0.000000e+00> : vector<32x128xf32>
    %15 = tpu.matmul %12, %14, %cst_12 {dimension_numbers = #tpu.dot_dimension_numbers<[1], [0], [0], [1], [0, 0, 1, 1], [], []>} : vector<32x128xf32>, vector<128x128xf32>, vector<32x128xf32> -> vector<32x128xf32>
    %16 = arith.addf %10, %15 : vector<32x128xf32>
    %c0_13 = arith.constant 0 : index
    %c2 = arith.constant 2 : index
    %c0_14 = arith.constant 0 : index
    %17 = vector.load %arg19[%c0_13, %c2, %c0_14] : memref<1x36x128xf32, #tpu.memory_space<vmem>>, vector<1x32x128xf32>
    %18 = vector.shape_cast %17 : vector<1x32x128xf32> to vector<32x128xf32>
    %c2_15 = arith.constant 2 : index
    %c0_16 = arith.constant 0 : index
    %c0_17 = arith.constant 0 : index
    %19 = vector.load %arg3[%c2_15, %c0_16, %c0_17] : memref<5x128x128xf32, #tpu.memory_space<vmem>>, vector<1x128x128xf32>
    %20 = vector.shape_cast %19 : vector<1x128x128xf32> to vector<128x128xf32>
    %cst_18 = arith.constant dense<0.000000e+00> : vector<32x128xf32>
    %21 = tpu.matmul %18, %20, %cst_18 {dimension_numbers = #tpu.dot_dimension_numbers<[1], [0], [0], [1], [0, 0, 1, 1], [], []>} : vector<32x128xf32>, vector<128x128xf32>, vector<32x128xf32> -> vector<32x128xf32>
    %22 = arith.addf %16, %21 : vector<32x128xf32>
    %c0_19 = arith.constant 0 : index
    %c3 = arith.constant 3 : index
    %c0_20 = arith.constant 0 : index
    %23 = vector.load %arg19[%c0_19, %c3, %c0_20] : memref<1x36x128xf32, #tpu.memory_space<vmem>>, vector<1x32x128xf32>
    %24 = vector.shape_cast %23 : vector<1x32x128xf32> to vector<32x128xf32>
    %c3_21 = arith.constant 3 : index
    %c0_22 = arith.constant 0 : index
    %c0_23 = arith.constant 0 : index
    %25 = vector.load %arg3[%c3_21, %c0_22, %c0_23] : memref<5x128x128xf32, #tpu.memory_space<vmem>>, vector<1x128x128xf32>
    %26 = vector.shape_cast %25 : vector<1x128x128xf32> to vector<128x128xf32>
    %cst_24 = arith.constant dense<0.000000e+00> : vector<32x128xf32>
    %27 = tpu.matmul %24, %26, %cst_24 {dimension_numbers = #tpu.dot_dimension_numbers<[1], [0], [0], [1], [0, 0, 1, 1], [], []>} : vector<32x128xf32>, vector<128x128xf32>, vector<32x128xf32> -> vector<32x128xf32>
    %28 = arith.addf %22, %27 : vector<32x128xf32>
    %c0_25 = arith.constant 0 : index
    %c4 = arith.constant 4 : index
    %c0_26 = arith.constant 0 : index
    %29 = vector.load %arg19[%c0_25, %c4, %c0_26] : memref<1x36x128xf32, #tpu.memory_space<vmem>>, vector<1x32x128xf32>
    %30 = vector.shape_cast %29 : vector<1x32x128xf32> to vector<32x128xf32>
    %c4_27 = arith.constant 4 : index
    %c0_28 = arith.constant 0 : index
    %c0_29 = arith.constant 0 : index
    %31 = vector.load %arg3[%c4_27, %c0_28, %c0_29] : memref<5x128x128xf32, #tpu.memory_space<vmem>>, vector<1x128x128xf32>
    %32 = vector.shape_cast %31 : vector<1x128x128xf32> to vector<128x128xf32>
    %cst_30 = arith.constant dense<0.000000e+00> : vector<32x128xf32>
    %33 = tpu.matmul %30, %32, %cst_30 {dimension_numbers = #tpu.dot_dimension_numbers<[1], [0], [0], [1], [0, 0, 1, 1], [], []>} : vector<32x128xf32>, vector<128x128xf32>, vector<32x128xf32> -> vector<32x128xf32>
    %34 = arith.addf %28, %33 : vector<32x128xf32>
    %c0_31 = arith.constant 0 : index
    %c0_32 = arith.constant 0 : index
    %35 = vector.load %arg4[%c0_31, %c0_32] : memref<1x128xf32, #tpu.memory_space<vmem>>, vector<1x128xf32>
    %36 = vector.broadcast %35 : vector<1x128xf32> to vector<32x128xf32>
    %37 = arith.mulf %34, %36 : vector<32x128xf32>
    %c0_33 = arith.constant 0 : index
    %c0_34 = arith.constant 0 : index
    %38 = vector.load %arg5[%c0_33, %c0_34] : memref<1x128xf32, #tpu.memory_space<vmem>>, vector<1x128xf32>
    %39 = vector.broadcast %38 : vector<1x128xf32> to vector<32x128xf32>
    %40 = arith.addf %37, %39 : vector<32x128xf32>
    %41 = math.tanh %40 : vector<32x128xf32>
    %c8_i32 = arith.constant 8 : i32
    %42 = arith.subi %1, %c8_i32 : i32
    %43 = tpu.iota {dimensions = array<i32: 0>} : vector<32x1xi32>
    %44 = vector.broadcast %42 : i32 to vector<32x1xi32>
    %45 = arith.addi %44, %43 : vector<32x1xi32>
    %c0_i32_35 = arith.constant 0 : i32
    %46 = vector.broadcast %c0_i32_35 : i32 to vector<32x1xi32>
    %47 = arith.cmpi sge, %45, %46 : vector<32x1xi32>
    %c16_i32_36 = arith.constant 16 : i32
    %48 = vector.broadcast %c16_i32_36 : i32 to vector<32x1xi32>
    %49 = arith.cmpi slt, %45, %48 : vector<32x1xi32>
    %50 = arith.andi %47, %49 : vector<32x1xi1>
    %cst_37 = arith.constant 0.000000e+00 : f32
    %51 = vector.shape_cast %50 : vector<32x1xi1> to vector<32x1xi1>
    %52 = vector.broadcast %51 : vector<32x1xi1> to vector<32x128xi1>
    %53 = vector.broadcast %cst_37 : f32 to vector<32x128xf32>
    %54 = arith.select %52, %41, %53 : vector<32x128xi1>, vector<32x128xf32>
    %c0_38 = arith.constant 0 : index
    %c0_39 = arith.constant 0 : index
    %55 = vector.load %arg20[%c0_38, %c0_39] : memref<32x128xf32, #tpu.memory_space<vmem>>, vector<32x128xf32>
    tpu.vector_store %arg20[%c0_38, %c0_39], %54 {strides = array<i32>} : memref<32x128xf32, #tpu.memory_space<vmem>>, vector<32x128xf32>,
    %cst_40 = arith.constant 0.000000e+00 : f32
    %56 = vector.broadcast %cst_40 : f32 to vector<28x128xf32>
    %c0_41 = arith.constant 0 : index
    %c0_42 = arith.constant 0 : index
    %57 = vector.load %arg20[%c0_41, %c0_42] : memref<32x128xf32, #tpu.memory_space<vmem>>, vector<28x128xf32>
    %c0_43 = arith.constant 0 : index
    %c0_44 = arith.constant 0 : index
    %c0_45 = arith.constant 0 : index
    %58 = vector.load %arg6[%c0_43, %c0_44, %c0_45] : memref<5x128x128xf32, #tpu.memory_space<vmem>>, vector<1x128x128xf32>
    %59 = vector.shape_cast %58 : vector<1x128x128xf32> to vector<128x128xf32>
    %cst_46 = arith.constant dense<0.000000e+00> : vector<28x128xf32>
    %60 = tpu.matmul %57, %59, %cst_46 {dimension_numbers = #tpu.dot_dimension_numbers<[1], [0], [0], [1], [0, 0, 1, 1], [], []>} : vector<28x128xf32>, vector<128x128xf32>, vector<28x128xf32> -> vector<28x128xf32>
    %61 = arith.addf %56, %60 : vector<28x128xf32>
    %c1_47 = arith.constant 1 : index
    %c0_48 = arith.constant 0 : index
    %62 = vector.load %arg20[%c1_47, %c0_48] : memref<32x128xf32, #tpu.memory_space<vmem>>, vector<28x128xf32>
    %c1_49 = arith.constant 1 : index
    %c0_50 = arith.constant 0 : index
    %c0_51 = arith.constant 0 : index
    %63 = vector.load %arg6[%c1_49, %c0_50, %c0_51] : memref<5x128x128xf32, #tpu.memory_space<vmem>>, vector<1x128x128xf32>
    %64 = vector.shape_cast %63 : vector<1x128x128xf32> to vector<128x128xf32>
    %cst_52 = arith.constant dense<0.000000e+00> : vector<28x128xf32>
    %65 = tpu.matmul %62, %64, %cst_52 {dimension_numbers = #tpu.dot_dimension_numbers<[1], [0], [0], [1], [0, 0, 1, 1], [], []>} : vector<28x128xf32>, vector<128x128xf32>, vector<28x128xf32> -> vector<28x128xf32>
    %66 = arith.addf %61, %65 : vector<28x128xf32>
    %c2_53 = arith.constant 2 : index
    %c0_54 = arith.constant 0 : index
    %67 = vector.load %arg20[%c2_53, %c0_54] : memref<32x128xf32, #tpu.memory_space<vmem>>, vector<28x128xf32>
    %c2_55 = arith.constant 2 : index
    %c0_56 = arith.constant 0 : index
    %c0_57 = arith.constant 0 : index
    %68 = vector.load %arg6[%c2_55, %c0_56, %c0_57] : memref<5x128x128xf32, #tpu.memory_space<vmem>>, vector<1x128x128xf32>
    %69 = vector.shape_cast %68 : vector<1x128x128xf32> to vector<128x128xf32>
    %cst_58 = arith.constant dense<0.000000e+00> : vector<28x128xf32>
    %70 = tpu.matmul %67, %69, %cst_58 {dimension_numbers = #tpu.dot_dimension_numbers<[1], [0], [0], [1], [0, 0, 1, 1], [], []>} : vector<28x128xf32>, vector<128x128xf32>, vector<28x128xf32> -> vector<28x128xf32>
    %71 = arith.addf %66, %70 : vector<28x128xf32>
    %c3_59 = arith.constant 3 : index
    %c0_60 = arith.constant 0 : index
    %72 = vector.load %arg20[%c3_59, %c0_60] : memref<32x128xf32, #tpu.memory_space<vmem>>, vector<28x128xf32>
    %c3_61 = arith.constant 3 : index
    %c0_62 = arith.constant 0 : index
    %c0_63 = arith.constant 0 : index
    %73 = vector.load %arg6[%c3_61, %c0_62, %c0_63] : memref<5x128x128xf32, #tpu.memory_space<vmem>>, vector<1x128x128xf32>
    %74 = vector.shape_cast %73 : vector<1x128x128xf32> to vector<128x128xf32>
    %cst_64 = arith.constant dense<0.000000e+00> : vector<28x128xf32>
    %75 = tpu.matmul %72, %74, %cst_64 {dimension_numbers = #tpu.dot_dimension_numbers<[1], [0], [0], [1], [0, 0, 1, 1], [], []>} : vector<28x128xf32>, vector<128x128xf32>, vector<28x128xf32> -> vector<28x128xf32>
    %76 = arith.addf %71, %75 : vector<28x128xf32>
    %c4_65 = arith.constant 4 : index
    %c0_66 = arith.constant 0 : index
    %77 = vector.load %arg20[%c4_65, %c0_66] : memref<32x128xf32, #tpu.memory_space<vmem>>, vector<28x128xf32>
    %c4_67 = arith.constant 4 : index
    %c0_68 = arith.constant 0 : index
    %c0_69 = arith.constant 0 : index
    %78 = vector.load %arg6[%c4_67, %c0_68, %c0_69] : memref<5x128x128xf32, #tpu.memory_space<vmem>>, vector<1x128x128xf32>
    %79 = vector.shape_cast %78 : vector<1x128x128xf32> to vector<128x128xf32>
    %cst_70 = arith.constant dense<0.000000e+00> : vector<28x128xf32>
    %80 = tpu.matmul %77, %79, %cst_70 {dimension_numbers = #tpu.dot_dimension_numbers<[1], [0], [0], [1], [0, 0, 1, 1], [], []>} : vector<28x128xf32>, vector<128x128xf32>, vector<28x128xf32> -> vector<28x128xf32>
    %81 = arith.addf %76, %80 : vector<28x128xf32>
    %c0_71 = arith.constant 0 : index
    %c0_72 = arith.constant 0 : index
    %82 = vector.load %arg7[%c0_71, %c0_72] : memref<1x128xf32, #tpu.memory_space<vmem>>, vector<1x128xf32>
    %83 = vector.broadcast %82 : vector<1x128xf32> to vector<28x128xf32>
    %84 = arith.mulf %81, %83 : vector<28x128xf32>
    %c0_73 = arith.constant 0 : index
    %c0_74 = arith.constant 0 : index
    %85 = vector.load %arg8[%c0_73, %c0_74] : memref<1x128xf32, #tpu.memory_space<vmem>>, vector<1x128xf32>
    %86 = vector.broadcast %85 : vector<1x128xf32> to vector<28x128xf32>
    %87 = arith.addf %84, %86 : vector<28x128xf32>
    %88 = math.tanh %87 : vector<28x128xf32>
    %c6_i32 = arith.constant 6 : i32
    %89 = arith.subi %1, %c6_i32 : i32
    %90 = tpu.iota {dimensions = array<i32: 0>} : vector<28x1xi32>
    %91 = vector.broadcast %89 : i32 to vector<28x1xi32>
    %92 = arith.addi %91, %90 : vector<28x1xi32>
    %c0_i32_75 = arith.constant 0 : i32
    %93 = vector.broadcast %c0_i32_75 : i32 to vector<28x1xi32>
    %94 = arith.cmpi sge, %92, %93 : vector<28x1xi32>
    %c16_i32_76 = arith.constant 16 : i32
    %95 = vector.broadcast %c16_i32_76 : i32 to vector<28x1xi32>
    %96 = arith.cmpi slt, %92, %95 : vector<28x1xi32>
    %97 = arith.andi %94, %96 : vector<28x1xi1>
    %cst_77 = arith.constant 0.000000e+00 : f32
    %98 = vector.shape_cast %97 : vector<28x1xi1> to vector<28x1xi1>
    %99 = vector.broadcast %98 : vector<28x1xi1> to vector<28x128xi1>
    %100 = vector.broadcast %cst_77 : f32 to vector<28x128xf32>
    %101 = arith.select %99, %88, %100 : vector<28x128xi1>, vector<28x128xf32>
    %c0_78 = arith.constant 0 : index
    %c0_79 = arith.constant 0 : index
    %102 = vector.load %arg21[%c0_78, %c0_79] : memref<32x128xf32, #tpu.memory_space<vmem>>, vector<28x128xf32>
    tpu.vector_store %arg21[%c0_78, %c0_79], %101 {strides = array<i32>} : memref<32x128xf32, #tpu.memory_space<vmem>>, vector<28x128xf32>,
    %cst_80 = arith.constant 0.000000e+00 : f32
    %103 = vector.broadcast %cst_80 : f32 to vector<24x128xf32>
    %c0_81 = arith.constant 0 : index
    %c0_82 = arith.constant 0 : index
    %104 = vector.load %arg21[%c0_81, %c0_82] : memref<32x128xf32, #tpu.memory_space<vmem>>, vector<24x128xf32>
    %c0_83 = arith.constant 0 : index
    %c0_84 = arith.constant 0 : index
    %c0_85 = arith.constant 0 : index
    %105 = vector.load %arg9[%c0_83, %c0_84, %c0_85] : memref<5x128x128xf32, #tpu.memory_space<vmem>>, vector<1x128x128xf32>
    %106 = vector.shape_cast %105 : vector<1x128x128xf32> to vector<128x128xf32>
    %cst_86 = arith.constant dense<0.000000e+00> : vector<24x128xf32>
    %107 = tpu.matmul %104, %106, %cst_86 {dimension_numbers = #tpu.dot_dimension_numbers<[1], [0], [0], [1], [0, 0, 1, 1], [], []>} : vector<24x128xf32>, vector<128x128xf32>, vector<24x128xf32> -> vector<24x128xf32>
    %108 = arith.addf %103, %107 : vector<24x128xf32>
    %c1_87 = arith.constant 1 : index
    %c0_88 = arith.constant 0 : index
    %109 = vector.load %arg21[%c1_87, %c0_88] : memref<32x128xf32, #tpu.memory_space<vmem>>, vector<24x128xf32>
    %c1_89 = arith.constant 1 : index
    %c0_90 = arith.constant 0 : index
    %c0_91 = arith.constant 0 : index
    %110 = vector.load %arg9[%c1_89, %c0_90, %c0_91] : memref<5x128x128xf32, #tpu.memory_space<vmem>>, vector<1x128x128xf32>
    %111 = vector.shape_cast %110 : vector<1x128x128xf32> to vector<128x128xf32>
    %cst_92 = arith.constant dense<0.000000e+00> : vector<24x128xf32>
    %112 = tpu.matmul %109, %111, %cst_92 {dimension_numbers = #tpu.dot_dimension_numbers<[1], [0], [0], [1], [0, 0, 1, 1], [], []>} : vector<24x128xf32>, vector<128x128xf32>, vector<24x128xf32> -> vector<24x128xf32>
    %113 = arith.addf %108, %112 : vector<24x128xf32>
    %c2_93 = arith.constant 2 : index
    %c0_94 = arith.constant 0 : index
    %114 = vector.load %arg21[%c2_93, %c0_94] : memref<32x128xf32, #tpu.memory_space<vmem>>, vector<24x128xf32>
    %c2_95 = arith.constant 2 : index
    %c0_96 = arith.constant 0 : index
    %c0_97 = arith.constant 0 : index
    %115 = vector.load %arg9[%c2_95, %c0_96, %c0_97] : memref<5x128x128xf32, #tpu.memory_space<vmem>>, vector<1x128x128xf32>
    %116 = vector.shape_cast %115 : vector<1x128x128xf32> to vector<128x128xf32>
    %cst_98 = arith.constant dense<0.000000e+00> : vector<24x128xf32>
    %117 = tpu.matmul %114, %116, %cst_98 {dimension_numbers = #tpu.dot_dimension_numbers<[1], [0], [0], [1], [0, 0, 1, 1], [], []>} : vector<24x128xf32>, vector<128x128xf32>, vector<24x128xf32> -> vector<24x128xf32>
    %118 = arith.addf %113, %117 : vector<24x128xf32>
    %c3_99 = arith.constant 3 : index
    %c0_100 = arith.constant 0 : index
    %119 = vector.load %arg21[%c3_99, %c0_100] : memref<32x128xf32, #tpu.memory_space<vmem>>, vector<24x128xf32>
    %c3_101 = arith.constant 3 : index
    %c0_102 = arith.constant 0 : index
    %c0_103 = arith.constant 0 : index
    %120 = vector.load %arg9[%c3_101, %c0_102, %c0_103] : memref<5x128x128xf32, #tpu.memory_space<vmem>>, vector<1x128x128xf32>
    %121 = vector.shape_cast %120 : vector<1x128x128xf32> to vector<128x128xf32>
    %cst_104 = arith.constant dense<0.000000e+00> : vector<24x128xf32>
    %122 = tpu.matmul %119, %121, %cst_104 {dimension_numbers = #tpu.dot_dimension_numbers<[1], [0], [0], [1], [0, 0, 1, 1], [], []>} : vector<24x128xf32>, vector<128x128xf32>, vector<24x128xf32> -> vector<24x128xf32>
    %123 = arith.addf %118, %122 : vector<24x128xf32>
    %c4_105 = arith.constant 4 : index
    %c0_106 = arith.constant 0 : index
    %124 = vector.load %arg21[%c4_105, %c0_106] : memref<32x128xf32, #tpu.memory_space<vmem>>, vector<24x128xf32>
    %c4_107 = arith.constant 4 : index
    %c0_108 = arith.constant 0 : index
    %c0_109 = arith.constant 0 : index
    %125 = vector.load %arg9[%c4_107, %c0_108, %c0_109] : memref<5x128x128xf32, #tpu.memory_space<vmem>>, vector<1x128x128xf32>
    %126 = vector.shape_cast %125 : vector<1x128x128xf32> to vector<128x128xf32>
    %cst_110 = arith.constant dense<0.000000e+00> : vector<24x128xf32>
    %127 = tpu.matmul %124, %126, %cst_110 {dimension_numbers = #tpu.dot_dimension_numbers<[1], [0], [0], [1], [0, 0, 1, 1], [], []>} : vector<24x128xf32>, vector<128x128xf32>, vector<24x128xf32> -> vector<24x128xf32>
    %128 = arith.addf %123, %127 : vector<24x128xf32>
    %c0_111 = arith.constant 0 : index
    %c0_112 = arith.constant 0 : index
    %129 = vector.load %arg10[%c0_111, %c0_112] : memref<1x128xf32, #tpu.memory_space<vmem>>, vector<1x128xf32>
    %130 = vector.broadcast %129 : vector<1x128xf32> to vector<24x128xf32>
    %131 = arith.mulf %128, %130 : vector<24x128xf32>
    %c0_113 = arith.constant 0 : index
    %c0_114 = arith.constant 0 : index
    %132 = vector.load %arg11[%c0_113, %c0_114] : memref<1x128xf32, #tpu.memory_space<vmem>>, vector<1x128xf32>
    %133 = vector.broadcast %132 : vector<1x128xf32> to vector<24x128xf32>
    %134 = arith.addf %131, %133 : vector<24x128xf32>
    %135 = math.tanh %134 : vector<24x128xf32>
    %c4_i32 = arith.constant 4 : i32
    %136 = arith.subi %1, %c4_i32 : i32
    %137 = tpu.iota {dimensions = array<i32: 0>} : vector<24x1xi32>
    %138 = vector.broadcast %136 : i32 to vector<24x1xi32>
    %139 = arith.addi %138, %137 : vector<24x1xi32>
    %c0_i32_115 = arith.constant 0 : i32
    %140 = vector.broadcast %c0_i32_115 : i32 to vector<24x1xi32>
    %141 = arith.cmpi sge, %139, %140 : vector<24x1xi32>
    %c16_i32_116 = arith.constant 16 : i32
    %142 = vector.broadcast %c16_i32_116 : i32 to vector<24x1xi32>
    %143 = arith.cmpi slt, %139, %142 : vector<24x1xi32>
    %144 = arith.andi %141, %143 : vector<24x1xi1>
    %cst_117 = arith.constant 0.000000e+00 : f32
    %145 = vector.shape_cast %144 : vector<24x1xi1> to vector<24x1xi1>
    %146 = vector.broadcast %145 : vector<24x1xi1> to vector<24x128xi1>
    %147 = vector.broadcast %cst_117 : f32 to vector<24x128xf32>
    %148 = arith.select %146, %135, %147 : vector<24x128xi1>, vector<24x128xf32>
    %c0_118 = arith.constant 0 : index
    %c0_119 = arith.constant 0 : index
    %149 = vector.load %arg20[%c0_118, %c0_119] : memref<32x128xf32, #tpu.memory_space<vmem>>, vector<24x128xf32>
    tpu.vector_store %arg20[%c0_118, %c0_119], %148 {strides = array<i32>} : memref<32x128xf32, #tpu.memory_space<vmem>>, vector<24x128xf32>,
    %cst_120 = arith.constant 0.000000e+00 : f32
    %150 = vector.broadcast %cst_120 : f32 to vector<20x128xf32>
    %c0_121 = arith.constant 0 : index
    %c0_122 = arith.constant 0 : index
    %151 = vector.load %arg20[%c0_121, %c0_122] : memref<32x128xf32, #tpu.memory_space<vmem>>, vector<20x128xf32>
    %c0_123 = arith.constant 0 : index
    %c0_124 = arith.constant 0 : index
    %c0_125 = arith.constant 0 : index
    %152 = vector.load %arg12[%c0_123, %c0_124, %c0_125] : memref<5x128x128xf32, #tpu.memory_space<vmem>>, vector<1x128x128xf32>
    %153 = vector.shape_cast %152 : vector<1x128x128xf32> to vector<128x128xf32>
    %cst_126 = arith.constant dense<0.000000e+00> : vector<20x128xf32>
    %154 = tpu.matmul %151, %153, %cst_126 {dimension_numbers = #tpu.dot_dimension_numbers<[1], [0], [0], [1], [0, 0, 1, 1], [], []>} : vector<20x128xf32>, vector<128x128xf32>, vector<20x128xf32> -> vector<20x128xf32>
    %155 = arith.addf %150, %154 : vector<20x128xf32>
    %c1_127 = arith.constant 1 : index
    %c0_128 = arith.constant 0 : index
    %156 = vector.load %arg20[%c1_127, %c0_128] : memref<32x128xf32, #tpu.memory_space<vmem>>, vector<20x128xf32>
    %c1_129 = arith.constant 1 : index
    %c0_130 = arith.constant 0 : index
    %c0_131 = arith.constant 0 : index
    %157 = vector.load %arg12[%c1_129, %c0_130, %c0_131] : memref<5x128x128xf32, #tpu.memory_space<vmem>>, vector<1x128x128xf32>
    %158 = vector.shape_cast %157 : vector<1x128x128xf32> to vector<128x128xf32>
    %cst_132 = arith.constant dense<0.000000e+00> : vector<20x128xf32>
    %159 = tpu.matmul %156, %158, %cst_132 {dimension_numbers = #tpu.dot_dimension_numbers<[1], [0], [0], [1], [0, 0, 1, 1], [], []>} : vector<20x128xf32>, vector<128x128xf32>, vector<20x128xf32> -> vector<20x128xf32>
    %160 = arith.addf %155, %159 : vector<20x128xf32>
    %c2_133 = arith.constant 2 : index
    %c0_134 = arith.constant 0 : index
    %161 = vector.load %arg20[%c2_133, %c0_134] : memref<32x128xf32, #tpu.memory_space<vmem>>, vector<20x128xf32>
    %c2_135 = arith.constant 2 : index
    %c0_136 = arith.constant 0 : index
    %c0_137 = arith.constant 0 : index
    %162 = vector.load %arg12[%c2_135, %c0_136, %c0_137] : memref<5x128x128xf32, #tpu.memory_space<vmem>>, vector<1x128x128xf32>
    %163 = vector.shape_cast %162 : vector<1x128x128xf32> to vector<128x128xf32>
    %cst_138 = arith.constant dense<0.000000e+00> : vector<20x128xf32>
    %164 = tpu.matmul %161, %163, %cst_138 {dimension_numbers = #tpu.dot_dimension_numbers<[1], [0], [0], [1], [0, 0, 1, 1], [], []>} : vector<20x128xf32>, vector<128x128xf32>, vector<20x128xf32> -> vector<20x128xf32>
    %165 = arith.addf %160, %164 : vector<20x128xf32>
    %c3_139 = arith.constant 3 : index
    %c0_140 = arith.constant 0 : index
    %166 = vector.load %arg20[%c3_139, %c0_140] : memref<32x128xf32, #tpu.memory_space<vmem>>, vector<20x128xf32>
    %c3_141 = arith.constant 3 : index
    %c0_142 = arith.constant 0 : index
    %c0_143 = arith.constant 0 : index
    %167 = vector.load %arg12[%c3_141, %c0_142, %c0_143] : memref<5x128x128xf32, #tpu.memory_space<vmem>>, vector<1x128x128xf32>
    %168 = vector.shape_cast %167 : vector<1x128x128xf32> to vector<128x128xf32>
    %cst_144 = arith.constant dense<0.000000e+00> : vector<20x128xf32>
    %169 = tpu.matmul %166, %168, %cst_144 {dimension_numbers = #tpu.dot_dimension_numbers<[1], [0], [0], [1], [0, 0, 1, 1], [], []>} : vector<20x128xf32>, vector<128x128xf32>, vector<20x128xf32> -> vector<20x128xf32>
    %170 = arith.addf %165, %169 : vector<20x128xf32>
    %c4_145 = arith.constant 4 : index
    %c0_146 = arith.constant 0 : index
    %171 = vector.load %arg20[%c4_145, %c0_146] : memref<32x128xf32, #tpu.memory_space<vmem>>, vector<20x128xf32>
    %c4_147 = arith.constant 4 : index
    %c0_148 = arith.constant 0 : index
    %c0_149 = arith.constant 0 : index
    %172 = vector.load %arg12[%c4_147, %c0_148, %c0_149] : memref<5x128x128xf32, #tpu.memory_space<vmem>>, vector<1x128x128xf32>
    %173 = vector.shape_cast %172 : vector<1x128x128xf32> to vector<128x128xf32>
    %cst_150 = arith.constant dense<0.000000e+00> : vector<20x128xf32>
    %174 = tpu.matmul %171, %173, %cst_150 {dimension_numbers = #tpu.dot_dimension_numbers<[1], [0], [0], [1], [0, 0, 1, 1], [], []>} : vector<20x128xf32>, vector<128x128xf32>, vector<20x128xf32> -> vector<20x128xf32>
    %175 = arith.addf %170, %174 : vector<20x128xf32>
    %c0_151 = arith.constant 0 : index
    %c0_152 = arith.constant 0 : index
    %176 = vector.load %arg13[%c0_151, %c0_152] : memref<1x128xf32, #tpu.memory_space<vmem>>, vector<1x128xf32>
    %177 = vector.broadcast %176 : vector<1x128xf32> to vector<20x128xf32>
    %178 = arith.mulf %175, %177 : vector<20x128xf32>
    %c0_153 = arith.constant 0 : index
    %c0_154 = arith.constant 0 : index
    %179 = vector.load %arg14[%c0_153, %c0_154] : memref<1x128xf32, #tpu.memory_space<vmem>>, vector<1x128xf32>
    %180 = vector.broadcast %179 : vector<1x128xf32> to vector<20x128xf32>
    %181 = arith.addf %178, %180 : vector<20x128xf32>
    %182 = math.tanh %181 : vector<20x128xf32>
    %c2_i32 = arith.constant 2 : i32
    %183 = arith.subi %1, %c2_i32 : i32
    %184 = tpu.iota {dimensions = array<i32: 0>} : vector<20x1xi32>
    %185 = vector.broadcast %183 : i32 to vector<20x1xi32>
    %186 = arith.addi %185, %184 : vector<20x1xi32>
    %c0_i32_155 = arith.constant 0 : i32
    %187 = vector.broadcast %c0_i32_155 : i32 to vector<20x1xi32>
    %188 = arith.cmpi sge, %186, %187 : vector<20x1xi32>
    %c16_i32_156 = arith.constant 16 : i32
    %189 = vector.broadcast %c16_i32_156 : i32 to vector<20x1xi32>
    %190 = arith.cmpi slt, %186, %189 : vector<20x1xi32>
    %191 = arith.andi %188, %190 : vector<20x1xi1>
    %cst_157 = arith.constant 0.000000e+00 : f32
    %192 = vector.shape_cast %191 : vector<20x1xi1> to vector<20x1xi1>
    %193 = vector.broadcast %192 : vector<20x1xi1> to vector<20x128xi1>
    %194 = vector.broadcast %cst_157 : f32 to vector<20x128xf32>
    %195 = arith.select %193, %182, %194 : vector<20x128xi1>, vector<20x128xf32>
    %c0_158 = arith.constant 0 : index
    %c0_159 = arith.constant 0 : index
    %196 = vector.load %arg21[%c0_158, %c0_159] : memref<32x128xf32, #tpu.memory_space<vmem>>, vector<20x128xf32>
    tpu.vector_store %arg21[%c0_158, %c0_159], %195 {strides = array<i32>} : memref<32x128xf32, #tpu.memory_space<vmem>>, vector<20x128xf32>,
    %cst_160 = arith.constant 0.000000e+00 : f32
    %197 = vector.broadcast %cst_160 : f32 to vector<16x128xf32>
    %c0_161 = arith.constant 0 : index
    %c0_162 = arith.constant 0 : index
    %198 = vector.load %arg21[%c0_161, %c0_162] : memref<32x128xf32, #tpu.memory_space<vmem>>, vector<16x128xf32>
    %c0_163 = arith.constant 0 : index
    %c0_164 = arith.constant 0 : index
    %c0_165 = arith.constant 0 : index
    %199 = vector.load %arg15[%c0_163, %c0_164, %c0_165] : memref<5x128x128xf32, #tpu.memory_space<vmem>>, vector<1x128x128xf32>
    %200 = vector.shape_cast %199 : vector<1x128x128xf32> to vector<128x128xf32>
    %cst_166 = arith.constant dense<0.000000e+00> : vector<16x128xf32>
    %201 = tpu.matmul %198, %200, %cst_166 {dimension_numbers = #tpu.dot_dimension_numbers<[1], [0], [0], [1], [0, 0, 1, 1], [], []>} : vector<16x128xf32>, vector<128x128xf32>, vector<16x128xf32> -> vector<16x128xf32>
    %202 = arith.addf %197, %201 : vector<16x128xf32>
    %c1_167 = arith.constant 1 : index
    %c0_168 = arith.constant 0 : index
    %203 = vector.load %arg21[%c1_167, %c0_168] : memref<32x128xf32, #tpu.memory_space<vmem>>, vector<16x128xf32>
    %c1_169 = arith.constant 1 : index
    %c0_170 = arith.constant 0 : index
    %c0_171 = arith.constant 0 : index
    %204 = vector.load %arg15[%c1_169, %c0_170, %c0_171] : memref<5x128x128xf32, #tpu.memory_space<vmem>>, vector<1x128x128xf32>
    %205 = vector.shape_cast %204 : vector<1x128x128xf32> to vector<128x128xf32>
    %cst_172 = arith.constant dense<0.000000e+00> : vector<16x128xf32>
    %206 = tpu.matmul %203, %205, %cst_172 {dimension_numbers = #tpu.dot_dimension_numbers<[1], [0], [0], [1], [0, 0, 1, 1], [], []>} : vector<16x128xf32>, vector<128x128xf32>, vector<16x128xf32> -> vector<16x128xf32>
    %207 = arith.addf %202, %206 : vector<16x128xf32>
    %c2_173 = arith.constant 2 : index
    %c0_174 = arith.constant 0 : index
    %208 = vector.load %arg21[%c2_173, %c0_174] : memref<32x128xf32, #tpu.memory_space<vmem>>, vector<16x128xf32>
    %c2_175 = arith.constant 2 : index
    %c0_176 = arith.constant 0 : index
    %c0_177 = arith.constant 0 : index
    %209 = vector.load %arg15[%c2_175, %c0_176, %c0_177] : memref<5x128x128xf32, #tpu.memory_space<vmem>>, vector<1x128x128xf32>
    %210 = vector.shape_cast %209 : vector<1x128x128xf32> to vector<128x128xf32>
    %cst_178 = arith.constant dense<0.000000e+00> : vector<16x128xf32>
    %211 = tpu.matmul %208, %210, %cst_178 {dimension_numbers = #tpu.dot_dimension_numbers<[1], [0], [0], [1], [0, 0, 1, 1], [], []>} : vector<16x128xf32>, vector<128x128xf32>, vector<16x128xf32> -> vector<16x128xf32>
    %212 = arith.addf %207, %211 : vector<16x128xf32>
    %c3_179 = arith.constant 3 : index
    %c0_180 = arith.constant 0 : index
    %213 = vector.load %arg21[%c3_179, %c0_180] : memref<32x128xf32, #tpu.memory_space<vmem>>, vector<16x128xf32>
    %c3_181 = arith.constant 3 : index
    %c0_182 = arith.constant 0 : index
    %c0_183 = arith.constant 0 : index
    %214 = vector.load %arg15[%c3_181, %c0_182, %c0_183] : memref<5x128x128xf32, #tpu.memory_space<vmem>>, vector<1x128x128xf32>
    %215 = vector.shape_cast %214 : vector<1x128x128xf32> to vector<128x128xf32>
    %cst_184 = arith.constant dense<0.000000e+00> : vector<16x128xf32>
    %216 = tpu.matmul %213, %215, %cst_184 {dimension_numbers = #tpu.dot_dimension_numbers<[1], [0], [0], [1], [0, 0, 1, 1], [], []>} : vector<16x128xf32>, vector<128x128xf32>, vector<16x128xf32> -> vector<16x128xf32>
    %217 = arith.addf %212, %216 : vector<16x128xf32>
    %c4_185 = arith.constant 4 : index
    %c0_186 = arith.constant 0 : index
    %218 = vector.load %arg21[%c4_185, %c0_186] : memref<32x128xf32, #tpu.memory_space<vmem>>, vector<16x128xf32>
    %c4_187 = arith.constant 4 : index
    %c0_188 = arith.constant 0 : index
    %c0_189 = arith.constant 0 : index
    %219 = vector.load %arg15[%c4_187, %c0_188, %c0_189] : memref<5x128x128xf32, #tpu.memory_space<vmem>>, vector<1x128x128xf32>
    %220 = vector.shape_cast %219 : vector<1x128x128xf32> to vector<128x128xf32>
    %cst_190 = arith.constant dense<0.000000e+00> : vector<16x128xf32>
    %221 = tpu.matmul %218, %220, %cst_190 {dimension_numbers = #tpu.dot_dimension_numbers<[1], [0], [0], [1], [0, 0, 1, 1], [], []>} : vector<16x128xf32>, vector<128x128xf32>, vector<16x128xf32> -> vector<16x128xf32>
    %222 = arith.addf %217, %221 : vector<16x128xf32>
    %c0_191 = arith.constant 0 : index
    %c0_192 = arith.constant 0 : index
    %223 = vector.load %arg16[%c0_191, %c0_192] : memref<1x128xf32, #tpu.memory_space<vmem>>, vector<1x128xf32>
    %224 = vector.broadcast %223 : vector<1x128xf32> to vector<16x128xf32>
    %225 = arith.mulf %222, %224 : vector<16x128xf32>
    %c0_193 = arith.constant 0 : index
    %c0_194 = arith.constant 0 : index
    %226 = vector.load %arg17[%c0_193, %c0_194] : memref<1x128xf32, #tpu.memory_space<vmem>>, vector<1x128xf32>
    %227 = vector.broadcast %226 : vector<1x128xf32> to vector<16x128xf32>
    %228 = arith.addf %225, %227 : vector<16x128xf32>
    %c0_195 = arith.constant 0 : index
    %c0_196 = arith.constant 0 : index
    %c0_197 = arith.constant 0 : index
    %229 = vector.load %arg18[%c0_195, %c0_196, %c0_197] : memref<1x16x128xf32, #tpu.memory_space<vmem>>, vector<1x16x128xf32>
    %230 = vector.shape_cast %229 : vector<1x16x128xf32> to vector<16x128xf32>
    %231 = vector.shape_cast %228 : vector<16x128xf32> to vector<1x16x128xf32>
    tpu.vector_store %arg18[%c0_195, %c0_196, %c0_197], %231 {strides = array<i32>} : memref<1x16x128xf32, #tpu.memory_space<vmem>>, vector<1x16x128xf32>,
    return
  }
  func.func @transform_1(%arg0: i32, %arg1: i32) -> (i32, i32, i32) {
    %c0_i32 = arith.constant 0 : i32
    %c0_i32_0 = arith.constant 0 : i32
    %c0_i32_1 = arith.constant 0 : i32
    %c0_i32_2 = arith.constant 0 : i32
    return %c0_i32, %c0_i32_0, %c0_i32_1 : i32, i32, i32
  }
  func.func @transform_2(%arg0: i32, %arg1: i32) -> (i32, i32) {
    %c0_i32 = arith.constant 0 : i32
    %c0_i32_0 = arith.constant 0 : i32
    %c0_i32_1 = arith.constant 0 : i32
    return %c0_i32, %c0_i32_0 : i32, i32
  }
  func.func @transform_3(%arg0: i32, %arg1: i32) -> (i32, i32) {
    %c0_i32 = arith.constant 0 : i32
    %c0_i32_0 = arith.constant 0 : i32
    %c0_i32_1 = arith.constant 0 : i32
    return %c0_i32, %c0_i32_0 : i32, i32
  }
  func.func @transform_4(%arg0: i32, %arg1: i32) -> (i32, i32, i32) {
    %c0_i32 = arith.constant 0 : i32
    %c0_i32_0 = arith.constant 0 : i32
    %c0_i32_1 = arith.constant 0 : i32
    %c0_i32_2 = arith.constant 0 : i32
    return %c0_i32, %c0_i32_0, %c0_i32_1 : i32, i32, i32
  }
  func.func @transform_5(%arg0: i32, %arg1: i32) -> (i32, i32) {
    %c0_i32 = arith.constant 0 : i32
    %c0_i32_0 = arith.constant 0 : i32
    %c0_i32_1 = arith.constant 0 : i32
    return %c0_i32, %c0_i32_0 : i32, i32
  }
  func.func @transform_6(%arg0: i32, %arg1: i32) -> (i32, i32) {
    %c0_i32 = arith.constant 0 : i32
    %c0_i32_0 = arith.constant 0 : i32
    %c0_i32_1 = arith.constant 0 : i32
    return %c0_i32, %c0_i32_0 : i32, i32
  }
  func.func @transform_7(%arg0: i32, %arg1: i32) -> (i32, i32, i32) {
    %c0_i32 = arith.constant 0 : i32
    %c0_i32_0 = arith.constant 0 : i32
    %c0_i32_1 = arith.constant 0 : i32
    %c0_i32_2 = arith.constant 0 : i32
    return %c0_i32, %c0_i32_0, %c0_i32_1 : i32, i32, i32
  }
  func.func @transform_8(%arg0: i32, %arg1: i32) -> (i32, i32) {
    %c0_i32 = arith.constant 0 : i32
    %c0_i32_0 = arith.constant 0 : i32
    %c0_i32_1 = arith.constant 0 : i32
    return %c0_i32, %c0_i32_0 : i32, i32
  }
  func.func @transform_9(%arg0: i32, %arg1: i32) -> (i32, i32) {
    %c0_i32 = arith.constant 0 : i32
    %c0_i32_0 = arith.constant 0 : i32
    %c0_i32_1 = arith.constant 0 : i32
    return %c0_i32, %c0_i32_0 : i32, i32
  }
  func.func @transform_10(%arg0: i32, %arg1: i32) -> (i32, i32, i32) {
    %c0_i32 = arith.constant 0 : i32
    %c0_i32_0 = arith.constant 0 : i32
    %c0_i32_1 = arith.constant 0 : i32
    %c0_i32_2 = arith.constant 0 : i32
    return %c0_i32, %c0_i32_0, %c0_i32_1 : i32, i32, i32
  }
  func.func @transform_11(%arg0: i32, %arg1: i32) -> (i32, i32) {
    %c0_i32 = arith.constant 0 : i32
    %c0_i32_0 = arith.constant 0 : i32
    %c0_i32_1 = arith.constant 0 : i32
    return %c0_i32, %c0_i32_0 : i32, i32
  }
  func.func @transform_12(%arg0: i32, %arg1: i32) -> (i32, i32) {
    %c0_i32 = arith.constant 0 : i32
    %c0_i32_0 = arith.constant 0 : i32
    %c0_i32_1 = arith.constant 0 : i32
    return %c0_i32, %c0_i32_0 : i32, i32
  }
  func.func @transform_13(%arg0: i32, %arg1: i32) -> (i32, i32, i32) {
    %c0_i32 = arith.constant 0 : i32
    %c0_i32_0 = arith.constant 0 : i32
    %c0_i32_1 = arith.constant 0 : i32
    %c0_i32_2 = arith.constant 0 : i32
    return %c0_i32, %c0_i32_0, %c0_i32_1 : i32, i32, i32
  }
  func.func @transform_14(%arg0: i32, %arg1: i32) -> (i32, i32) {
    %c0_i32 = arith.constant 0 : i32
    %c0_i32_0 = arith.constant 0 : i32
    %c0_i32_1 = arith.constant 0 : i32
    return %c0_i32, %c0_i32_0 : i32, i32
  }
  func.func @transform_15(%arg0: i32, %arg1: i32) -> (i32, i32) {
    %c0_i32 = arith.constant 0 : i32
    %c0_i32_0 = arith.constant 0 : i32
    %c0_i32_1 = arith.constant 0 : i32
    return %c0_i32, %c0_i32_0 : i32, i32
  }
  func.func @transform_16(%arg0: i32, %arg1: i32) -> (i32, i32, i32) {
    %c0_i32 = arith.constant 0 : i32
    %c0_i32_0 = arith.constant 0 : i32
    return %arg0, %arg1, %c0_i32 : i32, i32, i32
  }
}

</mosaic_0001>

<bundles_post_ra>
// kernel: tpu_custom_call.1
= control target key start
LH: loop header
LB: loop body
LE: loop exit
PB: predicated region body
PF: predicated region fallthrough
CT: control target
= control target key end

     0   :  { %s6862_s0 = inlined_call_operand.vmem [shape: f32[2,36,128], index: 0, kind: input, shape index: {}]   ;;  %s6863_s1 = inlined_call_operand.hbm [shape: f32[5,128,128], index: 1, kind: input, shape index: {}]   ;;  %s6864_s2 = inlined_call_operand.vmem [shape: f32[1,128], index: 2, kind: input, shape index: {}]   ;;  %s6865_s3 = inlined_call_operand.vmem [shape: f32[1,128], index: 3, kind: input, shape index: {}]   ;;  %s6866_s4 = inlined_call_operand.hbm [shape: f32[5,128,128], index: 4, kind: input, shape index: {}]   ;;  %s6867_s5 = inlined_call_operand.vmem [shape: f32[1,128], index: 5, kind: input, shape index: {}]   ;;  %s6868_s6 = inlined_call_operand.vmem [shape: f32[1,128], index: 6, kind: input, shape index: {}]   ;;  %s6869_s7 = inlined_call_operand.hbm [shape: f32[5,128,128], index: 7, kind: input, shape index: {}]   ;;  %s6870_s8 = inlined_call_operand.vmem [shape: f32[1,128], index: 8, kind: input, shape index: {}]   ;;  %s6871_s9 = inlined_call_operand.vmem [shape: f32[1,128], index: 9, kind: input, shape index: {}]   ;;  %s6872_s10 = inlined_call_operand.hbm [shape: f32[5,128,128], index: 10, kind: input, shape index: {}]   ;;  %s6873_s11 = inlined_call_operand.vmem [shape: f32[1,128], index: 11, kind: input, shape index: {}]   ;;  %s6874_s12 = inlined_call_operand.vmem [shape: f32[1,128], index: 12, kind: input, shape index: {}]   ;;  %s6875_s13 = inlined_call_operand.hbm [shape: f32[5,128,128], index: 13, kind: input, shape index: {}]   ;;  %s6876_s14 = inlined_call_operand.vmem [shape: f32[1,128], index: 14, kind: input, shape index: {}]   ;;  %s6877_s15 = inlined_call_operand.vmem [shape: f32[1,128], index: 15, kind: input, shape index: {}]   ;;  %s6878_s16 = inlined_call_operand.hbm [shape: f32[2,16,128], index: 16, kind: output, shape index: {}]  }
   0x1   :  { %6893 = sst [smem:[#allocation30_spill]] %s6862_s0 }
   0x2   :  { %6894 = sst [smem:[#allocation31_spill]] %s6866_s4 }
   0x3   :  { %6895 = sst [smem:[#allocation32_spill]] %s6873_s11 }
   0x4   :  { %6896 = sst [smem:[#allocation33_spill]] %s6874_s12 }
   0x5   :  { %6897 = sst [smem:[#allocation34_spill]] %s6876_s14 }
   0x6   :  { %6898 = sst [smem:[#allocation35_spill]] %s6877_s15 }
   0x7   :  { %6899 = sst [smem:[#allocation36_spill]] %s6878_s16 }
   0x8   :  { %21 = vsyncpa [#allocation7], 0 }
   0x9   :  { %22 = vsyncpa [#allocation10], 0 }
   0xa   :  { %23 = vsyncpa [#allocation13], 0 }
   0xb   :  { %24 = vsyncpa [#allocation8], 0 }
   0xc   :  { %26 = vsyncpa [#allocation8 + $0x1], 0  ;;  %s6353_s21 = smov 0   ;;  %s6355_s22 = smov 0  }
   0xd   :  { %s6357_s23 = smov 0   ;;  %s6359_s24 = smov 0  }
   0xe   :  { %s6361_s25 = smov 0   ;;  %s6363_s26 = smov 0  }
   0xf LB: > { %6900 = sst [smem:[#allocation22_spill]] %s6233_s21  ;;  %s3597_s27 = sadd.s32 4294967295, %s6253_s26   ;;  %s6253_s26 = sphi %s6363_s26, %s32_s26   ;;  %s6249_s25 = sphi %s6361_s25, %s6932_s25   ;;  %s6245_s24 = sphi %s6359_s24, %s6931_s24   ;;  %s6241_s23 = sphi %s6357_s23, %s6930_s23   ;;  %s6237_s22 = sphi %s6355_s22, %s6934_s22   ;;  %s6233_s21 = sphi %s6353_s21, %s6933_s21  }
  0x10   : > { %6901 = sst [smem:[#allocation23_spill]] %s6241_s23  ;;  %s3598_s28 = sadd.s32 4294967294, %s6253_s26  }
  0x11   : > { %6902 = sst [smem:[#allocation24_spill]] %s6249_s25  ;;  %s44_s29 = sadd.s32 1, %s6249_s25 }
  0x12   : > { %6903 = sst [smem:[#allocation25_spill]] %s6253_s26  ;;  %s368_s30 = sadd.s32 1, %s6241_s23 }
  0x13   : > { %p46_p0 = scmp.ge.s32.totalorder %s44_s29, 2  ;;  %p378_p1 = scmp.ne.s32.totalorder %s6241_s23, %s6237_s22 }
  0x14   : > { %p379_p2 = scmp.eq.s32.totalorder %s3597_s27, 1  ;;  %p384_p3 = scmp.ne.s32.totalorder %s6237_s22, %s6233_s21 }
  0x15   : > { %s6936_s29 = smov (%p46_p0, %s44_s29), 0  ;;  %p385_p5 = scmp.eq.s32.totalorder %s3598_s28, 1 }
  0x16   : > { %6904 = sst [smem:[#allocation26_spill]] %s6936_s29  ;;  %p6393_p4 = por %p379_p2, %p378_p1 }
  0x17   : > { %s363_s17 = ssub.s32 %s6249_s25, %s6936_s29  ;;  %p3599_p6 = scmp.ge.s32.totalorder %s6253_s26, 1 }
  0x18   : > { %s6905_s0 = scalar_select %p6393_p4, 1, 0 }
  0x19   : > { %p366_p7 = scmp.eq.s32.totalorder %s363_s17, 0  ;;  %p6400_p8 = por %p385_p5, %p384_p3 }
  0x1a   : > { %6906 = sst [smem:[#allocation27_spill]] %s6905_s0  ;;  %p392_p9 = scmp.lt.s32.totalorder %s6253_s26, 3 }
  0x1b   : > { %s6907_s18 = scalar_select %p6400_p8, 1, 0 }
  0x1c   : > { %s6406_s19 = scalar_select %p366_p7, %s6241_s23, %s368_s30  }
  0x1d   : > { %6908 = sst [smem:[#allocation28_spill]] %s6907_s18  ;;  %p6408_p10 = pnand %p3599_p6, %p392_p9 }
  0x1e   : > { %6909 = sst [smem:[#allocation29_spill]] %s6406_s19  ;;  %p6412_p11 = scmp.eq.s32.totalorder %s3597_s27, 0 }
  0x1f   : > { %s6910_s20 = scalar_select %p6408_p10, 1, 0 }
  0x20   : > { %s6911_s21 = scalar_select %p6412_p11, 1, 0 }
  0x21   : > { %p5903_p12 = pneg %p6408_p10  ;;  %s6255_s28 = smov [#allocation9]  }
  0x22   : > { %s423_s17 = sshll.u32 %s6255_s28, 4  ;;  %s6256_s30 = smov [#allocation12]   ;;  %s424_s17 = int_to_ptr.vmem [resolvable:$true] %s423_s17 }
  0x23   : > { %p6420_p13 = pnand %p6412_p11, %p5903_p12  ;;  %s461_s25 = sshll.u32 %s6256_s30, 4  ;;  %s6424_s25 = int_to_ptr.vmem [resolvable:$true] %s461_s25 }
  0x24   : > { %s6913_s4 = sld [smem:[#allocation31_spill]] }
  0x25   : > { %p6434_p1 = pneg %p6420_p13 }
  0x2a   : > { %s6021_s23 = scalar_lea.hbm %s6913_s4, 10240 }
  0x2b   : > { %p6022_p0 = scmp.ne.s32.totalorder %s6913_s4, %s6021_s23  ;;  %p6028_p5 = scmp.lt.u32.totalorder %s6021_s23, %s6913_s4 }
  0x2d   : > { %p6024_p2 = pnand %p6434_p1, %p6022_p0 }
  0x2f   : > { %p6025_p3 = pneg %p6024_p2 }
  0x31   : > { %p6030_p6 = pnand %p6028_p5, %p6025_p3 }
  0x33   : > { %6033 = shalt.err (!%p6030_p6)
}
  0x34   : > { %s6034_s19 = scalar_lea.vmem %s424_s17, 10240  ;;  %p6042_p8 = scmp.lt.s32.totalorder %s424_s17, %s424_s17 }
  0x35   : > { %p6035_p7 = scmp.ne.s32.totalorder %s424_s17, %s6034_s19  ;;  %p6043_p4 = scmp.lt.s32.totalorder %s6034_s19, %s6034_s19 }
  0x37   : > { %p6037_p9 = pnand %p6035_p7, %p6434_p1  ;;  %p6044_p11 = por %p6043_p4, %p6042_p8 }
  0x39   : > { %p6038_p12 = pneg %p6037_p9 }
  0x3b   : > { %p6045_p10 = pnand %p6044_p11, %p6038_p12 }
  0x3d   : > { %6048 = shalt.err (!%p6045_p10)
}
  0x3e   : > { %s6257_s26 = smov 128   ;;  %s6258_s18 = smov 8  }
  0x3f   : > { %5909 = dma.hbm_to_vmem [thread:$0]  (!%p6420_p13), %s6913_s4, 10240, %s424_s17, [#allocation10], %s6257_s26, %s6257_s26, %s6258_s18  }
  0x40   : > { %s6049_s0 = scalar_lea.hbm %s6872_s10, 10240 }
  0x41   : > { %p6050_p4 = scmp.ne.s32.totalorder %s6872_s10, %s6049_s0  ;;  %p6056_p11 = scmp.lt.u32.totalorder %s6049_s0, %s6872_s10 }
  0x43   : > { %p6052_p8 = pnand %p6050_p4, %p6434_p1 }
  0x45   : > { %p6053_p10 = pneg %p6052_p8 }
  0x47   : > { %p6058_p0 = pnand %p6056_p11, %p6053_p10 }
  0x49   : > { %6061 = shalt.err (!%p6058_p0)
}
  0x4a   : > { %s6062_s17 = scalar_lea.vmem %s6424_s25, 10240  ;;  %p6070_p6 = scmp.lt.s32.totalorder %s6424_s25, %s6424_s25 }
  0x4b   : > { %p6063_p2 = scmp.ne.s32.totalorder %s6424_s25, %s6062_s17  ;;  %p6071_p7 = scmp.lt.s32.totalorder %s6062_s17, %s6062_s17 }
  0x4d   : > { %p6065_p3 = pnand %p6063_p2, %p6434_p1  ;;  %p6072_p9 = por %p6071_p7, %p6070_p6 }
  0x4f   : > { %p6066_p5 = pneg %p6065_p3 }
  0x51   : > { %p6073_p12 = pnand %p6072_p9, %p6066_p5 }
  0x53   : > { %6076 = shalt.err (!%p6073_p12)
}
  0x54   : > { %5915 = dma.hbm_to_vmem [thread:$0]  (!%p6420_p13), %s6872_s10, 10240, %s6424_s25, [#allocation13], %s6257_s26, %s6257_s26, %s6258_s18  }
  0x55   : > { %s6259_s15 = smov [#allocation6]   ;;  %s6260_s16 = smov [#allocation11]  }
  0x56   : > { %s404_s0 = sshll.u32 %s6259_s15, 4  ;;  %s442_s23 = sshll.u32 %s6260_s16, 4  ;;  %s405_s0 = int_to_ptr.vmem [resolvable:$true] %s404_s0  ;;  %s443_s23 = int_to_ptr.vmem [resolvable:$true] %s442_s23 }
  0x57   : > { %s6077_s19 = scalar_lea.hbm %s6863_s1, 10240 }
  0x58   : > { %p6078_p4 = scmp.ne.s32.totalorder %s6863_s1, %s6077_s19  ;;  %p6084_p11 = scmp.lt.u32.totalorder %s6077_s19, %s6863_s1 }
  0x5a   : > { %p6080_p8 = pnand %p6078_p4, %p6434_p1 }
  0x5c   : > { %p6081_p10 = pneg %p6080_p8 }
  0x5e   : > { %p6086_p0 = pnand %p6084_p11, %p6081_p10 }
  0x60   : > { %6089 = shalt.err (!%p6086_p0)
}
  0x61   : > { %s6090_s25 = scalar_lea.vmem %s405_s0, 10240  ;;  %p6098_p6 = scmp.lt.s32.totalorder %s405_s0, %s405_s0 }
  0x62   : > { %p6091_p2 = scmp.ne.s32.totalorder %s405_s0, %s6090_s25  ;;  %p6099_p7 = scmp.lt.s32.totalorder %s6090_s25, %s6090_s25 }
  0x64   : > { %p6093_p3 = pnand %p6091_p2, %p6434_p1  ;;  %p6100_p9 = por %p6099_p7, %p6098_p6 }
  0x66   : > { %p6094_p5 = pneg %p6093_p3 }
  0x68   : > { %p6101_p12 = pnand %p6100_p9, %p6094_p5 }
  0x6a   : > { %6104 = shalt.err (!%p6101_p12)
}
  0x6b   : > { %5906 = dma.hbm_to_vmem [thread:$0]  (!%p6420_p13), %s6863_s1, 10240, %s405_s0, [#allocation7], %s6257_s26, %s6257_s26, %s6258_s18  }
  0x6c   : > { %s6105_s16 = scalar_lea.hbm %s6869_s7, 10240 }
  0x6d   : > { %p6106_p4 = scmp.ne.s32.totalorder %s6869_s7, %s6105_s16  ;;  %p6112_p11 = scmp.lt.u32.totalorder %s6105_s16, %s6869_s7 }
  0x6f   : > { %p6108_p8 = pnand %p6106_p4, %p6434_p1 }
  0x71   : > { %p6109_p10 = pneg %p6108_p8 }
  0x73   : > { %p6114_p0 = pnand %p6112_p11, %p6109_p10 }
  0x75   : > { %6117 = shalt.err (!%p6114_p0)
}
  0x76   : > { %s6118_s12 = scalar_lea.vmem %s443_s23, 10240  ;;  %p6126_p6 = scmp.lt.s32.totalorder %s443_s23, %s443_s23 }
  0x77   : > { %p6119_p2 = scmp.ne.s32.totalorder %s443_s23, %s6118_s12  ;;  %p6127_p7 = scmp.lt.s32.totalorder %s6118_s12, %s6118_s12 }
  0x79   : > { %p6121_p3 = pnand %p6119_p2, %p6434_p1  ;;  %p6128_p9 = por %p6127_p7, %p6126_p6 }
  0x7b   : > { %p6122_p5 = pneg %p6121_p3 }
  0x7d   : > { %p6129_p12 = pnand %p6128_p9, %p6122_p5 }
  0x7f   : > { %6132 = shalt.err (!%p6129_p12)
}
  0x80   : > { %5912 = dma.hbm_to_vmem [thread:$0]  (!%p6420_p13), %s6869_s7, 10240, %s443_s23, [#allocation10], %s6257_s26, %s6257_s26, %s6258_s18  }
  0x81   : > { %s6261_s4 = smov [#allocation14]   ;;  %s6133_s16 = scalar_lea.hbm %s6875_s13, 10240 }
  0x82   : > { %s480_s11 = sshll.u32 %s6261_s4, 4  ;;  %p6134_p4 = scmp.ne.s32.totalorder %s6875_s13, %s6133_s16  ;;  %s481_s11 = int_to_ptr.vmem [resolvable:$true] %s480_s11 }
  0x83   : > { %p6140_p11 = scmp.lt.u32.totalorder %s6133_s16, %s6875_s13 }
  0x84   : > { %p6136_p8 = pnand %p6134_p4, %p6434_p1 }
  0x86   : > { %p6137_p10 = pneg %p6136_p8 }
  0x88   : > { %p6142_p0 = pnand %p6140_p11, %p6137_p10 }
  0x8a   : > { %6145 = shalt.err (!%p6142_p0)
}
  0x8b   : > { %s6146_s23 = scalar_lea.vmem %s481_s11, 10240  ;;  %p6154_p6 = scmp.lt.s32.totalorder %s481_s11, %s481_s11 }
  0x8c   : > { %p6147_p2 = scmp.ne.s32.totalorder %s481_s11, %s6146_s23  ;;  %p6155_p7 = scmp.lt.s32.totalorder %s6146_s23, %s6146_s23 }
  0x8e   : > { %p6149_p3 = pnand %p6147_p2, %p6434_p1  ;;  %p6156_p9 = por %p6155_p7, %p6154_p6 }
  0x90   : > { %p6150_p5 = pneg %p6149_p3 }
  0x92   : > { %p6157_p12 = pnand %p6156_p9, %p6150_p5 }
  0x94   : > { %6160 = shalt.err (!%p6157_p12)
}
  0x95   : > { %5918 = dma.hbm_to_vmem [thread:$0]  (!%p6420_p13), %s6875_s13, 10240, %s481_s11, [#allocation13], %s6257_s26, %s6257_s26, %s6258_s18  }
  0x96   : > { %p6915_p4 = scmp.ne.s32.totalorder %s6910_s20, 0 }
  0x97   : > { %p6916_p1 = scmp.ne.s32.totalorder (!%p6915_p4), %s6911_s21, 0 }
  0x98   : > { %502 = sbr.rel (%p6915_p4) target bundleno = 1984 (0x7c0), region = 80 }
  0x9f   : > { %6214 = dma.done.wait (%p6916_p1), [#allocation7], 10240  }
  0xa0   : > { %6216 = vsyncadd (%p6916_p1), [#allocation7], 4294957056 }
  0xa1   : > { %6218 = dma.done.wait (%p6916_p1), [#allocation10], 20480  }
  0xa2   : > { %6220 = vsyncadd (%p6916_p1), [#allocation10], 4294946816 }
  0xa3   : > { %6222 = dma.done.wait (%p6916_p1), [#allocation13], 20480  }
  0xa4   : > { %6224 = vsyncadd (%p6916_p1), [#allocation13], 4294946816  ;;  %s558_s29 = sand.u32 1, %s6237_s22   ;;  %s563_s20 = smul.u32 40, %s6245_s24 }
  0xa5   : > { %s3611_s28 = sshll.u32 %s558_s29, 4  ;;  %s6917_s25 = sld [smem:[#allocation30_spill]] }
  0xa6   : > { %s6563_s21 = scalar_lea.vmem [#allocation15], %s3611_s28 }
  0xab   : > { %s565_s4 = scalar_lea.vmem %s6917_s25, %s563_s20 }
  0xac   : > { %v603_v0 = vld [vmem:[%s565_s4] sm:$0xff]  ;;  %v605_v1 = vld [vmem:[%s565_s4 + $0x8] sm:$0xff]  ;;  %v607_v2 = vld [vmem:[%s565_s4 + $0x10] sm:$0xff] }
  0xad   : > { %604 = vst [vmem:[#allocation2] sm:$0xff] %v603_v0  ;;  %606 = vst [vmem:[#allocation2 + $0x8] sm:$0xff] %v605_v1  ;;  %v609_v3 = vld [vmem:[%s565_s4 + $0x18] sm:$0xff]  ;;  %v3612_v4 = vld [vmem:[%s565_s4 + $0x20] sm:$0xf] }
  0xae   : > { %608 = vst [vmem:[#allocation2 + $0x10] sm:$0xff] %v607_v2  ;;  %610 = vst [vmem:[#allocation2 + $0x18] sm:$0xff] %v609_v3 }
  0xaf   : > { %621 = vst [vmem:[#allocation2 + $0x20] sm:$0xf] %v3612_v4 }
  0xb0   : > { %625 = vsyncadd [#allocation5], 576 }
  0xb1   : > { %6225 = dma.done.wait [#allocation5], 576 }
  0xb2   : > { %6226 = vsyncadd [#allocation5], 4294966720  ;;  %v655_v5 = vld [vmem:[#allocation6 + $0x80] sm:$0xff]  ;;  %v656_v6 = vld [vmem:[#allocation6 + $0x88] sm:$0xff]  ;;  %vm6264_vm0 = vmmov 0   ;;  %s6918_s18 = sld [smem:[#allocation32_spill]] }
  0xb3   : > { %v846_v7 = vld [vmem:[#allocation6 + $0x100] sm:$0xff]  ;;  %v5075_v8 = vpack.c.bf16 %v656_v6, %v655_v5  ;;  %v847_v9 = vld [vmem:[#allocation6 + $0x108] sm:$0xff]  ;;  %v657_v10 = vld [vmem:[#allocation6 + $0x90] sm:$0xff]  ;;  %s6919_s11 = sld [smem:[#allocation33_spill]]  ;;  %s6920_s16 = sld [smem:[#allocation34_spill]] }
  0xb4   : > { %v658_v11 = vld [vmem:[#allocation6 + $0x98] sm:$0xff]  ;;  %v5139_v12 = vpack.c.bf16 %v847_v9, %v846_v7  ;;  %v848_v14 = vld [vmem:[#allocation6 + $0x110] sm:$0xff]  ;;  %v659_v16 = vld [vmem:[#allocation6 + $0xa0] sm:$0xff]  ;;  %s6921_s19 = sld [smem:[#allocation35_spill]]  ;;  %s3629_s23 = sshll.u32 %s6245_s24, 8 }
  0xb5   : > { %v5079_v13 = vpack.c.bf16 %v658_v11, %v657_v10  ;;  %v849_v15 = vld [vmem:[#allocation6 + $0x118] sm:$0xff]  ;;  %5076 = vmatprep.subr.bf16.mxu1 %v5075_v8  ;;  %v660_v18 = vld [vmem:[#allocation6 + $0xa8] sm:$0xff]  ;;  %v850_v19 = vld [vmem:[#allocation6 + $0x120] sm:$0xff]  ;;  %s6922_s17 = sld [smem:[#allocation27_spill]]  ;;  %s3462_s12 = sshll.u32 %s6563_s21, 4  ;;  %s6810_s12 = int_to_ptr.vmem [resolvable:$true] %s3462_s12 }
  0xb6   : > { %v5143_v17 = vpack.c.bf16 %v849_v15, %v848_v14  ;;  %v851_v20 = vld [vmem:[#allocation6 + $0x128] sm:$0xff]  ;;  %5140 = vmatprep.subr.bf16.mxu0 %v5139_v12  ;;  %5078 = vmatpush3.bf16.msra.mxu1 %v5075_v8  ;;  %v5083_v21 = vpack.c.bf16 %v660_v18, %v659_v16  ;;  %v661_v23 = vld [vmem:[#allocation6 + $0xb0] sm:$0xff]  ;;  %v662_v24 = vld [vmem:[#allocation6 + $0xb8] sm:$0xff]  ;;  %s6923_s28 = sld [smem:[#allocation36_spill]]  ;;  %s6816_s24 = scalar_lea.sflag [#allocation8], %s558_s29 }
  0xb7   : > { %5142 = vmatpush3.bf16.msra.mxu0 %v5139_v12  ;;  %5080 = vmatprep.subr.bf16.mxu1 %v5079_v13  ;;  %v5147_v22 = vpack.c.bf16 %v851_v20, %v850_v19  ;;  %v852_v25 = vld [vmem:[#allocation6 + $0x130] sm:$0xff]  ;;  %v853_v26 = vld [vmem:[#allocation6 + $0x138] sm:$0xff]  ;;  %v5087_v27 = vpack.c.bf16 %v662_v24, %v661_v23  ;;  %v663_v29 = vld [vmem:[#allocation6 + $0xc0] sm:$0xff]  ;;  %s6265_s25 = smov [#allocation15]  }
  0xb8   : > { %5144 = vmatprep.subr.bf16.mxu0 %v5143_v17  ;;  %v5151_v28 = vpack.c.bf16 %v853_v26, %v852_v25  ;;  %v664_v30 = vld [vmem:[#allocation6 + $0xc8] sm:$0xff]  ;;  %v650_v31 = vld [vmem:[#allocation2 + $0x1] sm:$0xff]  ;;  %v665_v37 = vld [vmem:[#allocation6 + $0xd0] sm:$0xff]  ;;  %s6165_s4 = sshll.u32 %s6265_s25, 4  ;;  %s6166_s4 = int_to_ptr.vmem [resolvable:$false] %s6165_s4 }
  0xb9   : > { %v854_v32 = vld [vmem:[#allocation6 + $0x140] sm:$0xff]  ;;  %v855_v33 = vld [vmem:[#allocation6 + $0x148] sm:$0xff]  ;;  %4142 = vmatprep.mubr.f32.mxu1 %v650_v31  ;;  %v5091_v35 = vpack.c.bf16 %v664_v30, %v663_v29  ;;  %v666_v38 = vld [vmem:[#allocation6 + $0xd8] sm:$0xff]  ;;  %p6168_p0 = scmp.lt.s32.totalorder %s6810_s12, %s6166_s4 }
  0xba   : > { %5082 = vmatpush3.bf16.msra.mxu1 %v5079_v13  ;;  %v841_v34 = vld [vmem:[#allocation2 + $0x2] sm:$0xff]  ;;  %v5155_v36 = vpack.c.bf16 %v855_v33, %v854_v32  ;;  %v856_v39 = vld [vmem:[#allocation6 + $0x150] sm:$0xff]  ;;  %v5095_v41 = vpack.c.bf16 %v666_v38, %v665_v37  ;;  %v668_v44 = vld [vmem:[#allocation6 + $0xe8] sm:$0xff] }
  0xbb   : > { %5146 = vmatpush3.bf16.msra.mxu0 %v5143_v17  ;;  %5084 = vmatprep.subr.bf16.mxu1 %v5083_v21  ;;  %v857_v40 = vld [vmem:[#allocation6 + $0x158] sm:$0xff]  ;;  %v667_v43 = vld [vmem:[#allocation6 + $0xe0] sm:$0xff]  ;;  %v859_v46 = vld [vmem:[#allocation6 + $0x168] sm:$0xff]  ;;  %p6924_p8 = scmp.ne.s32.totalorder %s6922_s17, 0 }
  0xbc   : > { %5148 = vmatprep.subr.bf16.mxu0 %v5147_v22  ;;  %4218 = vmatprep.mubr.f32.mxu0 %v841_v34  ;;  %v5159_v42 = vpack.c.bf16 %v857_v40, %v856_v39  ;;  %v858_v45 = vld [vmem:[#allocation6 + $0x160] sm:$0xff]  ;;  %v5099_v47 = vpack.c.bf16 %v668_v44, %v667_v43  ;;  %v669_v49 = vld [vmem:[#allocation6 + $0xf0] sm:$0xff]  ;;  %v670_v50 = vld [vmem:[#allocation6 + $0xf8] sm:$0xff]  ;;  %s6808_s26 = scalar_lea.hbm %s6923_s28, %s3629_s23 }
  0xbd   : > { %v5163_v48 = vpack.c.bf16 %v859_v46, %v858_v45  ;;  %v860_v51 = vld [vmem:[#allocation6 + $0x170] sm:$0xff]  ;;  %v861_v52 = vld [vmem:[#allocation6 + $0x178] sm:$0xff]  ;;  %v5103_v53 = vpack.c.bf16 %v670_v50, %v669_v49  ;;  %v634_v55 = vld [vmem:[#allocation6] sm:$0xff] }
  0xbe   : > { %5086 = vmatpush3.bf16.msra.mxu1 %v5083_v21  ;;  %v5167_v54 = vpack.c.bf16 %v861_v52, %v860_v51  ;;  %v635_v56 = vld [vmem:[#allocation6 + $0x8] sm:$0xff]  ;;  %v956_v57 = vld [vmem:[#allocation6 + $0x180] sm:$0xff]  ;;  %v636_v61 = vld [vmem:[#allocation6 + $0x10] sm:$0xff] }
  0xbf   : > { %5150 = vmatpush3.bf16.msra.mxu0 %v5147_v22  ;;  %5088 = vmatprep.subr.bf16.mxu1 %v5087_v27  ;;  %v957_v58 = vld [vmem:[#allocation6 + $0x188] sm:$0xff]  ;;  %v5107_v59 = vpack.c.bf16 %v635_v56, %v634_v55  ;;  %v637_v62 = vld [vmem:[#allocation6 + $0x18] sm:$0xff]  ;;  %v958_v63 = vld [vmem:[#allocation6 + $0x190] sm:$0xff] }
  0xc0   : > { %5152 = vmatprep.subr.bf16.mxu0 %v5151_v28  ;;  %v5171_v60 = vpack.c.bf16 %v957_v58, %v956_v57  ;;  %v959_v0 = vld [vmem:[#allocation6 + $0x198] sm:$0xff]  ;;  %v651_v1 = vld [vmem:[#allocation2 + $0x9] sm:$0xff]  ;;  %v5111_v3 = vpack.c.bf16 %v637_v62, %v636_v61  ;;  %v652_v9 = vld [vmem:[#allocation2 + $0x11] sm:$0xff] }
  0xc1   : > { %v842_v2 = vld [vmem:[#allocation2 + $0xa] sm:$0xff]  ;;  %v5175_v4 = vpack.c.bf16 %v959_v0, %v958_v63  ;;  %v653_v10 = vld [vmem:[#allocation2 + $0x19] sm:$0xff] }
  0xc2   : > { %5090 = vmatpush3.bf16.msra.mxu1 %v5087_v27  ;;  %v638_v5 = vld [vmem:[#allocation6 + $0x20] sm:$0xff]  ;;  %v639_v6 = vld [vmem:[#allocation6 + $0x28] sm:$0xff]  ;;  %v844_v13 = vld [vmem:[#allocation2 + $0x1a] sm:$0xff] }
  0xc3   : > { %5154 = vmatpush3.bf16.msra.mxu0 %v5151_v28  ;;  %5092 = vmatprep.subr.bf16.mxu1 %v5091_v35  ;;  %v960_v7 = vld [vmem:[#allocation6 + $0x1a0] sm:$0xff]  ;;  %v961_v8 = vld [vmem:[#allocation6 + $0x1a8] sm:$0xff]  ;;  %v5115_v12 = vpack.c.bf16 %v639_v6, %v638_v5  ;;  %v640_v15 = vld [vmem:[#allocation6 + $0x30] sm:$0xff] }
  0xc4   : > { %5156 = vmatprep.subr.bf16.mxu0 %v5155_v36  ;;  %v843_v11 = vld [vmem:[#allocation2 + $0x12] sm:$0xff]  ;;  %v5179_v14 = vpack.c.bf16 %v961_v8, %v960_v7  ;;  %v641_v16 = vld [vmem:[#allocation6 + $0x38] sm:$0xff]  ;;  %v642_v23 = vld [vmem:[#allocation6 + $0x40] sm:$0xff] }
  0xc5   : > { %v962_v17 = vld [vmem:[#allocation6 + $0x1b0] sm:$0xff]  ;;  %v963_v18 = vld [vmem:[#allocation6 + $0x1b8] sm:$0xff]  ;;  %v5119_v21 = vpack.c.bf16 %v641_v16, %v640_v15  ;;  %v643_v24 = vld [vmem:[#allocation6 + $0x48] sm:$0xff] }
  0xc6   : > { %5094 = vmatpush3.bf16.msra.mxu1 %v5091_v35  ;;  %v630_v19 = vld [vmem:[#allocation2] sm:$0xff]  ;;  %v5183_v22 = vpack.c.bf16 %v963_v18, %v962_v17  ;;  %v964_v25 = vld [vmem:[#allocation6 + $0x1c0] sm:$0xff]  ;;  %v965_v26 = vld [vmem:[#allocation6 + $0x1c8] sm:$0xff]  ;;  %v5123_v27 = vpack.c.bf16 %v643_v24, %v642_v23 }
  0xc7   : > { %5158 = vmatpush3.bf16.msra.mxu0 %v5155_v36  ;;  %5096 = vmatprep.subr.bf16.mxu1 %v5095_v41  ;;  %v951_v20 = vld [vmem:[#allocation2 + $0x3] sm:$0xff]  ;;  %v5187_v28 = vpack.c.bf16 %v965_v26, %v964_v25  ;;  %v644_v29 = vld [vmem:[#allocation6 + $0x50] sm:$0xff]  ;;  %v647_v36 = vld [vmem:[#allocation6 + $0x68] sm:$0xff] }
  0xc8   : > { %5160 = vmatprep.subr.bf16.mxu0 %v5159_v42  ;;  %v645_v30 = vld [vmem:[#allocation6 + $0x58] sm:$0xff]  ;;  %v966_v31 = vld [vmem:[#allocation6 + $0x1d0] sm:$0xff]  ;;  %v646_v35 = vld [vmem:[#allocation6 + $0x60] sm:$0xff] }
  0xc9   : > { %v967_v32 = vld [vmem:[#allocation6 + $0x1d8] sm:$0xff]  ;;  %v5127_v33 = vpack.c.bf16 %v645_v30, %v644_v29  ;;  %v968_v37 = vld [vmem:[#allocation6 + $0x1e0] sm:$0xff]  ;;  %v969_v38 = vld [vmem:[#allocation6 + $0x1e8] sm:$0xff]  ;;  %v5131_v39 = vpack.c.bf16 %v647_v36, %v646_v35  ;;  %v6262_v35 = vmov 0.0  }
  0xca   : > { %5098 = vmatpush3.bf16.msra.mxu1 %v5095_v41  ;;  %v5191_v34 = vpack.c.bf16 %v967_v32, %v966_v31  ;;  %v5195_v40 = vpack.c.bf16 %v969_v38, %v968_v37  ;;  %v648_v41 = vld [vmem:[#allocation6 + $0x70] sm:$0xff]  ;;  %v971_v44 = vld [vmem:[#allocation6 + $0x1f8] sm:$0xff]  ;;  %v631_v52 = vld [vmem:[#allocation2 + $0x8] sm:$0xff]  ;;  %1232 = vst [vmem:[#allocation3] sm:$0xff] %v6262_v35 }
  0xcb   : > { %5162 = vmatpush3.bf16.msra.mxu0 %v5159_v42  ;;  %5100 = vmatprep.subr.bf16.mxu1 %v5099_v47  ;;  %v649_v42 = vld [vmem:[#allocation6 + $0x78] sm:$0xff]  ;;  %v970_v43 = vld [vmem:[#allocation6 + $0x1f0] sm:$0xff]  ;;  %v1070_v57 = vld [vmem:[#allocation6 + $0x220] sm:$0xff]  ;;  %1235 = vst [vmem:[#allocation3 + $0x18] sm:$0xff] %v6262_v35 }
  0xcc   : > { %5164 = vmatprep.subr.bf16.mxu0 %v5163_v48  ;;  %v5135_v45 = vpack.c.bf16 %v649_v42, %v648_v41  ;;  %v5199_v46 = vpack.c.bf16 %v971_v44, %v970_v43  ;;  %v1068_v50 = vld [vmem:[#allocation6 + $0x210] sm:$0xff]  ;;  %v1069_v51 = vld [vmem:[#allocation6 + $0x218] sm:$0xff]  ;;  %v1071_v58 = vld [vmem:[#allocation6 + $0x228] sm:$0xff]  ;;  %1836 = vst [vmem:[#allocation4 + $0x18] sm:$0xf] %v6262_v35 }
  0xcd   : > { %v5207_v55 = vpack.c.bf16 %v1069_v51, %v1068_v50  ;;  %v953_v56 = vld [vmem:[#allocation2 + $0x13] sm:$0xff]  ;;  %v5211_v61 = vpack.c.bf16 %v1071_v58, %v1070_v57  ;;  %v1061_v62 = vld [vmem:[#allocation2 + $0x4] sm:$0xff]  ;;  %v1064_v16 = vld [vmem:[#allocation2 + $0x1c] sm:$0xff] }
  0xce   : > { %5102 = vmatpush3.bf16.msra.mxu1 %v5099_v47  ;;  %v1066_v47 = vld [vmem:[#allocation6 + $0x200] sm:$0xff]  ;;  %v1072_v63 = vld [vmem:[#allocation6 + $0x230] sm:$0xff]  ;;  %v1073_v0 = vld [vmem:[#allocation6 + $0x238] sm:$0xff] }
  0xcf   : > { %5166 = vmatpush3.bf16.msra.mxu0 %v5163_v48  ;;  %5104 = vmatprep.subr.bf16.mxu1 %v5103_v53  ;;  %v1067_v48 = vld [vmem:[#allocation6 + $0x208] sm:$0xff]  ;;  %v1076_v5 = vld [vmem:[#allocation6 + $0x250] sm:$0xff]  ;;  %v1077_v6 = vld [vmem:[#allocation6 + $0x258] sm:$0xff] }
  0xd0   : > { %5168 = vmatprep.subr.bf16.mxu0 %v5167_v54  ;;  %v5203_v49 = vpack.c.bf16 %v1067_v48, %v1066_v47  ;;  %v5223_v7 = vpack.c.bf16 %v1077_v6, %v1076_v5  ;;  %v1078_v8 = vld [vmem:[#allocation6 + $0x260] sm:$0xff]  ;;  %v1063_v15 = vld [vmem:[#allocation2 + $0x14] sm:$0xff]  ;;  %v3613_v50 = vld [vmem:[%s6864_s2] ss:$0 sm:$0xff] }
  0xd1   : > { %v1261_v17 = vld [vmem:[#allocation9 + $0x80] sm:$0xff]  ;;  %v1262_v18 = vld [vmem:[#allocation9 + $0x88] sm:$0xff]  ;;  %v1267_v26 = vld [vmem:[#allocation9 + $0xb0] sm:$0xff] }
  0xd2   : > { %5106 = vmatpush3.bf16.msra.mxu1 %v5103_v53  ;;  %v952_v53 = vld [vmem:[#allocation2 + $0xb] sm:$0xff]  ;;  %v1271_v32 = vld [vmem:[#allocation9 + $0xd0] sm:$0xff] }
  0xd3   : > { %5170 = vmatpush3.bf16.msra.mxu0 %v5167_v54  ;;  %5108 = vmatprep.subr.bf16.mxu1 %v5107_v59  ;;  %v632_v54 = vld [vmem:[#allocation2 + $0x10] sm:$0xff]  ;;  %v1265_v23 = vld [vmem:[#allocation9 + $0xa0] sm:$0xff] }
  0xd4   : > { %5172 = vmatprep.subr.bf16.mxu0 %v5171_v60  ;;  %v1266_v24 = vld [vmem:[#allocation9 + $0xa8] sm:$0xff]  ;;  %v1269_v29 = vld [vmem:[#allocation9 + $0xc0] sm:$0xff] }
  0xd5   : > { %4143 = vmatmul.mubr.f32.vlgmr.msra.gmra.mrb[0].mxu1 %v651_v1  ;;  %v5215_v1 = vpack.c.bf16 %v1073_v0, %v1072_v63  ;;  %v5243_v25 = vpack.c.bf16 %v1266_v24, %v1265_v23  ;;  %v1270_v30 = vld [vmem:[#allocation9 + $0xc8] sm:$0xff]  ;;  %v1273_v36 = vld [vmem:[#allocation9 + $0xe0] sm:$0xff]  ;;  %v1242_v0 = vld [vmem:[#allocation9 + $0x10] sm:$0xff] }
  0xd6   : > { %5110 = vmatpush3.bf16.msra.mxu1 %v5107_v59  ;;  %4219 = vmatmul.mubr.f32.vlgmr.msra.gmra.mrb[0].mxu0 %v842_v2  ;;  %v633_v59 = vld [vmem:[#allocation2 + $0x18] sm:$0xff]  ;;  %v1074_v2 = vld [vmem:[#allocation6 + $0x240] sm:$0xff]  ;;  %v5251_v31 = vpack.c.bf16 %v1270_v30, %v1269_v29  ;;  %v1274_v37 = vld [vmem:[#allocation9 + $0xe8] sm:$0xff] }
  0xd7   : > { %5174 = vmatpush3.bf16.msra.mxu0 %v5171_v60  ;;  %5112 = vmatprep.subr.bf16.mxu1 %v5111_v3  ;;  %v954_v60 = vld [vmem:[#allocation2 + $0x1b] sm:$0xff]  ;;  %v5259_v38 = vpack.c.bf16 %v1274_v37, %v1273_v36  ;;  %v1240_v42 = vld [vmem:[#allocation9] sm:$0xff]  ;;  %v1241_v43 = vld [vmem:[#allocation9 + $0x8] sm:$0xff] }
  0xd8   : > { %5176 = vmatprep.subr.bf16.mxu0 %v5175_v4  ;;  %4145 = vmatprep.mubr.f32.mxu1 %v652_v9  ;;  %v1079_v9 = vld [vmem:[#allocation6 + $0x268] sm:$0xff]  ;;  %v5267_v44 = vpack.c.bf16 %v1241_v43, %v1240_v42  ;;  %v1251_v23 = vld [vmem:[#allocation9 + $0x58] sm:$0xff]  ;;  %v1458_v42 = vld [vmem:[#allocation9 + $0x130] sm:$0xff] }
  0xd9   : > { %4146 = vmatmul.mubr.f32.gmra.mrb[2].mxu1 %v653_v10  ;;  %4221 = vmatprep.mubr.f32.mxu0 %v843_v11  ;;  %v5227_v10 = vpack.c.bf16 %v1079_v9, %v1078_v8  ;;  %v1080_v11 = vld [vmem:[#allocation6 + $0x270] sm:$0xff]  ;;  %v1245_v6 = vld [vmem:[#allocation9 + $0x28] sm:$0xff]  ;;  %v1255_v29 = vld [vmem:[#allocation9 + $0x78] sm:$0xff] }
  0xda   : > { %5114 = vmatpush3.bf16.msra.mxu1 %v5111_v3  ;;  %4222 = vmatmul.mubr.f32.gmra.mrb[2].mxu0 %v844_v13  ;;  %v1075_v3 = vld [vmem:[#allocation6 + $0x248] sm:$0xff]  ;;  %v1246_v9 = vld [vmem:[#allocation9 + $0x30] sm:$0xff]  ;;  %v1455_v36 = vld [vmem:[#allocation9 + $0x118] sm:$0xff] }
  0xdb   : > { %5178 = vmatpush3.bf16.msra.mxu0 %v5175_v4  ;;  %5116 = vmatprep.subr.bf16.mxu1 %v5115_v12  ;;  %v5219_v4 = vpack.c.bf16 %v1075_v3, %v1074_v2  ;;  %v1244_v3 = vld [vmem:[#allocation9 + $0x20] sm:$0xff]  ;;  %v1459_v43 = vld [vmem:[#allocation9 + $0x138] sm:$0xff] }
  0xdc   : > { %5180 = vmatprep.subr.bf16.mxu0 %v5179_v14  ;;  %4180 = vmatprep.mubr.f32.mxu1 %v630_v19  ;;  %v5235_v19 = vpack.c.bf16 %v1262_v18, %v1261_v17  ;;  %v5275_v8 = vpack.c.bf16 %v1245_v6, %v1244_v3  ;;  %v6263_v17 = vmov 0.0|0.0   ;;  %v1248_v18 = vld [vmem:[#allocation9 + $0x40] sm:$0xff]  ;;  %v1568_v6 = vld [vmem:[#allocation9 + $0x1b0] sm:$0xff] }
  0xdd   : > { %4256 = vmatprep.mubr.f32.mxu0 %v951_v20  ;;  %v1263_v20 = vld [vmem:[#allocation9 + $0x90] sm:$0xff] }
  0xde   : > { %5118 = vmatpush3.bf16.msra.mxu1 %v5115_v12  ;;  %v1081_v12 = vld [vmem:[#allocation6 + $0x278] sm:$0xff] }
  0xdf   : > { %5182 = vmatpush3.bf16.msra.mxu0 %v5179_v14  ;;  %5120 = vmatprep.subr.bf16.mxu1 %v5119_v21  ;;  %v5231_v13 = vpack.c.bf16 %v1081_v12, %v1080_v11  ;;  %v1062_v14 = vld [vmem:[#allocation2 + $0xc] sm:$0xff] }
  0xe0   : > { %5184 = vmatprep.subr.bf16.mxu0 %v5183_v22  ;;  %v1860_v11 = vld [vmem:[#allocation11 + $0x80] sm:$0xff]  ;;  %v1861_v12 = vld [vmem:[#allocation11 + $0x88] sm:$0xff] }
  0xe2   : > { %5122 = vmatpush3.bf16.msra.mxu1 %v5119_v21  ;;  %v1264_v21 = vld [vmem:[#allocation9 + $0x98] sm:$0xff] }
  0xe3   : > { %5186 = vmatpush3.bf16.msra.mxu0 %v5183_v22  ;;  %5124 = vmatprep.subr.bf16.mxu1 %v5123_v27  ;;  %v5239_v22 = vpack.c.bf16 %v1264_v21, %v1263_v20 }
  0xe4   : > { %5188 = vmatprep.subr.bf16.mxu0 %v5187_v28 }
  0xe6   : > { %5126 = vmatpush3.bf16.msra.mxu1 %v5123_v27  ;;  %v1268_v27 = vld [vmem:[#allocation9 + $0xb8] sm:$0xff] }
  0xe7   : > { %5190 = vmatpush3.bf16.msra.mxu0 %v5187_v28  ;;  %5128 = vmatprep.subr.bf16.mxu1 %v5127_v33  ;;  %v5247_v28 = vpack.c.bf16 %v1268_v27, %v1267_v26  ;;  %v1253_v26 = vld [vmem:[#allocation9 + $0x68] sm:$0xff] }
  0xe8   : > { %5192 = vmatprep.subr.bf16.mxu0 %v5191_v34 }
  0xea   : > { %5130 = vmatpush3.bf16.msra.mxu1 %v5127_v33  ;;  %v1272_v33 = vld [vmem:[#allocation9 + $0xd8] sm:$0xff] }
  0xeb   : > { %5194 = vmatpush3.bf16.msra.mxu0 %v5191_v34  ;;  %5132 = vmatprep.subr.bf16.mxu1 %v5131_v39  ;;  %v5255_v34 = vpack.c.bf16 %v1272_v33, %v1271_v32  ;;  %v1453_v32 = vld [vmem:[#allocation9 + $0x108] sm:$0xff] }
  0xec   : > { %5196 = vmatprep.subr.bf16.mxu0 %v5195_v40 }
  0xee   : > { %5134 = vmatpush3.bf16.msra.mxu1 %v5131_v39  ;;  %v1275_v39 = vld [vmem:[#allocation9 + $0xf0] sm:$0xff] }
  0xef   : > { %5198 = vmatpush3.bf16.msra.mxu0 %v5195_v40  ;;  %5136 = vmatprep.subr.bf16.mxu1 %v5135_v45  ;;  %v1276_v40 = vld [vmem:[#allocation9 + $0xf8] sm:$0xff] }
  0xf0   : > { %5200 = vmatprep.subr.bf16.mxu0 %v5199_v46  ;;  %v5263_v41 = vpack.c.bf16 %v1276_v40, %v1275_v39  ;;  %v1457_v39 = vld [vmem:[#allocation9 + $0x128] sm:$0xff]  ;;  %v1239_v40 = vld [vmem:[#allocation3 + $0x18] sm:$0xf] }
  0xf2   : > { %5138 = vmatpush3.bf16.msra.mxu1 %v5135_v45 }
  0xf3   : > { %5202 = vmatpush3.bf16.msra.mxu0 %v5199_v46  ;;  %5236 = vmatprep.subr.bf16.mxu1 %v5235_v19 }
  0xf4   : > { %5204 = vmatprep.subr.bf16.mxu0 %v5203_v49 }
  0xf5   : > { %4181 = vmatmul.mubr.f32.vlgmr.msra.gmra.mrb[0].mxu1 %v631_v52 }
  0xf6   : > { %4257 = vmatmul.mubr.f32.vlgmr.msra.gmra.mrb[0].mxu0 %v952_v53  ;;  %4183 = vmatprep.mubr.f32.mxu1 %v632_v54  ;;  %v3614_v53 = vld [vmem:[%s6865_s3] ss:$0 sm:$0xff] }
  0xf7   : > { %5206 = vmatpush3.bf16.msra.mxu0 %v5203_v49  ;;  %4259 = vmatprep.mubr.f32.mxu0 %v953_v56 }
  0xf8   : > { %5208 = vmatprep.subr.bf16.mxu0 %v5207_v55  ;;  %5238 = vmatpush3.bf16.msra.mxu1 %v5235_v19  ;;  %v1249_v19 = vld [vmem:[#allocation9 + $0x48] sm:$0xff] }
  0xf9   : > { %4184 = vmatmul.mubr.f32.gmra.mrb[2].mxu1 %v633_v59  ;;  %5240 = vmatprep.subr.bf16.mxu1 %v5239_v22  ;;  %v5283_v21 = vpack.c.bf16 %v1249_v19, %v1248_v18  ;;  %v1575_v18 = vld [vmem:[#allocation9 + $0x1e8] sm:$0xff] }
  0xfa   : > { %4260 = vmatmul.mubr.f32.gmra.mrb[2].mxu0 %v954_v60 }
  0xfb   : > { %5210 = vmatpush3.bf16.msra.mxu0 %v5207_v55  ;;  %4294 = vmatprep.mubr.f32.mxu0 %v1061_v62 }
  0xfc   : > { %5212 = vmatprep.subr.bf16.mxu0 %v5211_v61  ;;  %5242 = vmatpush3.bf16.msra.mxu1 %v5239_v22  ;;  %v1250_v22 = vld [vmem:[#allocation9 + $0x50] sm:$0xff] }
  0xfd   : > { %5244 = vmatprep.subr.bf16.mxu1 %v5243_v25  ;;  %v5287_v24 = vpack.c.bf16 %v1251_v23, %v1250_v22  ;;  %v1672_v23 = vld [vmem:[#allocation9 + $0x200] sm:$0xff] }
  0xff   : > { %5214 = vmatpush3.bf16.msra.mxu0 %v5211_v61 }
 0x100   : > { %5216 = vmatprep.subr.bf16.mxu0 %v5215_v1  ;;  %5246 = vmatpush3.bf16.msra.mxu1 %v5243_v25  ;;  %v1252_v25 = vld [vmem:[#allocation9 + $0x60] sm:$0xff] }
 0x101   : > { %5248 = vmatprep.subr.bf16.mxu1 %v5247_v28  ;;  %v5291_v27 = vpack.c.bf16 %v1253_v26, %v1252_v25  ;;  %v1674_v26 = vld [vmem:[#allocation9 + $0x210] sm:$0xff] }
 0x103   : > { %5218 = vmatpush3.bf16.msra.mxu0 %v5215_v1  ;;  %v1243_v1 = vld [vmem:[#allocation9 + $0x18] sm:$0xff] }
 0x104   : > { %5220 = vmatprep.subr.bf16.mxu0 %v5219_v4  ;;  %5250 = vmatpush3.bf16.msra.mxu1 %v5247_v28  ;;  %v5271_v2 = vpack.c.bf16 %v1243_v1, %v1242_v0  ;;  %v1254_v28 = vld [vmem:[#allocation9 + $0x70] sm:$0xff]  ;;  %v1566_v1 = vld [vmem:[#allocation9 + $0x1a0] sm:$0xff] }
 0x105   : > { %5252 = vmatprep.subr.bf16.mxu1 %v5251_v31  ;;  %v5295_v30 = vpack.c.bf16 %v1255_v29, %v1254_v28 }
 0x107   : > { %5222 = vmatpush3.bf16.msra.mxu0 %v5219_v4 }
 0x108   : > { %5224 = vmatprep.subr.bf16.mxu0 %v5223_v7  ;;  %5254 = vmatpush3.bf16.msra.mxu1 %v5251_v31  ;;  %v1452_v31 = vld [vmem:[#allocation9 + $0x100] sm:$0xff] }
 0x109   : > { %5256 = vmatprep.subr.bf16.mxu1 %v5255_v34  ;;  %v5299_v33 = vpack.c.bf16 %v1453_v32, %v1452_v31  ;;  %v1677_v31 = vld [vmem:[#allocation9 + $0x228] sm:$0xff] }
 0x10b   : > { %5226 = vmatpush3.bf16.msra.mxu0 %v5223_v7  ;;  %v1259_v7 = vld [vmem:[#allocation3 + $0x19] sm:$0xf] }
 0x10c   : > { %5228 = vmatprep.subr.bf16.mxu0 %v5227_v10  ;;  %5258 = vmatpush3.bf16.msra.mxu1 %v5255_v34  ;;  %v1454_v34 = vld [vmem:[#allocation9 + $0x110] sm:$0xff] }
 0x10d   : > { %5260 = vmatprep.subr.bf16.mxu1 %v5259_v38  ;;  %v5303_v37 = vpack.c.bf16 %v1455_v36, %v1454_v34  ;;  %v1678_v36 = vld [vmem:[#allocation9 + $0x230] sm:$0xff] }
 0x10f   : > { %5230 = vmatpush3.bf16.msra.mxu0 %v5227_v10  ;;  %v1247_v10 = vld [vmem:[#allocation9 + $0x38] sm:$0xff] }
 0x110   : > { %5232 = vmatprep.subr.bf16.mxu0 %v5231_v13  ;;  %5262 = vmatpush3.bf16.msra.mxu1 %v5259_v38  ;;  %v1456_v38 = vld [vmem:[#allocation9 + $0x120] sm:$0xff] }
 0x111   : > { %5264 = vmatprep.subr.bf16.mxu1 %v5263_v41 }
 0x113   : > { %5234 = vmatpush3.bf16.msra.mxu0 %v5231_v13  ;;  %v1862_v13 = vld [vmem:[#allocation11 + $0x90] sm:$0xff] }
 0x114   : > { %5266 = vmatpush3.bf16.msra.mxu1 %v5263_v41  ;;  %5395 = vmatprep.subr.bf16.mxu0 %v6263_v17  ;;  %v5307_v41 = vpack.c.bf16 %v1457_v39, %v1456_v38 }
 0x115   : > { %5268 = vmatprep.subr.bf16.mxu1 %v5267_v44 }
 0x116   : > { %4295 = vmatmul.mubr.f32.vlgmr.msra.gmra.mrb[0].mxu0 %v1062_v14  ;;  %v5396_v14 = vpack.c.bf16 %v1861_v12, %v1860_v11  ;;  %v1571_v11 = vld [vmem:[#allocation9 + $0x1c8] sm:$0xff] }
 0x117   : > { %4297 = vmatprep.mubr.f32.mxu0 %v1063_v15  ;;  %v1863_v15 = vld [vmem:[#allocation11 + $0x98] sm:$0xff] }
 0x118   : > { %5397 = vmatpush3.bf16.msra.mxu0 %v5396_v14  ;;  %v5399_v20 = vpack.c.bf16 %v1863_v15, %v1862_v13  ;;  %v1572_v13 = vld [vmem:[#allocation9 + $0x1d0] sm:$0xff]  ;;  %v1573_v14 = vld [vmem:[#allocation9 + $0x1d8] sm:$0xff] }
 0x119   : > { %5398 = vmatprep.subr.bf16.mxu0 %v6263_v17  ;;  %v5351_v15 = vpack.c.bf16 %v1573_v14, %v1572_v13  ;;  %v1198_v14 = vlaneseq }
 0x11a   : > { %4298 = vmatmul.mubr.f32.gmra.mrb[2].mxu0 %v1064_v16  ;;  %v5279_v16 = vpack.c.bf16 %v1247_v10, %v1246_v9  ;;  %v1570_v10 = vld [vmem:[#allocation9 + $0x1c0] sm:$0xff] }
 0x11b   : > { %v5347_v12 = vpack.c.bf16 %v1571_v11, %v1570_v10  ;;  %4522 = vmatprep.mubr.msk.f32.mxu0 %vm6264_vm0, %v6262_v35  ;;  %v3616_v11 = vld [vmem:[%s6868_s6] ss:$0 sm:$0xff] }
 0x11c   : > { %5400 = vmatpush3.bf16.msra.mxu0 %v5399_v20  ;;  %v1576_v20 = vld [vmem:[#allocation9 + $0x1f0] sm:$0xff] }
 0x11d   : > { %5401 = vmatprep.subr.bf16.mxu0 %v6263_v17 }
 0x1c8   : > { %v4182_v45 = vpop.f32.mrb[0].mxu1 }
 0x1c9   : > { %v822_v46 = vpop.f32.mrb[1].mxu1 }
 0x1ca   : > { %v1460_v46 = vld [vmem:[#allocation9 + $0x140] sm:$0xff] }
 0x1cc   : > { %v4185_v47 = vpop.f32.mrb[2].mxu1 }
 0x1cd   : > { %v832_v48 = vpop.f32.mrb[3].mxu1  ;;  %v1461_v47 = vld [vmem:[#allocation9 + $0x148] sm:$0xff] }
 0x1e9   : > { %v4296_v49 = vpop.f32.mrb[0].mxu0 }
 0x1ea   : > { %v5795_v51 = vadd.f32 %v4296_v49, %v4182_v45  ;;  %v1148_v52 = vpop.f32.mrb[1].mxu0  ;;  %v5311_v45 = vpack.c.bf16 %v1459_v43, %v1458_v42  ;;  %v1462_v49 = vld [vmem:[#allocation9 + $0x150] sm:$0xff] }
 0x1eb   : > { %v1464_v52 = vld [vmem:[#allocation9 + $0x160] sm:$0xff]  ;;  %v1682_v43 = vld [vmem:[#allocation9 + $0x250] sm:$0xff] }
 0x1ec   : > { %v1179_v54 = vmul.f32 %v5795_v51, %v3613_v50 }
 0x1ed   : > { %v4299_v55 = vpop.f32.mrb[2].mxu0 }
 0x1ee   : > { %v1190_v56 = vadd.f32 %v3614_v53, %v1179_v54  ;;  %v1158_v57 = vpop.f32.mrb[3].mxu0  ;;  %v1466_v55 = vld [vmem:[#allocation9 + $0x170] sm:$0xff] }
 0x1ef   : > { %v5796_v58 = vadd.f32 %v1158_v57, %v832_v48  ;;  %v5315_v48 = vpack.c.bf16 %v1461_v47, %v1460_v46  ;;  %v1684_v46 = vld [vmem:[#allocation9 + $0x260] sm:$0xff]  ;;  %v1685_v47 = vld [vmem:[#allocation9 + $0x268] sm:$0xff] }
 0x1f0   : > { %5994 = vtanh.f32 %v1190_v56  ;;  %v1467_v56 = vld [vmem:[#allocation9 + $0x178] sm:$0xff] }
 0x1f1   : > { %v1180_v59 = vmul.f32 %v5796_v58, %v3613_v50  ;;  %v1463_v50 = vld [vmem:[#allocation9 + $0x158] sm:$0xff]  ;;  %v5327_v57 = vpack.c.bf16 %v1467_v56, %v1466_v55  ;;  %v1562_v58 = vld [vmem:[#allocation9 + $0x180] sm:$0xff]  ;;  %v1865_v56 = vld [vmem:[#allocation11 + $0xa8] sm:$0xff] }
 0x1f2   : > { %v5319_v51 = vpack.c.bf16 %v1463_v50, %v1462_v49  ;;  %v1686_v49 = vld [vmem:[#allocation9 + $0x270] sm:$0xff]  ;;  %v1687_v50 = vld [vmem:[#allocation9 + $0x278] sm:$0xff]  ;;  %v1864_v55 = vld [vmem:[#allocation11 + $0xa0] sm:$0xff] }
 0x1f3   : > { %v1191_v60 = vadd.f32 %v3614_v53, %v1180_v59  ;;  %v1465_v53 = vld [vmem:[#allocation9 + $0x168] sm:$0xff] }
 0x1f4   : > { %v5323_v54 = vpack.c.bf16 %v1465_v53, %v1464_v52  ;;  %v1563_v59 = vld [vmem:[#allocation9 + $0x188] sm:$0xff] }
 0x1f5   : > { %5996 = vtanh.f32 %v1191_v60  ;;  %v5331_v60 = vpack.c.bf16 %v1563_v59, %v1562_v58  ;;  %v1866_v58 = vld [vmem:[#allocation11 + $0xb0] sm:$0xff]  ;;  %v1867_v59 = vld [vmem:[#allocation11 + $0xb8] sm:$0xff] }
 0x1fa   : > { %v6574_v61 = vpop.eup %5994 }
 0x1fb   : > { %1233 = vst [vmem:[#allocation3 + $0x8] sm:$0xff] %v6574_v61 }
 0x1ff   : > { %v6577_v62 = vpop.eup %5996 }
 0x200   : > { %1234 = vst [vmem:[#allocation3 + $0x10] sm:$0xff] %v6577_v62 }
 0x202   : > { %v1256_v63 = vld [vmem:[#allocation3 + $0x1] sm:$0xff] }
 0x203   : > { %4332 = vmatprep.mubr.f32.mxu1 %v1256_v63  ;;  %v1667_v38 = vld [vmem:[#allocation3 + $0x4] sm:$0xff] }
 0x207   : > { %v1257_v4 = vld [vmem:[#allocation3 + $0x9] sm:$0xff]  ;;  %v1258_v5 = vld [vmem:[#allocation3 + $0x11] sm:$0xff] }
 0x208   : > { %4333 = vmatmul.mubr.f32.vlgmr.msra.gmra.mrb[4].mxu1 %v1257_v4  ;;  %v1448_v0 = vld [vmem:[#allocation3 + $0xa] sm:$0xff]  ;;  %v1449_v3 = vld [vmem:[#allocation3 + $0x12] sm:$0xff]  ;;  %v1450_v4 = vld [vmem:[#allocation3 + $0x1a] sm:$0xf] }
 0x209   : > { %5270 = vmatpush3.bf16.msra.mxu1 %v5267_v44  ;;  %4335 = vmatprep.mubr.f32.mxu1 %v1258_v5  ;;  %v1447_v44 = vld [vmem:[#allocation3 + $0x2] sm:$0xff]  ;;  %v1558_v29 = vld [vmem:[#allocation3 + $0xb] sm:$0xff]  ;;  %v1559_v32 = vld [vmem:[#allocation3 + $0x13] sm:$0xff] }
 0x20a   : > { %5272 = vmatprep.subr.bf16.mxu1 %v5271_v2  ;;  %v1668_v52 = vld [vmem:[#allocation3 + $0xc] sm:$0xff]  ;;  %v1669_v53 = vld [vmem:[#allocation3 + $0x14] sm:$0xff] }
 0x20c   : > { %4336 = vmatmul.mubr.f32.gmra.mrb[6].mxu1 %v1259_v7  ;;  %v1569_v7 = vld [vmem:[#allocation9 + $0x1b8] sm:$0xff] }
 0x20d   : > { %5274 = vmatpush3.bf16.msra.mxu1 %v5271_v2  ;;  %4370 = vmatprep.mubr.f32.mxu1 %v6262_v35  ;;  %v1567_v2 = vld [vmem:[#allocation9 + $0x1a8] sm:$0xff]  ;;  %v5343_v9 = vpack.c.bf16 %v1569_v7, %v1568_v6  ;;  %v1874_v6 = vld [vmem:[#allocation11 + $0xf0] sm:$0xff]  ;;  %v1875_v7 = vld [vmem:[#allocation11 + $0xf8] sm:$0xff] }
 0x20e   : > { %5276 = vmatprep.subr.bf16.mxu1 %v5275_v8  ;;  %v5339_v5 = vpack.c.bf16 %v1567_v2, %v1566_v1  ;;  %v1871_v1 = vld [vmem:[#allocation11 + $0xd8] sm:$0xff] }
 0x211   : > { %5278 = vmatpush3.bf16.msra.mxu1 %v5275_v8  ;;  %v1557_v8 = vld [vmem:[#allocation3 + $0x3] sm:$0xff] }
 0x212   : > { %5280 = vmatprep.subr.bf16.mxu1 %v5279_v16 }
 0x215   : > { %5282 = vmatpush3.bf16.msra.mxu1 %v5279_v16  ;;  %v1574_v16 = vld [vmem:[#allocation9 + $0x1e0] sm:$0xff] }
 0x216   : > { %5284 = vmatprep.subr.bf16.mxu1 %v5283_v21  ;;  %v5355_v19 = vpack.c.bf16 %v1575_v18, %v1574_v16 }
 0x219   : > { %5286 = vmatpush3.bf16.msra.mxu1 %v5283_v21  ;;  %v1577_v21 = vld [vmem:[#allocation9 + $0x1f8] sm:$0xff] }
 0x21a   : > { %5288 = vmatprep.subr.bf16.mxu1 %v5287_v24  ;;  %v5359_v22 = vpack.c.bf16 %v1577_v21, %v1576_v20  ;;  %v6603_v21 = vshrl.u32 %v1198_v14, 7  ;;  %v2050_v14 = vld [vmem:[#allocation11 + $0x150] sm:$0xff] }
 0x21d   : > { %5290 = vmatpush3.bf16.msra.mxu1 %v5287_v24  ;;  %v1673_v24 = vld [vmem:[#allocation9 + $0x208] sm:$0xff] }
 0x21e   : > { %5292 = vmatprep.subr.bf16.mxu1 %v5291_v27  ;;  %v5363_v25 = vpack.c.bf16 %v1673_v24, %v1672_v23  ;;  %v6606_v24 = vadd.s32 4294967290, %v6603_v21 }
 0x220   : > { %vm1809_vm1 = vcmp.ge.s32.totalorder %v6606_v24, 0 }
 0x221   : > { %5294 = vmatpush3.bf16.msra.mxu1 %v5291_v27  ;;  %v1675_v27 = vld [vmem:[#allocation9 + $0x218] sm:$0xff] }
 0x222   : > { %5296 = vmatprep.subr.bf16.mxu1 %v5295_v30  ;;  %v5367_v28 = vpack.c.bf16 %v1675_v27, %v1674_v26 }
 0x225   : > { %5298 = vmatpush3.bf16.msra.mxu1 %v5295_v30  ;;  %v1676_v30 = vld [vmem:[#allocation9 + $0x220] sm:$0xff] }
 0x226   : > { %5300 = vmatprep.subr.bf16.mxu1 %v5299_v33  ;;  %v5371_v34 = vpack.c.bf16 %v1677_v31, %v1676_v30  ;;  %v1840_v31 = vld [vmem:[#allocation11] sm:$0xff] }
 0x228   : > { %4371 = vmatmul.mubr.f32.vlgmr.msra.gmra.mrb[4].mxu1 %v6574_v61  ;;  %v1564_v61 = vld [vmem:[#allocation9 + $0x190] sm:$0xff] }
 0x229   : > { %4373 = vmatprep.mubr.f32.mxu1 %v6577_v62  ;;  %5302 = vmatpush3.bf16.msra.mxu1 %v5299_v33  ;;  %v1565_v62 = vld [vmem:[#allocation9 + $0x198] sm:$0xff] }
 0x22a   : > { %5304 = vmatprep.subr.bf16.mxu1 %v5303_v37  ;;  %v5335_v63 = vpack.c.bf16 %v1565_v62, %v1564_v61  ;;  %v1560_v33 = vld [vmem:[#allocation3 + $0x1b] sm:$0xf]  ;;  %v1868_v61 = vld [vmem:[#allocation11 + $0xc0] sm:$0xff]  ;;  %v1869_v62 = vld [vmem:[#allocation11 + $0xc8] sm:$0xff] }
 0x22c   : > { %4374 = vmatmul.mubr.f32.gmra.mrb[6].mxu1 %v1239_v40  ;;  %v1680_v40 = vld [vmem:[#allocation9 + $0x240] sm:$0xff] }
 0x22d   : > { %5306 = vmatpush3.bf16.msra.mxu1 %v5303_v37  ;;  %4408 = vmatprep.mubr.f32.mxu1 %v1447_v44  ;;  %v1679_v37 = vld [vmem:[#allocation9 + $0x238] sm:$0xff] }
 0x22e   : > { %5308 = vmatprep.subr.bf16.mxu1 %v5307_v41  ;;  %v5375_v39 = vpack.c.bf16 %v1679_v37, %v1678_v36  ;;  %v1683_v44 = vld [vmem:[#allocation9 + $0x258] sm:$0xff]  ;;  %v1842_v36 = vld [vmem:[#allocation11 + $0x10] sm:$0xff] }
 0x22f   : > { %v1843_v37 = vld [vmem:[#allocation11 + $0x18] sm:$0xff] }
 0x231   : > { %5310 = vmatpush3.bf16.msra.mxu1 %v5307_v41  ;;  %v1681_v41 = vld [vmem:[#allocation9 + $0x248] sm:$0xff] }
 0x232   : > { %5312 = vmatprep.subr.bf16.mxu1 %v5311_v45  ;;  %v5379_v42 = vpack.c.bf16 %v1681_v41, %v1680_v40  ;;  %v1844_v40 = vld [vmem:[#allocation11 + $0x20] sm:$0xff]  ;;  %v1845_v41 = vld [vmem:[#allocation11 + $0x28] sm:$0xff] }
 0x235   : > { %5314 = vmatpush3.bf16.msra.mxu1 %v5311_v45  ;;  %v5383_v45 = vpack.c.bf16 %v1683_v44, %v1682_v43  ;;  %v5426_v43 = vpack.c.bf16 %v1845_v41, %v1844_v40  ;;  %v1846_v44 = vld [vmem:[#allocation11 + $0x30] sm:$0xff] }
 0x236   : > { %5316 = vmatprep.subr.bf16.mxu1 %v5315_v48 }
 0x239   : > { %5318 = vmatpush3.bf16.msra.mxu1 %v5315_v48  ;;  %v5387_v48 = vpack.c.bf16 %v1685_v47, %v1684_v46  ;;  %v2417_v47 = vld [vmem:[#allocation12 + $0x80] sm:$0xff] }
 0x23a   : > { %5320 = vmatprep.subr.bf16.mxu1 %v5319_v51 }
 0x23d   : > { %5322 = vmatpush3.bf16.msra.mxu1 %v5319_v51  ;;  %v5391_v51 = vpack.c.bf16 %v1687_v50, %v1686_v49 }
 0x23e   : > { %5324 = vmatprep.subr.bf16.mxu1 %v5323_v54 }
 0x241   : > { %5326 = vmatpush3.bf16.msra.mxu1 %v5323_v54  ;;  %v1670_v54 = vld [vmem:[#allocation3 + $0x1c] sm:$0xf] }
 0x242   : > { %5328 = vmatprep.subr.bf16.mxu1 %v5327_v57 }
 0x245   : > { %5330 = vmatpush3.bf16.msra.mxu1 %v5327_v57  ;;  %v5402_v57 = vpack.c.bf16 %v1865_v56, %v1864_v55  ;;  %v1851_v55 = vld [vmem:[#allocation11 + $0x58] sm:$0xff] }
 0x246   : > { %5332 = vmatprep.subr.bf16.mxu1 %v5331_v60 }
 0x247   : > { %5403 = vmatpush3.bf16.msra.mxu0 %v5402_v57  ;;  %v1852_v57 = vld [vmem:[#allocation11 + $0x60] sm:$0xff] }
 0x248   : > { %4409 = vmatmul.mubr.f32.vlgmr.msra.gmra.mrb[4].mxu1 %v1448_v0  ;;  %5404 = vmatprep.subr.bf16.mxu0 %v6263_v17  ;;  %v1870_v0 = vld [vmem:[#allocation11 + $0xd0] sm:$0xff] }
 0x249   : > { %4411 = vmatprep.mubr.f32.mxu1 %v1449_v3  ;;  %5334 = vmatpush3.bf16.msra.mxu1 %v5331_v60  ;;  %v5405_v60 = vpack.c.bf16 %v1867_v59, %v1866_v58  ;;  %v5411_v2 = vpack.c.bf16 %v1871_v1, %v1870_v0  ;;  %v1872_v3 = vld [vmem:[#allocation11 + $0xe0] sm:$0xff]  ;;  %v1853_v58 = vld [vmem:[#allocation11 + $0x68] sm:$0xff] }
 0x24a   : > { %5336 = vmatprep.subr.bf16.mxu1 %v5335_v63  ;;  %v5438_v59 = vpack.c.bf16 %v1853_v58, %v1852_v57  ;;  %v2041_v0 = vld [vmem:[#allocation11 + $0x108] sm:$0xff]  ;;  %v2248_v57 = vld [vmem:[#allocation11 + $0x210] sm:$0xff]  ;;  %v2249_v58 = vld [vmem:[#allocation11 + $0x218] sm:$0xff] }
 0x24b   : > { %5406 = vmatpush3.bf16.msra.mxu0 %v5405_v60  ;;  %v1854_v60 = vld [vmem:[#allocation11 + $0x70] sm:$0xff] }
 0x24c   : > { %4412 = vmatmul.mubr.f32.gmra.mrb[6].mxu1 %v1450_v4  ;;  %5407 = vmatprep.subr.bf16.mxu0 %v6263_v17  ;;  %v1873_v4 = vld [vmem:[#allocation11 + $0xe8] sm:$0xff] }
 0x24d   : > { %5338 = vmatpush3.bf16.msra.mxu1 %v5335_v63  ;;  %4446 = vmatprep.mubr.f32.mxu1 %v1557_v8  ;;  %v5408_v63 = vpack.c.bf16 %v1869_v62, %v1868_v61  ;;  %v5417_v8 = vpack.c.bf16 %v1875_v7, %v1874_v6  ;;  %v1855_v61 = vld [vmem:[#allocation11 + $0x78] sm:$0xff]  ;;  %v2045_v6 = vld [vmem:[#allocation11 + $0x128] sm:$0xff] }
 0x24e   : > { %5340 = vmatprep.subr.bf16.mxu1 %v5339_v5  ;;  %v5441_v62 = vpack.c.bf16 %v1855_v61, %v1854_v60  ;;  %v5495_v60 = vpack.c.bf16 %v2249_v58, %v2248_v57  ;;  %v2250_v61 = vld [vmem:[#allocation11 + $0x220] sm:$0xff] }
 0x24f   : > { %5409 = vmatpush3.bf16.msra.mxu0 %v5408_v63  ;;  %v2040_v63 = vld [vmem:[#allocation11 + $0x100] sm:$0xff] }
 0x250   : > { %5410 = vmatprep.subr.bf16.mxu0 %v6263_v17  ;;  %v5444_v1 = vpack.c.bf16 %v2041_v0, %v2040_v63 }
 0x251   : > { %5342 = vmatpush3.bf16.msra.mxu1 %v5339_v5  ;;  %v5414_v5 = vpack.c.bf16 %v1873_v4, %v1872_v3  ;;  %v2043_v3 = vld [vmem:[#allocation11 + $0x118] sm:$0xff] }
 0x252   : > { %5344 = vmatprep.subr.bf16.mxu1 %v5343_v9 }
 0x253   : > { %5412 = vmatpush3.bf16.msra.mxu0 %v5411_v2  ;;  %v2042_v2 = vld [vmem:[#allocation11 + $0x110] sm:$0xff] }
 0x254   : > { %5413 = vmatprep.subr.bf16.mxu0 %v6263_v17  ;;  %v5447_v4 = vpack.c.bf16 %v2043_v3, %v2042_v2  ;;  %v2253_v2 = vld [vmem:[#allocation11 + $0x238] sm:$0xff] }
 0x255   : > { %5346 = vmatpush3.bf16.msra.mxu1 %v5343_v9  ;;  %v3615_v9 = vld [vmem:[%s6867_s5] ss:$0 sm:$0xff] }
 0x256   : > { %5348 = vmatprep.subr.bf16.mxu1 %v5347_v12 }
 0x257   : > { %5415 = vmatpush3.bf16.msra.mxu0 %v5414_v5  ;;  %v2044_v5 = vld [vmem:[#allocation11 + $0x120] sm:$0xff] }
 0x258   : > { %5416 = vmatprep.subr.bf16.mxu0 %v6263_v17  ;;  %v5450_v7 = vpack.c.bf16 %v2045_v6, %v2044_v5  ;;  %v2254_v5 = vld [vmem:[#allocation11 + $0x240] sm:$0xff]  ;;  %v2255_v6 = vld [vmem:[#allocation11 + $0x248] sm:$0xff] }
 0x259   : > { %5350 = vmatpush3.bf16.msra.mxu1 %v5347_v12 }
 0x25a   : > { %5352 = vmatprep.subr.bf16.mxu1 %v5351_v15 }
 0x25b   : > { %5418 = vmatpush3.bf16.msra.mxu0 %v5417_v8  ;;  %v2046_v8 = vld [vmem:[#allocation11 + $0x130] sm:$0xff] }
 0x25c   : > { %5419 = vmatprep.subr.bf16.mxu0 %v6263_v17 }
 0x25d   : > { %5354 = vmatpush3.bf16.msra.mxu1 %v5351_v15 }
 0x25e   : > { %5356 = vmatprep.subr.bf16.mxu1 %v5355_v19 }
 0x261   : > { %5358 = vmatpush3.bf16.msra.mxu1 %v5355_v19 }
 0x262   : > { %5360 = vmatprep.subr.bf16.mxu1 %v5359_v22 }
 0x265   : > { %5362 = vmatpush3.bf16.msra.mxu1 %v5359_v22 }
 0x266   : > { %5364 = vmatprep.subr.bf16.mxu1 %v5363_v25 }
 0x268   : > { %4447 = vmatmul.mubr.f32.vlgmr.msra.gmra.mrb[4].mxu1 %v1558_v29 }
 0x269   : > { %4449 = vmatprep.mubr.f32.mxu1 %v1559_v32  ;;  %5366 = vmatpush3.bf16.msra.mxu1 %v5363_v25  ;;  %v6609_v25 = vadd.s32 16, %v6603_v21  ;;  %v1841_v32 = vld [vmem:[#allocation11 + $0x8] sm:$0xff] }
 0x26a   : > { %5368 = vmatprep.subr.bf16.mxu1 %v5367_v28 }
 0x26b   : > { %v6613_v26 = vadd.s32 4294967290, %v6609_v25 }
 0x26c   : > { %4450 = vmatmul.mubr.f32.gmra.mrb[6].mxu1 %v1560_v33 }
 0x26d   : > { %5370 = vmatpush3.bf16.msra.mxu1 %v5367_v28  ;;  %4484 = vmatprep.mubr.f32.mxu1 %v1667_v38  ;;  %vm1815_vm2 = vcmp.lt.s32.totalorder %v6613_v26, 16  ;;  %v2143_v26 = vld [vmem:[#allocation11 + $0x180] sm:$0xff] }
 0x26e   : > { %5372 = vmatprep.subr.bf16.mxu1 %v5371_v34 }
 0x271   : > { %5374 = vmatpush3.bf16.msra.mxu1 %v5371_v34  ;;  %v5420_v34 = vpack.c.bf16 %v1841_v32, %v1840_v31 }
 0x272   : > { %5376 = vmatprep.subr.bf16.mxu1 %v5375_v39 }
 0x275   : > { %5378 = vmatpush3.bf16.msra.mxu1 %v5375_v39  ;;  %v5423_v39 = vpack.c.bf16 %v1843_v37, %v1842_v36 }
 0x276   : > { %5380 = vmatprep.subr.bf16.mxu1 %v5379_v42 }
 0x279   : > { %5382 = vmatpush3.bf16.msra.mxu1 %v5379_v42 }
 0x27a   : > { %5384 = vmatprep.subr.bf16.mxu1 %v5383_v45 }
 0x27d   : > { %5386 = vmatpush3.bf16.msra.mxu1 %v5383_v45  ;;  %v1847_v45 = vld [vmem:[#allocation11 + $0x38] sm:$0xff] }
 0x27e   : > { %5388 = vmatprep.subr.bf16.mxu1 %v5387_v48  ;;  %v5429_v49 = vpack.c.bf16 %v1847_v45, %v1846_v44  ;;  %v2153_v45 = vld [vmem:[#allocation11 + $0x1d0] sm:$0xff] }
 0x281   : > { %5390 = vmatpush3.bf16.msra.mxu1 %v5387_v48  ;;  %v2418_v48 = vld [vmem:[#allocation12 + $0x88] sm:$0xff] }
 0x282   : > { %5392 = vmatprep.subr.bf16.mxu1 %v5391_v51  ;;  %v5516_v50 = vpack.c.bf16 %v2418_v48, %v2417_v47  ;;  %v2155_v48 = vld [vmem:[#allocation11 + $0x1e0] sm:$0xff] }
 0x285   : > { %5394 = vmatpush3.bf16.msra.mxu1 %v5391_v51  ;;  %v1848_v51 = vld [vmem:[#allocation11 + $0x40] sm:$0xff] }
 0x286   : > { %5515 = vmatprep.subr.bf16.mxu1 %v6263_v17 }
 0x288   : > { %4485 = vmatmul.mubr.f32.vlgmr.msra.gmra.mrb[4].mxu1 %v1668_v52  ;;  %v1849_v52 = vld [vmem:[#allocation11 + $0x48] sm:$0xff] }
 0x289   : > { %4487 = vmatprep.mubr.f32.mxu1 %v1669_v53  ;;  %5517 = vmatpush3.bf16.msra.mxu1 %v5516_v50  ;;  %v5432_v53 = vpack.c.bf16 %v1849_v52, %v1848_v51  ;;  %v2157_v51 = vld [vmem:[#allocation11 + $0x1f0] sm:$0xff]  ;;  %v2158_v52 = vld [vmem:[#allocation11 + $0x1f8] sm:$0xff] }
 0x28a   : > { %5518 = vmatprep.subr.bf16.mxu1 %v6263_v17 }
 0x28c   : > { %4488 = vmatmul.mubr.f32.gmra.mrb[6].mxu1 %v1670_v54  ;;  %v1850_v54 = vld [vmem:[#allocation11 + $0x50] sm:$0xff] }
 0x28d   : > { %4727 = vmatprep.mubr.msk.f32.mxu1 %vm6264_vm0, %v6262_v35  ;;  %v5435_v56 = vpack.c.bf16 %v1851_v55, %v1850_v54  ;;  %v2246_v54 = vld [vmem:[#allocation11 + $0x200] sm:$0xff]  ;;  %v2247_v55 = vld [vmem:[#allocation11 + $0x208] sm:$0xff] }
 0x35b   : > { %v4486_v10 = vpop.f32.mrb[4].mxu1 }
 0x35c   : > { %v1785_v12 = vmul.f32 %v4486_v10, %v3615_v9  ;;  %v1754_v13 = vpop.f32.mrb[5].mxu1 }
 0x35d   : > { %v1784_v15 = vmul.f32 %v3615_v9, %v1754_v13 }
 0x35e   : > { %v1796_v16 = vadd.f32 %v3616_v11, %v1785_v12  ;;  %v2049_v12 = vld [vmem:[#allocation11 + $0x148] sm:$0xff] }
 0x35f   : > { %v1795_v18 = vadd.f32 %v3616_v11, %v1784_v15  ;;  %v4489_v19 = vpop.f32.mrb[6].mxu1  ;;  %v2051_v15 = vld [vmem:[#allocation11 + $0x158] sm:$0xff] }
 0x360   : > { %5998 = vtanh.f32 %v1796_v16  ;;  %v1764_v20 = vpop.f32.mrb[7].mxu1  ;;  %v5459_v16 = vpack.c.bf16 %v2051_v15, %v2050_v14  ;;  %v2053_v19 = vld [vmem:[#allocation11 + $0x168] sm:$0xff]  ;;  %v2260_v14 = vld [vmem:[#allocation11 + $0x270] sm:$0xff]  ;;  %v2261_v15 = vld [vmem:[#allocation11 + $0x278] sm:$0xff] }
 0x361   : > { %6000 = vtanh.f32 %v1795_v18  ;;  %v1786_v22 = vmul.f32 %v3615_v9, %v1764_v20  ;;  %v2047_v9 = vld [vmem:[#allocation11 + $0x138] sm:$0xff]  ;;  %v2052_v18 = vld [vmem:[#allocation11 + $0x160] sm:$0xff] }
 0x362   : > { %v5453_v10 = vpack.c.bf16 %v2047_v9, %v2046_v8  ;;  %v5462_v20 = vpack.c.bf16 %v2053_v19, %v2052_v18  ;;  %v2256_v8 = vld [vmem:[#allocation11 + $0x250] sm:$0xff]  ;;  %v2257_v9 = vld [vmem:[#allocation11 + $0x258] sm:$0xff] }
 0x363   : > { %v1797_v23 = vadd.f32 %v3616_v11, %v1786_v22  ;;  %v2048_v11 = vld [vmem:[#allocation11 + $0x140] sm:$0xff]  ;;  %v2054_v22 = vld [vmem:[#allocation11 + $0x170] sm:$0xff] }
 0x364   : > { %v5456_v13 = vpack.c.bf16 %v2049_v12, %v2048_v11  ;;  %v2258_v11 = vld [vmem:[#allocation11 + $0x260] sm:$0xff]  ;;  %v2259_v12 = vld [vmem:[#allocation11 + $0x268] sm:$0xff] }
 0x365   : > { %6002 = vtanh.f32 %v1797_v23  ;;  %v2055_v23 = vld [vmem:[#allocation11 + $0x178] sm:$0xff] }
 0x366   : > { %v5465_v24 = vpack.c.bf16 %v2055_v23, %v2054_v22  ;;  %v2419_v22 = vld [vmem:[#allocation12 + $0x90] sm:$0xff]  ;;  %v2420_v23 = vld [vmem:[#allocation12 + $0x98] sm:$0xff] }
 0x36a   : > { %v6615_v27 = vpop.eup %5998 }
 0x36b   : > { %v6617_v28 = vpop.eup %6000  ;;  %1834 = vst [vmem:[#allocation4 + $0x8] sm:$0xff] %v6615_v27 }
 0x36c   : > { %v1829_v29 = vsel %vm1809_vm1, %v6617_v28, 0.0 }
 0x36d   : > { %1833 = vst [vmem:[#allocation4] sm:$0xff] %v1829_v29  ;;  %v2145_v29 = vld [vmem:[#allocation11 + $0x190] sm:$0xff] }
 0x36f   : > { %v6624_v30 = vpop.eup %6002 }
 0x370   : > { %v1831_v33 = vsel %vm1815_vm2, %v6624_v30, 0.0 }
 0x371   : > { %1835 = vst [vmem:[#allocation4 + $0x10] sm:$0xff] %v1831_v33  ;;  %v2147_v33 = vld [vmem:[#allocation11 + $0x1a0] sm:$0xff] }
 0x374   : > { %v1856_v38 = vld [vmem:[#allocation4 + $0x1] sm:$0xff] }
 0x375   : > { %4523 = vmatmul.mubr.f32.vlgmr.msra.gmra.mrb[4].mxu0 %v1856_v38  ;;  %v2036_v31 = vld [vmem:[#allocation4 + $0x2] sm:$0xff]  ;;  %v2149_v38 = vld [vmem:[#allocation11 + $0x1b0] sm:$0xff] }
 0x376   : > { %5421 = vmatpush3.bf16.msra.mxu0 %v5420_v34  ;;  %4525 = vmatprep.mubr.msk.f32.mxu0 %vm6264_vm0, %v6262_v35  ;;  %v2148_v34 = vld [vmem:[#allocation11 + $0x1a8] sm:$0xff] }
 0x377   : > { %5422 = vmatprep.subr.bf16.mxu0 %v6263_v17  ;;  %v5474_v37 = vpack.c.bf16 %v2148_v34, %v2147_v33  ;;  %v2242_v18 = vld [vmem:[#allocation4 + $0x4] sm:$0xff]  ;;  %v2427_v34 = vld [vmem:[#allocation12 + $0xd0] sm:$0xff] }
 0x378   : > { %v1857_v42 = vld [vmem:[#allocation4 + $0x9] sm:$0xff]  ;;  %v1858_v46 = vld [vmem:[#allocation4 + $0x11] sm:$0xff] }
 0x379   : > { %4526 = vmatmul.mubr.f32.gmra.mrb[6].mxu0 %v1857_v42  ;;  %v2037_v36 = vld [vmem:[#allocation4 + $0xa] sm:$0xff]  ;;  %v2038_v40 = vld [vmem:[#allocation4 + $0x12] sm:$0xff]  ;;  %v2151_v42 = vld [vmem:[#allocation11 + $0x1c0] sm:$0xff] }
 0x37a   : > { %5424 = vmatpush3.bf16.msra.mxu0 %v5423_v39  ;;  %4528 = vmatprep.mubr.msk.f32.mxu0 %vm6264_vm0, %v6262_v35  ;;  %v2150_v39 = vld [vmem:[#allocation11 + $0x1b8] sm:$0xff]  ;;  %v2140_v63 = vld [vmem:[#allocation4 + $0xb] sm:$0xff] }
 0x37b   : > { %5425 = vmatprep.subr.bf16.mxu0 %v6263_v17  ;;  %v5477_v41 = vpack.c.bf16 %v2150_v39, %v2149_v38  ;;  %v2141_v3 = vld [vmem:[#allocation4 + $0x13] sm:$0xff]  ;;  %v2429_v38 = vld [vmem:[#allocation12 + $0xe0] sm:$0xff]  ;;  %v2430_v39 = vld [vmem:[#allocation12 + $0xe8] sm:$0xff] }
 0x37c   : > { %v2243_v19 = vld [vmem:[#allocation4 + $0xc] sm:$0xff] }
 0x37d   : > { %4529 = vmatmul.mubr.f32.gmra.mrb[8].mxu0 %v1858_v46  ;;  %v2154_v46 = vld [vmem:[#allocation11 + $0x1d8] sm:$0xff] }
 0x37e   : > { %5427 = vmatpush3.bf16.msra.mxu0 %v5426_v43  ;;  %4563 = vmatprep.mubr.msk.f32.mxu0 %vm6264_vm0, %v6262_v35  ;;  %v2152_v43 = vld [vmem:[#allocation11 + $0x1c8] sm:$0xff]  ;;  %v5483_v47 = vpack.c.bf16 %v2154_v46, %v2153_v45  ;;  %v3618_v46 = vld [vmem:[%s6871_s9] ss:$0 sm:$0xff] }
 0x37f   : > { %5428 = vmatprep.subr.bf16.mxu0 %v6263_v17  ;;  %v5480_v44 = vpack.c.bf16 %v2152_v43, %v2151_v42  ;;  %v2432_v42 = vld [vmem:[#allocation12 + $0xf8] sm:$0xff] }
 0x382   : > { %5430 = vmatpush3.bf16.msra.mxu0 %v5429_v49  ;;  %v2156_v49 = vld [vmem:[#allocation11 + $0x1e8] sm:$0xff] }
 0x383   : > { %5431 = vmatprep.subr.bf16.mxu0 %v6263_v17  ;;  %v5486_v50 = vpack.c.bf16 %v2156_v49, %v2155_v48 }
 0x386   : > { %5433 = vmatpush3.bf16.msra.mxu0 %v5432_v53  ;;  %v5489_v53 = vpack.c.bf16 %v2158_v52, %v2157_v51 }
 0x387   : > { %5434 = vmatprep.subr.bf16.mxu0 %v6263_v17 }
 0x38a   : > { %5436 = vmatpush3.bf16.msra.mxu0 %v5435_v56  ;;  %v5492_v56 = vpack.c.bf16 %v2247_v55, %v2246_v54  ;;  %v6710_v55 = vadd.s32 4294967292, %v6603_v21 }
 0x38b   : > { %5437 = vmatprep.subr.bf16.mxu0 %v6263_v17 }
 0x38c   : > { %vm2373_vm3 = vcmp.ge.s32.totalorder %v6710_v55, 0  ;;  %v2612_v55 = vld [vmem:[#allocation12 + $0x178] sm:$0xff] }
 0x38e   : > { %5439 = vmatpush3.bf16.msra.mxu0 %v5438_v59  ;;  %v2139_v59 = vld [vmem:[#allocation4 + $0x3] sm:$0xff] }
 0x38f   : > { %5440 = vmatprep.subr.bf16.mxu0 %v6263_v17 }
 0x392   : > { %5442 = vmatpush3.bf16.msra.mxu0 %v5441_v62  ;;  %v2251_v62 = vld [vmem:[#allocation11 + $0x228] sm:$0xff] }
 0x393   : > { %5443 = vmatprep.subr.bf16.mxu0 %v6263_v17  ;;  %v5498_v0 = vpack.c.bf16 %v2251_v62, %v2250_v61  ;;  %v2372_v61 = vadd.s32 4294967292, %v6609_v25 }
 0x395   : > { %6017 = vmatmul.mubr.msk.f32.vlgmr.msra.gmra.mrb[4].mxu0 %vm1809_vm1, %v6617_v28  ;;  %vm2378_vm4 = vcmp.lt.s32.totalorder %v2372_v61, 16  ;;  %v2703_v61 = vld [vmem:[#allocation12 + $0x198] sm:$0xff] }
 0x396   : > { %5445 = vmatpush3.bf16.msra.mxu0 %v5444_v1  ;;  %4566 = vmatprep.mubr.msk.f32.mxu0 %vm6264_vm0, %v6262_v35  ;;  %v2252_v1 = vld [vmem:[#allocation11 + $0x230] sm:$0xff] }
 0x397   : > { %5446 = vmatprep.subr.bf16.mxu0 %v6263_v17 }
 0x399   : > { %4567 = vmatmul.mubr.f32.gmra.mrb[6].mxu0 %v6615_v27  ;;  %v2144_v27 = vld [vmem:[#allocation11 + $0x188] sm:$0xff] }
 0x39a   : > { %5448 = vmatpush3.bf16.msra.mxu0 %v5447_v4  ;;  %4569 = vmatprep.mubr.msk.f32.mxu0 %vm6264_vm0, %v6262_v35  ;;  %v5468_v28 = vpack.c.bf16 %v2144_v27, %v2143_v26  ;;  %v5501_v4 = vpack.c.bf16 %v2253_v2, %v2252_v1  ;;  %v2421_v26 = vld [vmem:[#allocation12 + $0xa0] sm:$0xff]  ;;  %v2422_v27 = vld [vmem:[#allocation12 + $0xa8] sm:$0xff] }
 0x39b   : > { %5449 = vmatprep.subr.bf16.mxu0 %v6263_v17 }
 0x39d   : > { %6018 = vmatmul.mubr.msk.f32.gmra.mrb[8].mxu0 %vm1815_vm2, %v6624_v30  ;;  %v2146_v30 = vld [vmem:[#allocation11 + $0x198] sm:$0xff] }
 0x39e   : > { %5451 = vmatpush3.bf16.msra.mxu0 %v5450_v7  ;;  %4604 = vmatprep.mubr.msk.f32.mxu0 %vm6264_vm0, %v6262_v35  ;;  %v5471_v32 = vpack.c.bf16 %v2146_v30, %v2145_v29  ;;  %v5504_v7 = vpack.c.bf16 %v2255_v6, %v2254_v5  ;;  %v2423_v29 = vld [vmem:[#allocation12 + $0xb0] sm:$0xff]  ;;  %v2424_v30 = vld [vmem:[#allocation12 + $0xb8] sm:$0xff] }
 0x39f   : > { %5452 = vmatprep.subr.bf16.mxu0 %v6263_v17  ;;  %v2400_v5 = vld [vmem:[#allocation12 + $0x18] sm:$0xff] }
 0x3a2   : > { %5454 = vmatpush3.bf16.msra.mxu0 %v5453_v10  ;;  %v5507_v10 = vpack.c.bf16 %v2257_v9, %v2256_v8  ;;  %v2401_v9 = vld [vmem:[#allocation12 + $0x20] sm:$0xff] }
 0x3a3   : > { %5455 = vmatprep.subr.bf16.mxu0 %v6263_v17 }
 0x3a6   : > { %5457 = vmatpush3.bf16.msra.mxu0 %v5456_v13  ;;  %v5510_v13 = vpack.c.bf16 %v2259_v12, %v2258_v11 }
 0x3a7   : > { %5458 = vmatprep.subr.bf16.mxu0 %v6263_v17 }
 0x3aa   : > { %5460 = vmatpush3.bf16.msra.mxu0 %v5459_v16  ;;  %v5513_v16 = vpack.c.bf16 %v2261_v15, %v2260_v14  ;;  %v2404_v14 = vld [vmem:[#allocation12 + $0x38] sm:$0xff] }
 0x3ab   : > { %5461 = vmatprep.subr.bf16.mxu0 %v6263_v17 }
 0x3ae   : > { %5463 = vmatpush3.bf16.msra.mxu0 %v5462_v20  ;;  %v2244_v20 = vld [vmem:[#allocation4 + $0x14] sm:$0xff] }
 0x3af   : > { %5464 = vmatprep.subr.bf16.mxu0 %v6263_v17 }
 0x3b2   : > { %5466 = vmatpush3.bf16.msra.mxu0 %v5465_v24  ;;  %v5519_v24 = vpack.c.bf16 %v2420_v23, %v2419_v22  ;;  %v2407_v22 = vld [vmem:[#allocation12 + $0x50] sm:$0xff]  ;;  %v2408_v23 = vld [vmem:[#allocation12 + $0x58] sm:$0xff] }
 0x3b3   : > { %5467 = vmatprep.subr.bf16.mxu0 %v6263_v17 }
 0x3b4   : > { %5520 = vmatpush3.bf16.msra.mxu1 %v5519_v24  ;;  %v5555_v24 = vpack.c.bf16 %v2408_v23, %v2407_v22  ;;  %v2803_v23 = vld [vmem:[#allocation12 + $0x200] sm:$0xff] }
 0x3b5   : > { %4605 = vmatmul.mubr.f32.vlgmr.msra.gmra.mrb[4].mxu0 %v2036_v31  ;;  %5521 = vmatprep.subr.bf16.mxu1 %v6263_v17  ;;  %v5525_v31 = vpack.c.bf16 %v2424_v30, %v2423_v29  ;;  %v2411_v29 = vld [vmem:[#allocation12 + $0x70] sm:$0xff]  ;;  %v2412_v30 = vld [vmem:[#allocation12 + $0x78] sm:$0xff] }
 0x3b6   : > { %5469 = vmatpush3.bf16.msra.mxu0 %v5468_v28  ;;  %4607 = vmatprep.mubr.msk.f32.mxu0 %vm6264_vm0, %v6262_v35  ;;  %v5522_v28 = vpack.c.bf16 %v2422_v27, %v2421_v26  ;;  %v2409_v26 = vld [vmem:[#allocation12 + $0x60] sm:$0xff]  ;;  %v2410_v27 = vld [vmem:[#allocation12 + $0x68] sm:$0xff] }
 0x3b7   : > { %5470 = vmatprep.subr.bf16.mxu0 %v6263_v17 }
 0x3b8   : > { %5523 = vmatpush3.bf16.msra.mxu1 %v5522_v28  ;;  %v5558_v28 = vpack.c.bf16 %v2410_v27, %v2409_v26  ;;  %v2805_v27 = vld [vmem:[#allocation12 + $0x210] sm:$0xff] }
 0x3b9   : > { %4608 = vmatmul.mubr.f32.gmra.mrb[6].mxu0 %v2037_v36  ;;  %5524 = vmatprep.subr.bf16.mxu1 %v6263_v17  ;;  %v2428_v36 = vld [vmem:[#allocation12 + $0xd8] sm:$0xff] }
 0x3ba   : > { %5472 = vmatpush3.bf16.msra.mxu0 %v5471_v32  ;;  %4610 = vmatprep.mubr.msk.f32.mxu0 %vm6264_vm0, %v6262_v35  ;;  %v2426_v32 = vld [vmem:[#allocation12 + $0xc8] sm:$0xff] }
 0x3bb   : > { %5473 = vmatprep.subr.bf16.mxu0 %v6263_v17 }
 0x3bc   : > { %5526 = vmatpush3.bf16.msra.mxu1 %v5525_v31  ;;  %v5561_v31 = vpack.c.bf16 %v2412_v30, %v2411_v29 }
 0x3bd   : > { %4611 = vmatmul.mubr.f32.gmra.mrb[8].mxu0 %v2038_v40  ;;  %5527 = vmatprep.subr.bf16.mxu1 %v6263_v17  ;;  %v5534_v40 = vpack.c.bf16 %v2430_v39, %v2429_v38  ;;  %v2601_v38 = vld [vmem:[#allocation12 + $0x120] sm:$0xff]  ;;  %v2602_v39 = vld [vmem:[#allocation12 + $0x128] sm:$0xff] }
 0x3be   : > { %5475 = vmatpush3.bf16.msra.mxu0 %v5474_v37  ;;  %4645 = vmatprep.mubr.msk.f32.mxu0 %vm6264_vm0, %v6262_v35  ;;  %v5531_v37 = vpack.c.bf16 %v2428_v36, %v2427_v34  ;;  %v2599_v34 = vld [vmem:[#allocation12 + $0x110] sm:$0xff]  ;;  %v2600_v36 = vld [vmem:[#allocation12 + $0x118] sm:$0xff] }
 0x3bf   : > { %5476 = vmatprep.subr.bf16.mxu0 %v6263_v17 }
 0x3c2   : > { %5478 = vmatpush3.bf16.msra.mxu0 %v5477_v41  ;;  %v2431_v41 = vld [vmem:[#allocation12 + $0xf0] sm:$0xff] }
 0x3c3   : > { %5479 = vmatprep.subr.bf16.mxu0 %v6263_v17  ;;  %v5537_v43 = vpack.c.bf16 %v2432_v42, %v2431_v41  ;;  %v2603_v41 = vld [vmem:[#allocation12 + $0x130] sm:$0xff]  ;;  %v2604_v42 = vld [vmem:[#allocation12 + $0x138] sm:$0xff] }
 0x3c6   : > { %5481 = vmatpush3.bf16.msra.mxu0 %v5480_v44  ;;  %v3617_v44 = vld [vmem:[%s6870_s8] ss:$0 sm:$0xff] }
 0x3c7   : > { %5482 = vmatprep.subr.bf16.mxu0 %v6263_v17 }
 0x3ca   : > { %5484 = vmatpush3.bf16.msra.mxu0 %v5483_v47 }
 0x3cb   : > { %5485 = vmatprep.subr.bf16.mxu0 %v6263_v17 }
 0x3ce   : > { %5487 = vmatpush3.bf16.msra.mxu0 %v5486_v50 }
 0x3cf   : > { %5488 = vmatprep.subr.bf16.mxu0 %v6263_v17 }
 0x3d2   : > { %5490 = vmatpush3.bf16.msra.mxu0 %v5489_v53 }
 0x3d3   : > { %5491 = vmatprep.subr.bf16.mxu0 %v6263_v17 }
 0x3d5   : > { %4646 = vmatmul.mubr.f32.vlgmr.msra.gmra.mrb[4].mxu0 %v2139_v59 }
 0x3d6   : > { %5493 = vmatpush3.bf16.msra.mxu0 %v5492_v56  ;;  %4648 = vmatprep.mubr.msk.f32.mxu0 %vm6264_vm0, %v6262_v35 }
 0x3d7   : > { %5494 = vmatprep.subr.bf16.mxu0 %v6263_v17 }
 0x3d9   : > { %4649 = vmatmul.mubr.f32.gmra.mrb[6].mxu0 %v2140_v63  ;;  %v2397_v63 = vld [vmem:[#allocation12] sm:$0xff] }
 0x3da   : > { %5496 = vmatpush3.bf16.msra.mxu0 %v5495_v60  ;;  %4651 = vmatprep.mubr.msk.f32.mxu0 %vm6264_vm0, %v6262_v35 }
 0x3db   : > { %5497 = vmatprep.subr.bf16.mxu0 %v6263_v17 }
 0x3dd   : > { %4652 = vmatmul.mubr.f32.gmra.mrb[8].mxu0 %v2141_v3 }
 0x3de   : > { %5499 = vmatpush3.bf16.msra.mxu0 %v5498_v0  ;;  %4686 = vmatprep.mubr.msk.f32.mxu0 %vm6264_vm0, %v6262_v35  ;;  %v2398_v0 = vld [vmem:[#allocation12 + $0x8] sm:$0xff] }
 0x3df   : > { %5500 = vmatprep.subr.bf16.mxu0 %v6263_v17  ;;  %v5540_v3 = vpack.c.bf16 %v2398_v0, %v2397_v63  ;;  %v2704_v0 = vld [vmem:[#allocation12 + $0x1a0] sm:$0xff] }
 0x3e2   : > { %5502 = vmatpush3.bf16.msra.mxu0 %v5501_v4  ;;  %v2399_v4 = vld [vmem:[#allocation12 + $0x10] sm:$0xff] }
 0x3e3   : > { %5503 = vmatprep.subr.bf16.mxu0 %v6263_v17  ;;  %v5543_v8 = vpack.c.bf16 %v2400_v5, %v2399_v4  ;;  %v2706_v4 = vld [vmem:[#allocation12 + $0x1b0] sm:$0xff]  ;;  %v2707_v5 = vld [vmem:[#allocation12 + $0x1b8] sm:$0xff] }
 0x3e6   : > { %5505 = vmatpush3.bf16.msra.mxu0 %v5504_v7  ;;  %v6722_v7 = vld [vmem:[#allocation3 + $0x18] sm:$0xff] }
 0x3e7   : > { %5506 = vmatprep.subr.bf16.mxu0 %v6263_v17 }
 0x3ea   : > { %5508 = vmatpush3.bf16.msra.mxu0 %v5507_v10  ;;  %v2402_v10 = vld [vmem:[#allocation12 + $0x28] sm:$0xff] }
 0x3eb   : > { %5509 = vmatprep.subr.bf16.mxu0 %v6263_v17  ;;  %v5546_v12 = vpack.c.bf16 %v2402_v10, %v2401_v9  ;;  %v2708_v9 = vld [vmem:[#allocation12 + $0x1c0] sm:$0xff]  ;;  %v2709_v10 = vld [vmem:[#allocation12 + $0x1c8] sm:$0xff] }
 0x3ee   : > { %5511 = vmatpush3.bf16.msra.mxu0 %v5510_v13  ;;  %v2403_v13 = vld [vmem:[#allocation12 + $0x30] sm:$0xff] }
 0x3ef   : > { %5512 = vmatprep.subr.bf16.mxu0 %v6263_v17 }
 0x3f2   : > { %5514 = vmatpush3.bf16.msra.mxu0 %v5513_v16  ;;  %v5549_v16 = vpack.c.bf16 %v2404_v14, %v2403_v13  ;;  %v2711_v13 = vld [vmem:[#allocation12 + $0x1d8] sm:$0xff] }
 0x3f5   : > { %4687 = vmatmul.mubr.f32.vlgmr.msra.gmra.mrb[4].mxu0 %v2242_v18  ;;  %v2405_v18 = vld [vmem:[#allocation12 + $0x40] sm:$0xff] }
 0x3f6   : > { %4689 = vmatprep.mubr.msk.f32.mxu0 %vm6264_vm0, %v6262_v35 }
 0x3f9   : > { %4690 = vmatmul.mubr.f32.gmra.mrb[6].mxu0 %v2243_v19  ;;  %v2406_v19 = vld [vmem:[#allocation12 + $0x48] sm:$0xff] }
 0x3fa   : > { %4692 = vmatprep.mubr.msk.f32.mxu0 %vm6264_vm0, %v6262_v35  ;;  %v2425_v35 = vld [vmem:[#allocation12 + $0xc0] sm:$0xff] }
 0x3fb   : > { %v5528_v33 = vpack.c.bf16 %v2426_v32, %v2425_v35  ;;  %v2597_v35 = vld [vmem:[#allocation12 + $0x100] sm:$0xff]  ;;  %v2598_v32 = vld [vmem:[#allocation12 + $0x108] sm:$0xff] }
 0x3fd   : > { %4693 = vmatmul.mubr.f32.gmra.mrb[8].mxu0 %v2244_v20  ;;  %5529 = vmatpush3.bf16.msra.mxu1 %v5528_v33  ;;  %v5552_v20 = vpack.c.bf16 %v2406_v19, %v2405_v18  ;;  %v5564_v33 = vpack.c.bf16 %v2598_v32, %v2597_v35  ;;  %v2714_v19 = vld [vmem:[#allocation12 + $0x1f0] sm:$0xff]  ;;  %v2808_v35 = vld [vmem:[#allocation12 + $0x228] sm:$0xff] }
 0x3fe   : > { %5530 = vmatprep.subr.bf16.mxu1 %v6263_v17 }
 0x401   : > { %5532 = vmatpush3.bf16.msra.mxu1 %v5531_v37  ;;  %v5567_v37 = vpack.c.bf16 %v2600_v36, %v2599_v34  ;;  %v2809_v34 = vld [vmem:[#allocation12 + $0x230] sm:$0xff]  ;;  %v2810_v36 = vld [vmem:[#allocation12 + $0x238] sm:$0xff] }
 0x402   : > { %5533 = vmatprep.subr.bf16.mxu1 %v6263_v17 }
 0x405   : > { %5535 = vmatpush3.bf16.msra.mxu1 %v5534_v40  ;;  %v5570_v40 = vpack.c.bf16 %v2602_v39, %v2601_v38  ;;  %v5621_v38 = vpack.c.bf16 %v2810_v36, %v2809_v34  ;;  %v2811_v39 = vld [vmem:[#allocation12 + $0x240] sm:$0xff]  ;;  %v2929_v36 = vadd.s32 4294967294, %v6609_v25 }
 0x406   : > { %5536 = vmatprep.subr.bf16.mxu1 %v6263_v17 }
 0x407   : > { %vm2935_vm6 = vcmp.lt.s32.totalorder %v2929_v36, 16  ;;  %v3244_v36 = vld [vmem:[#allocation14 + $0x1b8] sm:$0xff] }
 0x409   : > { %5538 = vmatpush3.bf16.msra.mxu1 %v5537_v43 }
 0x40a   : > { %5539 = vmatprep.subr.bf16.mxu1 %v6263_v17 }
 0x4c8   : > { %v2328_v45 = vpop.f32.mrb[4].mxu0 }
 0x4c9   : > { %v2352_v47 = vmul.f32 %v3617_v44, %v2328_v45  ;;  %v4688_v48 = vpop.f32.mrb[5].mxu0  ;;  %v2605_v45 = vld [vmem:[#allocation12 + $0x140] sm:$0xff] }
 0x4ca   : > { %v2607_v48 = vld [vmem:[#allocation12 + $0x150] sm:$0xff] }
 0x4cb   : > { %v2362_v49 = vadd.f32 %v3618_v46, %v2352_v47 }
 0x4cc   : > { %v2333_v50 = vpop.f32.mrb[6].mxu0 }
 0x4cd   : > { %6004 = vtanh.f32 %v2362_v49  ;;  %v2353_v51 = vmul.f32 %v3617_v44, %v2333_v50  ;;  %v4691_v52 = vpop.f32.mrb[7].mxu0  ;;  %v2608_v49 = vld [vmem:[#allocation12 + $0x158] sm:$0xff] }
 0x4ce   : > { %v5579_v50 = vpack.c.bf16 %v2608_v49, %v2607_v48  ;;  %v2610_v52 = vld [vmem:[#allocation12 + $0x168] sm:$0xff]  ;;  %v2817_v48 = vld [vmem:[#allocation12 + $0x270] sm:$0xff]  ;;  %v2818_v49 = vld [vmem:[#allocation12 + $0x278] sm:$0xff] }
 0x4cf   : > { %v2363_v53 = vadd.f32 %v3618_v46, %v2353_v51  ;;  %v2609_v51 = vld [vmem:[#allocation12 + $0x160] sm:$0xff] }
 0x4d0   : > { %v2338_v54 = vpop.f32.mrb[8].mxu0 }
 0x4d1   : > { %6006 = vtanh.f32 %v2363_v53  ;;  %v2354_v56 = vmul.f32 %v3617_v44, %v2338_v54  ;;  %v4694_v57 = vpop.f32.mrb[9].mxu0  ;;  %v5573_v44 = vpack.c.bf16 %v2604_v42, %v2603_v41  ;;  %v5582_v53 = vpack.c.bf16 %v2610_v52, %v2609_v51  ;;  %v2611_v54 = vld [vmem:[#allocation12 + $0x170] sm:$0xff] }
 0x4d2   : > { %v2700_v57 = vld [vmem:[#allocation12 + $0x180] sm:$0xff]  ;;  %v2813_v42 = vld [vmem:[#allocation12 + $0x250] sm:$0xff] }
 0x4d3   : > { %v2364_v58 = vadd.f32 %v3618_v46, %v2354_v56  ;;  %v2606_v46 = vld [vmem:[#allocation12 + $0x148] sm:$0xff]  ;;  %v5585_v56 = vpack.c.bf16 %v2612_v55, %v2611_v54  ;;  %v2972_v54 = vld [vmem:[#allocation14 + $0x80] sm:$0xff] }
 0x4d4   : > { %v5576_v47 = vpack.c.bf16 %v2606_v46, %v2605_v45  ;;  %v2815_v45 = vld [vmem:[#allocation12 + $0x260] sm:$0xff]  ;;  %v2816_v46 = vld [vmem:[#allocation12 + $0x268] sm:$0xff] }
 0x4d5   : > { %6008 = vtanh.f32 %v2364_v58  ;;  %v2701_v58 = vld [vmem:[#allocation12 + $0x188] sm:$0xff] }
 0x4d6   : > { %v2973_v55 = vld [vmem:[#allocation14 + $0x88] sm:$0xff] }
 0x4d7   : > { %v6713_v59 = vpop.eup %6004 }
 0x4d8   : > { %v2388_v60 = vsel %vm2373_vm3, %v6713_v59, 0.0 }
 0x4d9   : > { %2391 = vst [vmem:[#allocation3] sm:$0xff] %v2388_v60  ;;  %v2702_v60 = vld [vmem:[#allocation12 + $0x190] sm:$0xff] }
 0x4da   : > { %v5591_v63 = vpack.c.bf16 %v2703_v61, %v2702_v60  ;;  %v2977_v60 = vld [vmem:[#allocation14 + $0xa8] sm:$0xff] }
 0x4db   : > { %v6719_v62 = vpop.eup %6006 }
 0x4dc   : > { %2392 = vst [vmem:[#allocation3 + $0x8] sm:$0xff] %v6719_v62 }
 0x4df   : > { %v6009_v1 = vpop.eup %6008 }
 0x4e0   : > { %v2390_v2 = vsel %vm2378_vm4, %v6009_v1, 0.0  ;;  %v2705_v1 = vld [vmem:[#allocation12 + $0x1a8] sm:$0xff] }
 0x4e1   : > { %2393 = vst [vmem:[#allocation3 + $0x10] sm:$0xff] %v2390_v2 }
 0x4e3   : > { %v2413_v6 = vld [vmem:[#allocation3 + $0x1] sm:$0xff] }
 0x4e4   : > { %4728 = vmatmul.mubr.f32.vlgmr.msra.gmra.mrb[8].mxu1 %v2413_v6  ;;  %v2696_v29 = vld [vmem:[#allocation3 + $0x3] sm:$0xff] }
 0x4e5   : > { %5541 = vmatpush3.bf16.msra.mxu1 %v5540_v3  ;;  %4730 = vmatprep.mubr.msk.f32.mxu1 %vm6264_vm0, %v6722_v7  ;;  %v5594_v3 = vpack.c.bf16 %v2705_v1, %v2704_v0  ;;  %v2799_v51 = vld [vmem:[#allocation3 + $0x4] sm:$0xff] }
 0x4e6   : > { %5542 = vmatprep.subr.bf16.mxu1 %v6263_v17  ;;  %v2980_v0 = vld [vmem:[#allocation14 + $0xc0] sm:$0xff]  ;;  %v2981_v1 = vld [vmem:[#allocation14 + $0xc8] sm:$0xff] }
 0x4e8   : > { %v2414_v11 = vld [vmem:[#allocation3 + $0x9] sm:$0xff]  ;;  %v2415_v15 = vld [vmem:[#allocation3 + $0x11] sm:$0xf] }
 0x4e9   : > { %5544 = vmatpush3.bf16.msra.mxu1 %v5543_v8  ;;  %v2396_v43 = vld [vmem:[#allocation3 + $0x10] sm:$0xf]  ;;  %v5597_v8 = vpack.c.bf16 %v2707_v5, %v2706_v4  ;;  %v2983_v4 = vld [vmem:[#allocation14 + $0xd8] sm:$0xff] }
 0x4ea   : > { %4731 = vmatmul.mubr.f32.gmra.mrb[10].mxu1 %v2414_v11  ;;  %5545 = vmatprep.subr.bf16.mxu1 %v6263_v17  ;;  %v2594_v2 = vld [vmem:[#allocation3 + $0xa] sm:$0xff]  ;;  %v2595_v6 = vld [vmem:[#allocation3 + $0x12] sm:$0xf]  ;;  %v5600_v11 = vpack.c.bf16 %v2709_v10, %v2708_v9 }
 0x4eb   : > { %4733 = vmatprep.mubr.msk.f32.mxu1 %vm6264_vm0, %v6722_v7  ;;  %v2697_v32 = vld [vmem:[#allocation3 + $0xb] sm:$0xff] }
 0x4ec   : > { %v2800_v52 = vld [vmem:[#allocation3 + $0xc] sm:$0xff] }
 0x4ed   : > { %5547 = vmatpush3.bf16.msra.mxu1 %v5546_v12  ;;  %v2710_v12 = vld [vmem:[#allocation12 + $0x1d0] sm:$0xff] }
 0x4ee   : > { %4734 = vmatmul.mubr.f32.gmra.mrb[12].mxu1 %v2415_v15  ;;  %5548 = vmatprep.subr.bf16.mxu1 %v6263_v17  ;;  %v5603_v14 = vpack.c.bf16 %v2711_v13, %v2710_v12  ;;  %v2712_v15 = vld [vmem:[#allocation12 + $0x1e0] sm:$0xff]  ;;  %v2986_v10 = vld [vmem:[#allocation14 + $0xf0] sm:$0xff] }
 0x4ef   : > { %4768 = vmatprep.mubr.msk.f32.mxu1 %vm6264_vm0, %v6722_v7  ;;  %v2953_v13 = vld [vmem:[#allocation14] sm:$0xff] }
 0x4f1   : > { %5550 = vmatpush3.bf16.msra.mxu1 %v5549_v16  ;;  %v2713_v16 = vld [vmem:[#allocation12 + $0x1e8] sm:$0xff] }
 0x4f2   : > { %5551 = vmatprep.subr.bf16.mxu1 %v6263_v17  ;;  %v5606_v18 = vpack.c.bf16 %v2713_v16, %v2712_v15  ;;  %v3619_v16 = vld [vmem:[%s6918_s18] ss:$0 sm:$0xff]  ;;  %s6161_s18 = scalar_lea.vmem %s6810_s12, 256 }
 0x4f3   : > { %p6162_p13 = scmp.ne.s32.totalorder %s6810_s12, %s6161_s18 }
 0x4f5   : > { %5553 = vmatpush3.bf16.msra.mxu1 %v5552_v20  ;;  %v2715_v20 = vld [vmem:[#allocation12 + $0x1f8] sm:$0xff]  ;;  %p6163_p10 = pnand %p6162_p13, %p6924_p8 }
 0x4f6   : > { %5554 = vmatprep.subr.bf16.mxu1 %v6263_v17  ;;  %v5609_v22 = vpack.c.bf16 %v2715_v20, %v2714_v19  ;;  %v3620_v19 = vld [vmem:[%s6919_s11] ss:$0 sm:$0xff]  ;;  %s6167_s11 = scalar_lea.vmem %s6166_s4, 512 }
 0x4f7   : > { %p6164_p11 = pneg %p6163_p10  ;;  %p6169_p2 = scmp.lt.s32.totalorder %s6167_s11, %s6161_s18 }
 0x4f9   : > { %5556 = vmatpush3.bf16.msra.mxu1 %v5555_v24  ;;  %v2804_v24 = vld [vmem:[#allocation12 + $0x208] sm:$0xff]  ;;  %p6170_p3 = por %p6169_p2, %p6168_p0 }
 0x4fa   : > { %5557 = vmatprep.subr.bf16.mxu1 %v6263_v17  ;;  %v5612_v26 = vpack.c.bf16 %v2804_v24, %v2803_v23 }
 0x4fb   : > { %p6171_p5 = pnand %p6170_p3, %p6164_p11 }
 0x4fd   : > { %5559 = vmatpush3.bf16.msra.mxu1 %v5558_v28  ;;  %v2806_v28 = vld [vmem:[#allocation12 + $0x218] sm:$0xff] }
 0x4fe   : > { %5560 = vmatprep.subr.bf16.mxu1 %v6263_v17  ;;  %v5615_v30 = vpack.c.bf16 %v2806_v28, %v2805_v27 }
 0x501   : > { %5562 = vmatpush3.bf16.msra.mxu1 %v5561_v31  ;;  %v2807_v31 = vld [vmem:[#allocation12 + $0x220] sm:$0xff] }
 0x502   : > { %5563 = vmatprep.subr.bf16.mxu1 %v6263_v17 }
 0x504   : > { %6019 = vmatmul.mubr.msk.f32.vlgmr.msra.gmra.mrb[8].mxu1 %vm2373_vm3, %v6713_v59  ;;  %v5588_v59 = vpack.c.bf16 %v2701_v58, %v2700_v57  ;;  %v2974_v57 = vld [vmem:[#allocation14 + $0x90] sm:$0xff] }
 0x505   : > { %5565 = vmatpush3.bf16.msra.mxu1 %v5564_v33  ;;  %4771 = vmatprep.mubr.msk.f32.mxu1 %vm6264_vm0, %v6722_v7  ;;  %v5618_v33 = vpack.c.bf16 %v2808_v35, %v2807_v31 }
 0x506   : > { %5566 = vmatprep.subr.bf16.mxu1 %v6263_v17 }
 0x508   : > { %4772 = vmatmul.mubr.f32.gmra.mrb[10].mxu1 %v6719_v62  ;;  %v2593_v62 = vld [vmem:[#allocation3 + $0x2] sm:$0xff] }
 0x509   : > { %5568 = vmatpush3.bf16.msra.mxu1 %v5567_v37  ;;  %4774 = vmatprep.mubr.msk.f32.mxu1 %vm6264_vm0, %v6722_v7  ;;  %v2698_v37 = vld [vmem:[#allocation3 + $0x13] sm:$0xf] }
 0x50a   : > { %5569 = vmatprep.subr.bf16.mxu1 %v6263_v17 }
 0x50c   : > { %4775 = vmatmul.mubr.f32.gmra.mrb[12].mxu1 %v2396_v43  ;;  %v2814_v43 = vld [vmem:[#allocation12 + $0x258] sm:$0xff] }
 0x50d   : > { %5571 = vmatpush3.bf16.msra.mxu1 %v5570_v40  ;;  %4809 = vmatprep.mubr.msk.f32.mxu1 %vm6264_vm0, %v6722_v7  ;;  %v2812_v40 = vld [vmem:[#allocation12 + $0x248] sm:$0xff] }
 0x50e   : > { %5572 = vmatprep.subr.bf16.mxu1 %v6263_v17  ;;  %v5624_v41 = vpack.c.bf16 %v2812_v40, %v2811_v39 }
 0x511   : > { %5574 = vmatpush3.bf16.msra.mxu1 %v5573_v44  ;;  %v5627_v44 = vpack.c.bf16 %v2814_v43, %v2813_v42 }
 0x512   : > { %5575 = vmatprep.subr.bf16.mxu1 %v6263_v17 }
 0x515   : > { %5577 = vmatpush3.bf16.msra.mxu1 %v5576_v47  ;;  %v5630_v47 = vpack.c.bf16 %v2816_v46, %v2815_v45  ;;  %v2958_v45 = vld [vmem:[#allocation14 + $0x28] sm:$0xff]  ;;  %v2959_v46 = vld [vmem:[#allocation14 + $0x30] sm:$0xff] }
 0x516   : > { %5578 = vmatprep.subr.bf16.mxu1 %v6263_v17 }
 0x519   : > { %5580 = vmatpush3.bf16.msra.mxu1 %v5579_v50  ;;  %v5633_v50 = vpack.c.bf16 %v2818_v49, %v2817_v48  ;;  %v2961_v49 = vld [vmem:[#allocation14 + $0x40] sm:$0xff] }
 0x51a   : > { %5581 = vmatprep.subr.bf16.mxu1 %v6263_v17 }
 0x51d   : > { %5583 = vmatpush3.bf16.msra.mxu1 %v5582_v53  ;;  %v2801_v53 = vld [vmem:[#allocation3 + $0x14] sm:$0xf] }
 0x51e   : > { %5584 = vmatprep.subr.bf16.mxu1 %v6263_v17 }
 0x521   : > { %5586 = vmatpush3.bf16.msra.mxu1 %v5585_v56  ;;  %v5635_v56 = vpack.c.bf16 %v2973_v55, %v2972_v54  ;;  %v2965_v55 = vld [vmem:[#allocation14 + $0x60] sm:$0xff] }
 0x522   : > { %5587 = vmatprep.subr.bf16.mxu1 %v6263_v17 }
 0x523   : > { %5636 = vmatprep.subr.bf16.mxu0 %v5635_v56 }
 0x524   : > { %4810 = vmatmul.mubr.f32.vlgmr.msra.gmra.mrb[8].mxu1 %v2593_v62  ;;  %5638 = vmatpush3.bf16.msra.mxu0 %v5635_v56  ;;  %v2978_v62 = vld [vmem:[#allocation14 + $0xb0] sm:$0xff]  ;;  %v2966_v56 = vld [vmem:[#allocation14 + $0x68] sm:$0xff] }
 0x525   : > { %5589 = vmatpush3.bf16.msra.mxu1 %v5588_v59  ;;  %4812 = vmatprep.mubr.msk.f32.mxu1 %vm6264_vm0, %v6722_v7  ;;  %v2976_v59 = vld [vmem:[#allocation14 + $0xa0] sm:$0xff] }
 0x526   : > { %5590 = vmatprep.subr.bf16.mxu1 %v6263_v17  ;;  %v5643_v61 = vpack.c.bf16 %v2977_v60, %v2976_v59  ;;  %v3141_v60 = vld [vmem:[#allocation14 + $0x100] sm:$0xff] }
 0x528   : > { %4813 = vmatmul.mubr.f32.gmra.mrb[10].mxu1 %v2594_v2  ;;  %v5651_v2 = vpack.c.bf16 %v2981_v1, %v2980_v0  ;;  %v3145_v1 = vld [vmem:[#allocation14 + $0x120] sm:$0xff] }
 0x529   : > { %5592 = vmatpush3.bf16.msra.mxu1 %v5591_v63  ;;  %4815 = vmatprep.mubr.msk.f32.mxu1 %vm6264_vm0, %v6722_v7  ;;  %v2979_v63 = vld [vmem:[#allocation14 + $0xb8] sm:$0xff] }
 0x52a   : > { %5593 = vmatprep.subr.bf16.mxu1 %v6263_v17 }
 0x52c   : > { %4816 = vmatmul.mubr.f32.gmra.mrb[12].mxu1 %v2595_v6  ;;  %v2984_v6 = vld [vmem:[#allocation14 + $0xe0] sm:$0xff] }
 0x52d   : > { %5595 = vmatpush3.bf16.msra.mxu1 %v5594_v3  ;;  %4850 = vmatprep.mubr.msk.f32.mxu1 %vm6264_vm0, %v6722_v7  ;;  %v2982_v3 = vld [vmem:[#allocation14 + $0xd0] sm:$0xff] }
 0x52e   : > { %5596 = vmatprep.subr.bf16.mxu1 %v6263_v17  ;;  %v5655_v5 = vpack.c.bf16 %v2983_v4, %v2982_v3 }
 0x531   : > { %5598 = vmatpush3.bf16.msra.mxu1 %v5597_v8  ;;  %v2985_v8 = vld [vmem:[#allocation14 + $0xe8] sm:$0xff] }
 0x532   : > { %5599 = vmatprep.subr.bf16.mxu1 %v6263_v17  ;;  %v5659_v9 = vpack.c.bf16 %v2985_v8, %v2984_v6  ;;  %v3148_v6 = vld [vmem:[#allocation14 + $0x138] sm:$0xff] }
 0x535   : > { %5601 = vmatpush3.bf16.msra.mxu1 %v5600_v11  ;;  %v2987_v11 = vld [vmem:[#allocation14 + $0xf8] sm:$0xff] }
 0x536   : > { %5602 = vmatprep.subr.bf16.mxu1 %v6263_v17  ;;  %v5663_v12 = vpack.c.bf16 %v2987_v11, %v2986_v10  ;;  %v3150_v10 = vld [vmem:[#allocation14 + $0x148] sm:$0xff] }
 0x539   : > { %5604 = vmatpush3.bf16.msra.mxu1 %v5603_v14  ;;  %v2954_v14 = vld [vmem:[#allocation14 + $0x8] sm:$0xff] }
 0x53a   : > { %5605 = vmatprep.subr.bf16.mxu1 %v6263_v17  ;;  %v5667_v15 = vpack.c.bf16 %v2954_v14, %v2953_v13  ;;  %v3152_v13 = vld [vmem:[#allocation14 + $0x158] sm:$0xff] }
 0x53d   : > { %5607 = vmatpush3.bf16.msra.mxu1 %v5606_v18 }
 0x53e   : > { %5608 = vmatprep.subr.bf16.mxu1 %v6263_v17 }
 0x541   : > { %5610 = vmatpush3.bf16.msra.mxu1 %v5609_v22 }
 0x542   : > { %5611 = vmatprep.subr.bf16.mxu1 %v6263_v17 }
 0x544   : > { %4851 = vmatmul.mubr.f32.vlgmr.msra.gmra.mrb[8].mxu1 %v2696_v29 }
 0x545   : > { %5613 = vmatpush3.bf16.msra.mxu1 %v5612_v26  ;;  %4853 = vmatprep.mubr.msk.f32.mxu1 %vm6264_vm0, %v6722_v7 }
 0x546   : > { %5614 = vmatprep.subr.bf16.mxu1 %v6263_v17 }
 0x548   : > { %4854 = vmatmul.mubr.f32.gmra.mrb[10].mxu1 %v2697_v32 }
 0x549   : > { %5616 = vmatpush3.bf16.msra.mxu1 %v5615_v30  ;;  %4856 = vmatprep.mubr.msk.f32.mxu1 %vm6264_vm0, %v6722_v7  ;;  %v2927_v30 = vadd.s32 4294967294, %v6603_v21  ;;  %v2955_v21 = vld [vmem:[#allocation14 + $0x10] sm:$0xff] }
 0x54a   : > { %5617 = vmatprep.subr.bf16.mxu1 %v6263_v17 }
 0x54b   : > { %vm2930_vm5 = vcmp.ge.s32.totalorder %v2927_v30, 0 }
 0x54c   : > { %4857 = vmatmul.mubr.f32.gmra.mrb[12].mxu1 %v2698_v37 }
 0x54d   : > { %5619 = vmatpush3.bf16.msra.mxu1 %v5618_v33  ;;  %4891 = vmatprep.mubr.msk.f32.mxu1 %vm6264_vm0, %v6722_v7 }
 0x54e   : > { %5620 = vmatprep.subr.bf16.mxu1 %v6263_v17 }
 0x551   : > { %5622 = vmatpush3.bf16.msra.mxu1 %v5621_v38 }
 0x552   : > { %5623 = vmatprep.subr.bf16.mxu1 %v6263_v17 }
 0x555   : > { %5625 = vmatpush3.bf16.msra.mxu1 %v5624_v41  ;;  %v2956_v41 = vld [vmem:[#allocation14 + $0x18] sm:$0xff] }
 0x556   : > { %5626 = vmatprep.subr.bf16.mxu1 %v6263_v17  ;;  %v5671_v42 = vpack.c.bf16 %v2956_v41, %v2955_v21  ;;  %v3247_v21 = vld [vmem:[#allocation14 + $0x1d0] sm:$0xff]  ;;  %v3248_v41 = vld [vmem:[#allocation14 + $0x1d8] sm:$0xff] }
 0x559   : > { %5628 = vmatpush3.bf16.msra.mxu1 %v5627_v44  ;;  %v2957_v44 = vld [vmem:[#allocation14 + $0x20] sm:$0xff] }
 0x55a   : > { %5629 = vmatprep.subr.bf16.mxu1 %v6263_v17  ;;  %v5675_v25 = vpack.c.bf16 %v2958_v45, %v2957_v44  ;;  %v3250_v44 = vld [vmem:[#allocation14 + $0x1e8] sm:$0xff] }
 0x55d   : > { %5631 = vmatpush3.bf16.msra.mxu1 %v5630_v47  ;;  %v2960_v47 = vld [vmem:[#allocation14 + $0x38] sm:$0xff] }
 0x55e   : > { %5632 = vmatprep.subr.bf16.mxu1 %v6263_v17  ;;  %v2975_v17 = vld [vmem:[#allocation14 + $0x98] sm:$0xff]  ;;  %v5679_v48 = vpack.c.bf16 %v2960_v47, %v2959_v46 }
 0x55f   : > { %v5639_v58 = vpack.c.bf16 %v2975_v17, %v2974_v57  ;;  %v5691_v57 = vpack.c.bf16 %v2966_v56, %v2965_v55  ;;  %v2967_v17 = vld [vmem:[#allocation14 + $0x70] sm:$0xff]  ;;  %v3252_v46 = vld [vmem:[#allocation14 + $0x1f8] sm:$0xff]  ;;  %v3337_v55 = vld [vmem:[#allocation14 + $0x220] sm:$0xff] }
 0x560   : > { %v3338_v56 = vld [vmem:[#allocation14 + $0x228] sm:$0xff] }
 0x561   : > { %5634 = vmatpush3.bf16.msra.mxu1 %v5633_v50  ;;  %5640 = vmatprep.subr.bf16.mxu0 %v5639_v58  ;;  %v2962_v50 = vld [vmem:[#allocation14 + $0x48] sm:$0xff] }
 0x562   : > { %5642 = vmatpush3.bf16.msra.mxu0 %v5639_v58  ;;  %v2968_v58 = vld [vmem:[#allocation14 + $0x78] sm:$0xff] }
 0x563   : > { %5644 = vmatprep.subr.bf16.mxu0 %v5643_v61  ;;  %v5695_v59 = vpack.c.bf16 %v2968_v58, %v2967_v17  ;;  %v5771_v17 = vpack.c.bf16 %v3338_v56, %v3337_v55  ;;  %v3339_v58 = vld [vmem:[#allocation14 + $0x230] sm:$0xff] }
 0x564   : > { %4892 = vmatmul.mubr.f32.vlgmr.msra.gmra.mrb[8].mxu1 %v2799_v51  ;;  %v5683_v51 = vpack.c.bf16 %v2962_v50, %v2961_v49  ;;  %v3334_v49 = vld [vmem:[#allocation14 + $0x208] sm:$0xff] }
 0x565   : > { %4894 = vmatprep.mubr.msk.f32.mxu1 %vm6264_vm0, %v6722_v7 }
 0x566   : > { %5646 = vmatpush3.bf16.msra.mxu0 %v5643_v61  ;;  %v3142_v61 = vld [vmem:[#allocation14 + $0x108] sm:$0xff] }
 0x568   : > { %4895 = vmatmul.mubr.f32.gmra.mrb[10].mxu1 %v2800_v52  ;;  %v2963_v52 = vld [vmem:[#allocation14 + $0x50] sm:$0xff] }
 0x569   : > { %4897 = vmatprep.mubr.msk.f32.mxu1 %vm6264_vm0, %v6722_v7  ;;  %v5647_v7 = vpack.c.bf16 %v2979_v63, %v2978_v62  ;;  %v5699_v62 = vpack.c.bf16 %v3142_v61, %v3141_v60  ;;  %v3143_v63 = vld [vmem:[#allocation14 + $0x110] sm:$0xff]  ;;  %v3341_v61 = vld [vmem:[#allocation14 + $0x240] sm:$0xff] }
 0x56b   : > { %5648 = vmatprep.subr.bf16.mxu0 %v5647_v7 }
 0x56c   : > { %4898 = vmatmul.mubr.f32.gmra.mrb[12].mxu1 %v2801_v53  ;;  %5650 = vmatpush3.bf16.msra.mxu0 %v5647_v7  ;;  %v2964_v53 = vld [vmem:[#allocation14 + $0x58] sm:$0xff] }
 0x56d   : > { %5652 = vmatprep.subr.bf16.mxu0 %v5651_v2  ;;  %v5687_v54 = vpack.c.bf16 %v2964_v53, %v2963_v52  ;;  %v3144_v7 = vld [vmem:[#allocation14 + $0x118] sm:$0xff] }
 0x56e   : > { %v5703_v0 = vpack.c.bf16 %v3144_v7, %v3143_v63  ;;  %v3336_v52 = vld [vmem:[#allocation14 + $0x218] sm:$0xff]  ;;  %v3343_v7 = vld [vmem:[#allocation14 + $0x250] sm:$0xff] }
 0x570   : > { %5654 = vmatpush3.bf16.msra.mxu0 %v5651_v2  ;;  %v3146_v2 = vld [vmem:[#allocation14 + $0x128] sm:$0xff] }
 0x571   : > { %5656 = vmatprep.subr.bf16.mxu0 %v5655_v5  ;;  %v5707_v4 = vpack.c.bf16 %v3146_v2, %v3145_v1  ;;  %v3345_v2 = vld [vmem:[#allocation14 + $0x260] sm:$0xff] }
 0x574   : > { %5658 = vmatpush3.bf16.msra.mxu0 %v5655_v5  ;;  %v3147_v5 = vld [vmem:[#allocation14 + $0x130] sm:$0xff] }
 0x575   : > { %5660 = vmatprep.subr.bf16.mxu0 %v5659_v9  ;;  %v5711_v8 = vpack.c.bf16 %v3148_v6, %v3147_v5  ;;  %v3347_v5 = vld [vmem:[#allocation14 + $0x270] sm:$0xff]  ;;  %v3348_v6 = vld [vmem:[#allocation14 + $0x278] sm:$0xff] }
 0x578   : > { %5662 = vmatpush3.bf16.msra.mxu0 %v5659_v9  ;;  %v3149_v9 = vld [vmem:[#allocation14 + $0x140] sm:$0xff] }
 0x579   : > { %5664 = vmatprep.subr.bf16.mxu0 %v5663_v12  ;;  %v5715_v11 = vpack.c.bf16 %v3150_v10, %v3149_v9  ;;  %v3621_v10 = vld [vmem:[%s6920_s16] ss:$0 sm:$0xff] }
 0x57c   : > { %5666 = vmatpush3.bf16.msra.mxu0 %v5663_v12  ;;  %v3151_v12 = vld [vmem:[#allocation14 + $0x150] sm:$0xff] }
 0x57d   : > { %5668 = vmatprep.subr.bf16.mxu0 %v5667_v15  ;;  %v5719_v14 = vpack.c.bf16 %v3152_v13, %v3151_v12  ;;  %v3622_v12 = vld [vmem:[%s6921_s19] ss:$0 sm:$0xff] }
 0x637   : > { %v2885_v18 = vpop.f32.mrb[8].mxu1 }
 0x638   : > { %v2909_v20 = vmul.f32 %v3619_v16, %v2885_v18  ;;  %v4893_v22 = vpop.f32.mrb[9].mxu1 }
 0x63a   : > { %v2919_v23 = vadd.f32 %v3620_v19, %v2909_v20  ;;  %v3156_v20 = vld [vmem:[#allocation14 + $0x178] sm:$0xff] }
 0x63b   : > { %v2890_v24 = vpop.f32.mrb[10].mxu1 }
 0x63c   : > { %6010 = vtanh.f32 %v2919_v23  ;;  %v2910_v26 = vmul.f32 %v3619_v16, %v2890_v24  ;;  %v4896_v27 = vpop.f32.mrb[11].mxu1  ;;  %v3237_v23 = vld [vmem:[#allocation14 + $0x180] sm:$0xff]  ;;  %v3238_v24 = vld [vmem:[#allocation14 + $0x188] sm:$0xff] }
 0x63d   : > { %v3239_v27 = vld [vmem:[#allocation14 + $0x190] sm:$0xff] }
 0x63e   : > { %v2920_v28 = vadd.f32 %v3620_v19, %v2910_v26  ;;  %v5731_v26 = vpack.c.bf16 %v3238_v24, %v3237_v23 }
 0x63f   : > { %v2895_v29 = vpop.f32.mrb[12].mxu1 }
 0x640   : > { %6012 = vtanh.f32 %v2920_v28  ;;  %v2911_v31 = vmul.f32 %v3619_v16, %v2895_v29  ;;  %v4899_v35 = vpop.f32.mrb[13].mxu1  ;;  %v3154_v16 = vld [vmem:[#allocation14 + $0x168] sm:$0xff]  ;;  %v3240_v28 = vld [vmem:[#allocation14 + $0x198] sm:$0xff] }
 0x641   : > { %v5735_v29 = vpack.c.bf16 %v3240_v28, %v3239_v27  ;;  %v3242_v35 = vld [vmem:[#allocation14 + $0x1a8] sm:$0xff] }
 0x642   : > { %v2921_v32 = vadd.f32 %v3620_v19, %v2911_v31  ;;  %v3155_v19 = vld [vmem:[#allocation14 + $0x170] sm:$0xff]  ;;  %v3241_v31 = vld [vmem:[#allocation14 + $0x1a0] sm:$0xff] }
 0x643   : > { %v5727_v22 = vpack.c.bf16 %v3156_v20, %v3155_v19 }
 0x644   : > { %6014 = vtanh.f32 %v2921_v32 }
 0x646   : > { %v6011_v33 = vpop.eup %6010 }
 0x647   : > { %v2945_v34 = vsel %vm2930_vm5, %v6011_v33, 0.0 }
 0x648   : > { %2948 = vst [vmem:[#allocation4] sm:$0xff] %v2945_v34  ;;  %v3243_v34 = vld [vmem:[#allocation14 + $0x1b0] sm:$0xff] }
 0x64a   : > { %v6013_v37 = vpop.eup %6012 }
 0x64b   : > { %2949 = vst [vmem:[#allocation4 + $0x8] sm:$0xff] %v6013_v37 }
 0x64e   : > { %v6015_v38 = vpop.eup %6014 }
 0x64f   : > { %v2947_v39 = vsel %vm2935_vm6, %v6015_v38, 0.0  ;;  %v3245_v38 = vld [vmem:[#allocation14 + $0x1c0] sm:$0xff] }
 0x650   : > { %2950 = vst [vmem:[#allocation4 + $0x10] sm:$0xf] %v2947_v39  ;;  %v3246_v39 = vld [vmem:[#allocation14 + $0x1c8] sm:$0xff] }
 0x652   : > { %v2969_v40 = vld [vmem:[#allocation4 + $0x1] sm:$0xff] }
 0x653   : > { %4932 = vmatprep.mubr.f32.mxu0 %v2969_v40  ;;  %v3138_v3 = vld [vmem:[#allocation4 + $0x2] sm:$0xff]  ;;  %v5747_v40 = vpack.c.bf16 %v3246_v39, %v3245_v38 }
 0x654   : > { %v3234_v32 = vld [vmem:[#allocation4 + $0x3] sm:$0xff] }
 0x657   : > { %v2970_v43 = vld [vmem:[#allocation4 + $0x9] sm:$0xff] }
 0x658   : > { %4933 = vmatmul.mubr.f32.vlgmr.msra.gmra.mrb[10].mxu0 %v2970_v43  ;;  %v3139_v30 = vld [vmem:[#allocation4 + $0xa] sm:$0xff]  ;;  %v3249_v43 = vld [vmem:[#allocation14 + $0x1e0] sm:$0xff] }
 0x659   : > { %5670 = vmatpush3.bf16.msra.mxu0 %v5667_v15  ;;  %6020 = vmatprep.mubr.msk.f32.mxu0 %vm2930_vm5, %v6011_v33  ;;  %v3153_v15 = vld [vmem:[#allocation14 + $0x160] sm:$0xff]  ;;  %v5739_v33 = vpack.c.bf16 %v3242_v35, %v3241_v31  ;;  %v5755_v45 = vpack.c.bf16 %v3250_v44, %v3249_v43  ;;  %v3331_v9 = vld [vmem:[#allocation4 + $0xc] sm:$0xff] }
 0x65a   : > { %5672 = vmatprep.subr.bf16.mxu0 %v5671_v42  ;;  %v5723_v18 = vpack.c.bf16 %v3154_v16, %v3153_v15 }
 0x65d   : > { %5674 = vmatpush3.bf16.msra.mxu0 %v5671_v42  ;;  %v5751_v42 = vpack.c.bf16 %v3248_v41, %v3247_v21 }
 0x65e   : > { %5676 = vmatprep.subr.bf16.mxu0 %v5675_v25 }
 0x661   : > { %5678 = vmatpush3.bf16.msra.mxu0 %v5675_v25  ;;  %v3251_v25 = vld [vmem:[#allocation14 + $0x1f0] sm:$0xff] }
 0x662   : > { %5680 = vmatprep.subr.bf16.mxu0 %v5679_v48  ;;  %v5759_v47 = vpack.c.bf16 %v3252_v46, %v3251_v25 }
 0x665   : > { %5682 = vmatpush3.bf16.msra.mxu0 %v5679_v48  ;;  %v3333_v48 = vld [vmem:[#allocation14 + $0x200] sm:$0xff] }
 0x666   : > { %5684 = vmatprep.subr.bf16.mxu0 %v5683_v51  ;;  %v5763_v50 = vpack.c.bf16 %v3334_v49, %v3333_v48 }
 0x669   : > { %5686 = vmatpush3.bf16.msra.mxu0 %v5683_v51  ;;  %v3335_v51 = vld [vmem:[#allocation14 + $0x210] sm:$0xff] }
 0x66a   : > { %5688 = vmatprep.subr.bf16.mxu0 %v5687_v54  ;;  %v5767_v53 = vpack.c.bf16 %v3336_v52, %v3335_v51 }
 0x66d   : > { %5690 = vmatpush3.bf16.msra.mxu0 %v5687_v54  ;;  %v3235_v54 = vld [vmem:[#allocation4 + $0xb] sm:$0xff] }
 0x66e   : > { %5692 = vmatprep.subr.bf16.mxu0 %v5691_v57 }
 0x671   : > { %5694 = vmatpush3.bf16.msra.mxu0 %v5691_v57  ;;  %v3330_v57 = vld [vmem:[#allocation4 + $0x4] sm:$0xff] }
 0x672   : > { %5696 = vmatprep.subr.bf16.mxu0 %v5695_v59 }
 0x675   : > { %5698 = vmatpush3.bf16.msra.mxu0 %v5695_v59  ;;  %v3340_v59 = vld [vmem:[#allocation14 + $0x238] sm:$0xff] }
 0x676   : > { %5700 = vmatprep.subr.bf16.mxu0 %v5699_v62  ;;  %v5775_v60 = vpack.c.bf16 %v3340_v59, %v3339_v58 }
 0x678   : > { %4968 = vmatmul.mubr.f32.vlgmr.msra.gmra.mrb[10].mxu0 %v6013_v37  ;;  %v5743_v37 = vpack.c.bf16 %v3244_v36, %v3243_v34 }
 0x679   : > { %5702 = vmatpush3.bf16.msra.mxu0 %v5699_v62  ;;  %5002 = vmatprep.mubr.f32.mxu0 %v3138_v3  ;;  %v3342_v62 = vld [vmem:[#allocation14 + $0x248] sm:$0xff] }
 0x67a   : > { %5704 = vmatprep.subr.bf16.mxu0 %v5703_v0  ;;  %v5779_v63 = vpack.c.bf16 %v3342_v62, %v3341_v61  ;;  %v3346_v3 = vld [vmem:[#allocation14 + $0x268] sm:$0xff] }
 0x67d   : > { %5706 = vmatpush3.bf16.msra.mxu0 %v5703_v0  ;;  %v3344_v0 = vld [vmem:[#allocation14 + $0x258] sm:$0xff] }
 0x67e   : > { %5708 = vmatprep.subr.bf16.mxu0 %v5707_v4  ;;  %v5783_v1 = vpack.c.bf16 %v3344_v0, %v3343_v7 }
 0x681   : > { %5710 = vmatpush3.bf16.msra.mxu0 %v5707_v4  ;;  %v5787_v4 = vpack.c.bf16 %v3346_v3, %v3345_v2 }
 0x682   : > { %5712 = vmatprep.subr.bf16.mxu0 %v5711_v8 }
 0x685   : > { %5714 = vmatpush3.bf16.msra.mxu0 %v5711_v8  ;;  %v5791_v8 = vpack.c.bf16 %v3348_v6, %v3347_v5 }
 0x686   : > { %5716 = vmatprep.subr.bf16.mxu0 %v5715_v11 }
 0x689   : > { %5718 = vmatpush3.bf16.msra.mxu0 %v5715_v11 }
 0x68a   : > { %5720 = vmatprep.subr.bf16.mxu0 %v5719_v14 }
 0x68d   : > { %5722 = vmatpush3.bf16.msra.mxu0 %v5719_v14 }
 0x68e   : > { %5724 = vmatprep.subr.bf16.mxu0 %v5723_v18 }
 0x691   : > { %5726 = vmatpush3.bf16.msra.mxu0 %v5723_v18 }
 0x692   : > { %5728 = vmatprep.subr.bf16.mxu0 %v5727_v22 }
 0x695   : > { %5730 = vmatpush3.bf16.msra.mxu0 %v5727_v22 }
 0x696   : > { %5732 = vmatprep.subr.bf16.mxu0 %v5731_v26 }
 0x698   : > { %5003 = vmatmul.mubr.f32.vlgmr.msra.gmra.mrb[10].mxu0 %v3139_v30 }
 0x699   : > { %5734 = vmatpush3.bf16.msra.mxu0 %v5731_v26  ;;  %5037 = vmatprep.mubr.f32.mxu0 %v3234_v32 }
 0x69a   : > { %5736 = vmatprep.subr.bf16.mxu0 %v5735_v29 }
 0x69d   : > { %5738 = vmatpush3.bf16.msra.mxu0 %v5735_v29 }
 0x69e   : > { %5740 = vmatprep.subr.bf16.mxu0 %v5739_v33 }
 0x6a1   : > { %5742 = vmatpush3.bf16.msra.mxu0 %v5739_v33 }
 0x6a2   : > { %5744 = vmatprep.subr.bf16.mxu0 %v5743_v37 }
 0x6a5   : > { %5746 = vmatpush3.bf16.msra.mxu0 %v5743_v37 }
 0x6a6   : > { %5748 = vmatprep.subr.bf16.mxu0 %v5747_v40 }
 0x6a9   : > { %5750 = vmatpush3.bf16.msra.mxu0 %v5747_v40 }
 0x6aa   : > { %5752 = vmatprep.subr.bf16.mxu0 %v5751_v42 }
 0x6ad   : > { %5754 = vmatpush3.bf16.msra.mxu0 %v5751_v42 }
 0x6ae   : > { %5756 = vmatprep.subr.bf16.mxu0 %v5755_v45 }
 0x6b1   : > { %5758 = vmatpush3.bf16.msra.mxu0 %v5755_v45 }
 0x6b2   : > { %5760 = vmatprep.subr.bf16.mxu0 %v5759_v47 }
 0x6b5   : > { %5762 = vmatpush3.bf16.msra.mxu0 %v5759_v47 }
 0x6b6   : > { %5764 = vmatprep.subr.bf16.mxu0 %v5763_v50 }
 0x6b8   : > { %5038 = vmatmul.mubr.f32.vlgmr.msra.gmra.mrb[10].mxu0 %v3235_v54 }
 0x6b9   : > { %5766 = vmatpush3.bf16.msra.mxu0 %v5763_v50  ;;  %5072 = vmatprep.mubr.f32.mxu0 %v3330_v57 }
 0x6ba   : > { %5768 = vmatprep.subr.bf16.mxu0 %v5767_v53 }
 0x6bd   : > { %5770 = vmatpush3.bf16.msra.mxu0 %v5767_v53 }
 0x6be   : > { %5772 = vmatprep.subr.bf16.mxu0 %v5771_v17 }
 0x6c1   : > { %5774 = vmatpush3.bf16.msra.mxu0 %v5771_v17 }
 0x6c2   : > { %5776 = vmatprep.subr.bf16.mxu0 %v5775_v60 }
 0x6c5   : > { %5778 = vmatpush3.bf16.msra.mxu0 %v5775_v60 }
 0x6c6   : > { %5780 = vmatprep.subr.bf16.mxu0 %v5779_v63 }
 0x6c9   : > { %5782 = vmatpush3.bf16.msra.mxu0 %v5779_v63 }
 0x6ca   : > { %5784 = vmatprep.subr.bf16.mxu0 %v5783_v1 }
 0x6cd   : > { %5786 = vmatpush3.bf16.msra.mxu0 %v5783_v1 }
 0x6ce   : > { %5788 = vmatprep.subr.bf16.mxu0 %v5787_v4 }
 0x6d1   : > { %5790 = vmatpush3.bf16.msra.mxu0 %v5787_v4 }
 0x6d2   : > { %5792 = vmatprep.subr.bf16.mxu0 %v5791_v8 }
 0x6d5   : > { %5794 = vmatpush3.bf16.msra.mxu0 %v5791_v8 }
 0x6d8   : > { %5073 = vmatmul.mubr.f32.vlgmr.msra.gmra.mrb[10].mxu0 %v3331_v9 }
 0x7ab   : > { %v5074_v11 = vpop.f32.mrb[10].mxu0 }
 0x7ac   : > { %v3434_v13 = vmul.f32 %v5074_v11, %v3621_v10  ;;  %v3415_v14 = vpop.f32.mrb[11].mxu0 }
 0x7ad   : > { %v3433_v15 = vmul.f32 %v3621_v10, %v3415_v14 }
 0x7ae   : > { %v3443_v16 = vadd.f32 %v3622_v12, %v3434_v13 }
 0x7af   : > { %v3442_v18 = vadd.f32 %v3622_v12, %v3433_v15 }
 0x7b0   : > { %3445 = vst [vmem:[%s6563_s21 + $0x8] sm:$0xff] %v3443_v16 }
 0x7b1   : > { %3444 = vst [vmem:[%s6563_s21] sm:$0xff] %v3442_v18 }
 0x7b2   : > { %6174 = shalt.err (!%p6171_p5)
}
 0x7b3   : > { %s6175_s29 = scalar_lea.hbm %s6808_s26, 256  ;;  %s6179_s15 = scalar_lea.hbm %s6923_s28, 512 }
 0x7b4   : > { %p6176_p6 = scmp.ne.s32.totalorder %s6808_s26, %s6175_s29  ;;  %p6180_p12 = scmp.lt.u32.totalorder %s6808_s26, %s6923_s28 }
 0x7b5   : > { %p6181_p4 = scmp.lt.u32.totalorder %s6179_s15, %s6175_s29  ;;  %p6183_p13 = scmp.lt.u32.totalorder %s6175_s29, %s6808_s26 }
 0x7b6   : > { %p6177_p7 = pnand %p6176_p6, %p6924_p8 }
 0x7b7   : > { %p6182_p1 = por %p6181_p4, %p6180_p12 }
 0x7b8   : > { %p6178_p9 = pneg %p6177_p7 }
 0x7b9   : > { %p6184_p10 = por %p6183_p13, %p6182_p1 }
 0x7bb   : > { %p6185_p11 = pnand %p6184_p10, %p6178_p9 }
 0x7bd   : > { %6188 = shalt.err (!%p6185_p11)
}
 0x7be   : > { %s6266_s30 = smov 128   ;;  %s6267_s19 = smov 8  }
 0x7bf   : > { %5901 = dma.vmem_to_hbm [thread:$0]  (%p6924_p8), %s6810_s12, 256, %s6808_s26, %s6816_s24, %s6266_s30, %s6266_s30, %s6267_s19  }
 0x7c0 PF: > { %s6925_s23 = sld [smem:[#allocation25_spill]]  ;;  %s6926_s0 = sld [smem:[#allocation22_spill]] }
 0x7c1   : > { %s6927_s20 = sld [smem:[#allocation28_spill]] }
 0x7c6   : > { %p5933_p0 = scmp.ge.s32.totalorder %s6925_s23, 2  ;;  %s3477_s18 = sand.u32 1, %s6926_s0  }
 0x7c7   : > { %p6928_p2 = scmp.ne.s32.totalorder %s6927_s20, 0  ;;  %s3478_s25 = scalar_lea.sflag [#allocation8], %s3477_s18 }
 0x7c9   : > { %p5920_p3 = pnand %p5933_p0, %p6928_p2 }
 0x7cb   : > { %6228 = dma.done.wait (!%p5920_p3), %s3478_s25, 256  }
 0x7cc   : > { %6230 = vsyncadd (!%p5920_p3), %s3478_s25, 4294967040  ;;  %s32_s26 = sadd.s32 1, %s6925_s23   ;;  %s6929_s4 = sld [smem:[#allocation23_spill]] }
 0x7cd   : > { %p29_p5 = scmp.ge.s32.totalorder %s32_s26, 4   ;;  %s6930_s23 = sld [smem:[#allocation29_spill]] }
 0x7ce   : > { %s6931_s24 = sld [smem:[#allocation24_spill]]  ;;  %s6932_s25 = sld [smem:[#allocation26_spill]] }
 0x7cf   : > { %s6933_s21 = smov %s6237_s22  ;;  %31 = sbr.rel (!%p29_p5) target bundleno = 15 (0xf), region = 205 }
 0x7d2   : > { %s6934_s22 = smov %s6929_s4 }
 0x7d6   :  { %3483 = vsyncpa [#allocation7], 1 }
 0x7d7   :  { %3485 = vsyncpa [#allocation7 + $0x1], 1 }
 0x7d8   :  { %3486 = vsyncpa [#allocation10], 1 }
 0x7d9   :  { %3487 = vsyncpa [#allocation13], 1 }
 0x7da   :  { %3488 = vsyncpa [#allocation8], 1 }
 0x7db   :  { %3490 = vsyncpa [#allocation8 + $0x1], 1 }
 0x7dc   :  { %3491 = vsyncmov [#allocation5] }
 0x7df   :  { %s3492_s17 = vpop.sfrf %3491 }
 0x7e0   :  { %p3628_p8 = scmp.ne.s32.totalorder %s3492_s17, 0 }
 0x7e2   :  { %3496 = shalt.err (%p3628_p8)  }

</bundles_post_ra>
